<compile_context>
chip_gen: v5e
topology: v5e:2x2
jax: 0.10.0
libtpu: 0.0.40
codegen_flags: <defaults>
</compile_context>

<pallas_src>
import functools

import jax
import jax.numpy as jnp
import numpy as np
from jax import lax
from jax.experimental import pallas as pl
from jax.experimental.pallas import tpu as pltpu

VMEM_SPEC = pl.BlockSpec(memory_space=pltpu.MemorySpace.VMEM)


# ---------------------------------------------------------------------------
# Fused stacked-GRU kernel (PyTorch nn.GRU semantics, gate order r, z, n)
# ---------------------------------------------------------------------------
def _fused_gru_kernel(*args, num_layers, T, reverse):
    # args layout: x_ref, [10 refs per layer], out_ref, 3 gi scratches, L h scratches
    x_ref = args[0]
    pos = 1
    layer_refs = []
    for _ in range(num_layers):
        layer_refs.append(args[pos:pos + 10])
        pos += 10
    out_ref = args[pos]
    pos += 1
    gi_r_ref, gi_z_ref, gi_n_ref = args[pos:pos + 3]
    pos += 3
    h_refs = args[pos:pos + num_layers]

    B = x_ref.shape[1]
    Din = x_ref.shape[2]
    H0 = h_refs[0].shape[1]

    (wir0, wiz0, win0, whr0, whz0, whn0, br0, bz0, bin0, bhn0) = layer_refs[0]

    # --- hoisted layer-0 input projection: one large MXU matmul per gate -----
    x_flat = x_ref[...].reshape(T * B, Din)
    gi_r_ref[...] = (jnp.dot(x_flat, wir0[...], preferred_element_type=jnp.float32)
                     + br0[...]).reshape(T, B, H0)
    gi_z_ref[...] = (jnp.dot(x_flat, wiz0[...], preferred_element_type=jnp.float32)
                     + bz0[...]).reshape(T, B, H0)
    gi_n_ref[...] = (jnp.dot(x_flat, win0[...], preferred_element_type=jnp.float32)
                     + bin0[...]).reshape(T, B, H0)

    # --- zero-init hidden states ---------------------------------------------
    for h_ref in h_refs:
        h_ref[...] = jnp.zeros_like(h_ref)

    # --- hoist bias broadcasts out of the recurrence --------------------------
    bhn0_v = jnp.broadcast_to(bhn0[...], (B, H0))
    deep_biases = []
    for l in range(1, num_layers):
        (_, _, _, _, _, _, br, bz, bin_, bhn) = layer_refs[l]
        Hl = h_refs[l].shape[1]
        deep_biases.append((jnp.broadcast_to(br[...], (B, Hl)),
                            jnp.broadcast_to(bz[...], (B, Hl)),
                            jnp.broadcast_to(bin_[...], (B, Hl)),
                            jnp.broadcast_to(bhn[...], (B, Hl))))

    def step(t, carry):
        t_idx = (T - 1 - t) if reverse else t

        # layer 0: input projection was precomputed
        h0 = h_refs[0][...]
        r = jax.nn.sigmoid(
            gi_r_ref[t_idx]
            + jnp.dot(h0, whr0[...], preferred_element_type=jnp.float32))
        z = jax.nn.sigmoid(
            gi_z_ref[t_idx]
            + jnp.dot(h0, whz0[...], preferred_element_type=jnp.float32))
        n = jnp.tanh(
            gi_n_ref[t_idx]
            + r * (jnp.dot(h0, whn0[...], preferred_element_type=jnp.float32) + bhn0_v))
        h_new = (1.0 - z) * n + z * h0
        h_refs[0][...] = h_new
        inp = h_new

        # deeper layers: layer l at time t only needs layer l-1 at time t
        for l in range(1, num_layers):
            (wir, wiz, win, whr, whz, whn, _, _, _, _) = layer_refs[l]
            br_v, bz_v, bin_v, bhn_v = deep_biases[l - 1]
            hl = h_refs[l][...]
            r = jax.nn.sigmoid(
                jnp.dot(inp, wir[...], preferred_element_type=jnp.float32)
                + jnp.dot(hl, whr[...], preferred_element_type=jnp.float32) + br_v)
            z = jax.nn.sigmoid(
                jnp.dot(inp, wiz[...], preferred_element_type=jnp.float32)
                + jnp.dot(hl, whz[...], preferred_element_type=jnp.float32) + bz_v)
            n = jnp.tanh(
                jnp.dot(inp, win[...], preferred_element_type=jnp.float32) + bin_v
                + r * (jnp.dot(hl, whn[...], preferred_element_type=jnp.float32) + bhn_v))
            h_new_l = (1.0 - z) * n + z * hl
            h_refs[l][...] = h_new_l
            inp = h_new_l
        return carry

    lax.fori_loop(0, T, step, 0, unroll=True)

    # Only the last layer's final hidden state leaves the kernel.
    out_ref[...] = h_refs[-1][...].astype(out_ref.dtype)


def fused_gru(x_tbd, rnn_layers, reverse):
    """x_tbd: (T, B, Din) time-major. rnn_layers: prepared per-gate params."""
    T, B, _ = x_tbd.shape
    hidden_sizes = [lp["whr"].shape[0] for lp in rnn_layers]
    num_layers = len(rnn_layers)

    flat_args = [x_tbd]
    for lp in rnn_layers:
        flat_args += [lp["wir"], lp["wiz"], lp["win"],
                      lp["whr"], lp["whz"], lp["whn"],
                      lp["br"], lp["bz"], lp["bin"], lp["bhn"]]

    scratch_shapes = (
        [pltpu.VMEM((T, B, hidden_sizes[0]), jnp.float32)] * 3
        + [pltpu.VMEM((B, h), jnp.float32) for h in hidden_sizes]
    )

    return pl.pallas_call(
        functools.partial(_fused_gru_kernel,
                          num_layers=num_layers, T=T, reverse=reverse),
        out_shape=jax.ShapeDtypeStruct((B, hidden_sizes[-1]), x_tbd.dtype),
        in_specs=[VMEM_SPEC] * len(flat_args),
        out_specs=VMEM_SPEC,
        scratch_shapes=scratch_shapes,
    )(*flat_args)


# ---------------------------------------------------------------------------
# Fused FF stack + split + abs()*scaler head kernel
# ---------------------------------------------------------------------------
def _ff_head_kernel(*args, num_hidden):
    x_ref = args[0]
    pos = 1
    hidden = []
    for _ in range(num_hidden):
        hidden.append((args[pos], args[pos + 1]))
        pos += 2
    w_mean, b_mean, w_std, b_std, scaler = args[pos:pos + 5]
    pos += 5
    mean_ref, std_ref = args[pos], args[pos + 1]

    y = x_ref[...]
    for (w, b) in hidden:
        y = jnp.maximum(
            jnp.dot(y, w[...], preferred_element_type=jnp.float32) + b[...], 0.0)
    mean = jnp.dot(y, w_mean[...], preferred_element_type=jnp.float32) + b_mean[...]
    std = jnp.abs(jnp.dot(y, w_std[...], preferred_element_type=jnp.float32)
                  + b_std[...]) * scaler[...]
    mean_ref[...] = mean.astype(mean_ref.dtype)
    std_ref[...] = std.astype(std_ref.dtype)


def ff_head(rnn_out, ff_hidden, head, scaler_flat):
    """rnn_out: (B, H). Returns flat (B, n_regions*latent_dim) mean and std."""
    B = rnn_out.shape[0]
    out_dim = head["w_mean"].shape[1]

    flat_args = [rnn_out]
    for lp in ff_hidden:
        flat_args += [lp["w"], lp["b"]]
    flat_args += [head["w_mean"], head["b_mean"],
                  head["w_std"], head["b_std"], scaler_flat]

    return pl.pallas_call(
        functools.partial(_ff_head_kernel, num_hidden=len(ff_hidden)),
        out_shape=(jax.ShapeDtypeStruct((B, out_dim), rnn_out.dtype),
                   jax.ShapeDtypeStruct((B, out_dim), rnn_out.dtype)),
        in_specs=[VMEM_SPEC] * len(flat_args),
        out_specs=(VMEM_SPEC, VMEM_SPEC),
    )(*flat_args)


# ---------------------------------------------------------------------------
# Parameter construction (PyTorch layout) + one-time prep (per-gate, transposed)
# ---------------------------------------------------------------------------
def init_encoder_params(key, rnn_input_size, rnn_hidden_sizes, ff_hidden_sizes,
                        n_regions, latent_dim, SIR_scaler=(0.1, 0.05, 1.0)):
    ff_hidden_sizes = list(ff_hidden_sizes) + [2 * n_regions * latent_dim]
    params = {"rnn": [], "ff": []}

    d_in = rnn_input_size
    for h in rnn_hidden_sizes:
        k = 1.0 / np.sqrt(h)
        key, k1, k2, k3, k4 = jax.random.split(key, 5)
        params["rnn"].append({
            "w_ih": jax.random.uniform(k1, (3 * h, d_in), jnp.float32, -k, k),
            "w_hh": jax.random.uniform(k2, (3 * h, h), jnp.float32, -k, k),
            "b_ih": jax.random.uniform(k3, (3 * h,), jnp.float32, -k, k),
            "b_hh": jax.random.uniform(k4, (3 * h,), jnp.float32, -k, k),
        })
        d_in = h

    f_in = rnn_hidden_sizes[-1]
    for h in ff_hidden_sizes:
        k = 1.0 / np.sqrt(f_in)
        key, k1, k2 = jax.random.split(key, 3)
        params["ff"].append({
            "w": jax.random.uniform(k1, (h, f_in), jnp.float32, -k, k),
            "b": jax.random.uniform(k2, (h,), jnp.float32, -k, k),
        })
        f_in = h

    scaler = jnp.asarray(SIR_scaler, jnp.float32)
    if latent_dim > scaler.shape[0]:
        scaler = jnp.concatenate(
            [scaler, jnp.full((latent_dim - scaler.shape[0],), scaler[-1], jnp.float32)])
    params["scaler"] = scaler.reshape(1, 1, -1)   # (1, 1, latent_dim)
    return params


def prepare_encoder_params(raw, n_regions, latent_dim):
    """One-time layout prep: per-gate split, transpose to (D_in, H), bias folding."""
    prep = {"rnn": [], "ff_hidden": [], "head": {}, "scaler_flat": None}

    for lp in raw["rnn"]:
        H = lp["w_hh"].shape[1]
        wih, whh = lp["w_ih"], lp["w_hh"]
        bih, bhh = lp["b_ih"], lp["b_hh"]
        prep["rnn"].append({
            "wir": wih[:H].T,           "wiz": wih[H:2 * H].T,   "win": wih[2 * H:].T,
            "whr": whh[:H].T,           "whz": whh[H:2 * H].T,   "whn": whh[2 * H:].T,
            "br":  (bih[:H] + bhh[:H]).reshape(1, H),
            "bz":  (bih[H:2 * H] + bhh[H:2 * H]).reshape(1, H),
            "bin": bih[2 * H:].reshape(1, H),
            "bhn": bhh[2 * H:].reshape(1, H),
        })

    ff = raw["ff"]
    for lp in ff[:-1]:
        prep["ff_hidden"].append({"w": lp["w"].T, "b": lp["b"].reshape(1, -1)})

    w_last, b_last = ff[-1]["w"], ff[-1]["b"]
    half = w_last.shape[0] // 2
    prep["head"] = {
        "w_mean": w_last[:half].T, "b_mean": b_last[:half].reshape(1, -1),
        "w_std":  w_last[half:].T, "b_std":  b_last[half:].reshape(1, -1),
    }

    scaler_ld = raw["scaler"].reshape(-1)                       # (latent_dim,)
    prep["scaler_flat"] = jnp.tile(scaler_ld, n_regions).reshape(1, -1)
    return prep


# ---------------------------------------------------------------------------
# Encoder forward (hot path: 2 fused Pallas kernels)
# ---------------------------------------------------------------------------
def encoder_forward(prep, x, n_regions, latent_dim, reverse=True):
    B, T, _ = x.shape
    B_pad = ((B + 7) // 8) * 8                    # fill f32 sublanes
    if B_pad != B:
        x = jnp.pad(x, ((0, B_pad - B), (0, 0), (0, 0)))
    x_tbd = jnp.transpose(x, (1, 0, 2))           # (T, B_pad, D) time-major

    rnn_out = fused_gru(x_tbd, prep["rnn"], reverse=reverse)      # (B_pad, H_last)
    mean_flat, std_flat = ff_head(rnn_out, prep["ff_hidden"],
                                  prep["head"], prep["scaler_flat"])

    mean = mean_flat[:B].reshape(-1, n_regions, latent_dim)
    std = std_flat[:B].reshape(-1, n_regions, latent_dim)
    return mean, std


# ---------------------------------------------------------------------------
# Pure-JAX reference (same math, raw PyTorch-layout params)
# ---------------------------------------------------------------------------
def encoder_reference(params, x, n_regions, latent_dim, reverse=True):
    if reverse:
        x = jnp.flip(x, axis=1)
    B, T, _ = x.shape
    h_seq = x
    for lp in params["rnn"]:
        H = lp["w_hh"].shape[1]
        wih, whh = lp["w_ih"].T, lp["w_hh"].T
        bih, bhh = lp["b_ih"], lp["b_hh"]
        h = jnp.zeros((B, H), jnp.float32)
        outs = []
        for t in range(T):
            gi = h_seq[:, t, :] @ wih + bih
            gh = h @ whh + bhh
            r = jax.nn.sigmoid(gi[:, :H] + gh[:, :H])
            z = jax.nn.sigmoid(gi[:, H:2 * H] + gh[:, H:2 * H])
            n = jnp.tanh(gi[:, 2 * H:] + r * gh[:, 2 * H:])
            h = (1.0 - z) * n + z * h
            outs.append(h)
        h_seq = jnp.stack(outs, axis=1)
    y = h_seq[:, -1, :]
    n_ff = len(params["ff"])
    for i, lp in enumerate(params["ff"]):
        y = y @ lp["w"].T + lp["b"]
        if i != n_ff - 1:
            y = jnp.maximum(y, 0.0)
    half = y.shape[-1] // 2
    mean = y[:, :half].reshape(-1, n_regions, latent_dim)
    std = jnp.abs(y[:, half:].reshape(-1, n_regions, latent_dim)) * params["scaler"]
    return mean, std


if __name__ == "__main__":
    # Small shapes consistent with the module
    B, T = 2, 8
    rnn_input_size = 4
    rnn_hidden_sizes = [32, 32]
    ff_hidden_sizes = [32]          # module appends 2 * n_regions * latent_dim
    n_regions, latent_dim = 3, 4

    key = jax.random.PRNGKey(0)
    key, pkey, xkey = jax.random.split(key, 3)
    raw_params = init_encoder_params(pkey, rnn_input_size, rnn_hidden_sizes,
                                     ff_hidden_sizes, n_regions, latent_dim)
    prep_params = prepare_encoder_params(raw_params, n_regions, latent_dim)
    x = jax.random.normal(xkey, (B, T, rnn_input_size), jnp.float32)

    fwd = jax.jit(functools.partial(encoder_forward, n_regions=n_regions,
                                    latent_dim=latent_dim, reverse=True))
    mean, std = fwd(prep_params, x)
    jax.block_until_ready((mean, std))

    ref_mean, ref_std = encoder_reference(raw_params, x, n_regions, latent_dim, reverse=True)
    np.testing.assert_allclose(np.asarray(mean), np.asarray(ref_mean), rtol=1e-4, atol=1e-5)
    np.testing.assert_allclose(np.asarray(std), np.asarray(ref_std), rtol=1e-4, atol=1e-5)
    assert mean.shape == (B, n_regions, latent_dim) and std.shape == (B, n_regions, latent_dim)

    print("KERNEL_OK")
</pallas_src>

<mosaic_0001>
module attributes {stable_mosaic.version = 11 : i64} {
  func.func @_ff_head_kernel(%arg0: memref<8x32xf32, #tpu.memory_space<vmem>>, %arg1: memref<32x32xf32, #tpu.memory_space<vmem>>, %arg2: memref<1x32xf32, #tpu.memory_space<vmem>>, %arg3: memref<32x12xf32, #tpu.memory_space<vmem>>, %arg4: memref<1x12xf32, #tpu.memory_space<vmem>>, %arg5: memref<32x12xf32, #tpu.memory_space<vmem>>, %arg6: memref<1x12xf32, #tpu.memory_space<vmem>>, %arg7: memref<1x12xf32, #tpu.memory_space<vmem>>, %arg8: memref<8x12xf32, #tpu.memory_space<vmem>>, %arg9: memref<8x12xf32, #tpu.memory_space<vmem>>) attributes {dimension_semantics = [], scalar_prefetch = 0 : i64, scratch_operands = 0 : i64, tpu.core_type = #tpu.core_type<tc>} {
    %c0 = arith.constant 0 : index
    %c0_0 = arith.constant 0 : index
    %0 = vector.load %arg0[%c0, %c0_0] : memref<8x32xf32, #tpu.memory_space<vmem>>, vector<8x32xf32>
    %c0_1 = arith.constant 0 : index
    %c0_2 = arith.constant 0 : index
    %1 = vector.load %arg1[%c0_1, %c0_2] : memref<32x32xf32, #tpu.memory_space<vmem>>, vector<32x32xf32>
    %cst = arith.constant dense<0.000000e+00> : vector<8x32xf32>
    %2 = tpu.matmul %0, %1, %cst {dimension_numbers = #tpu.dot_dimension_numbers<[1], [0], [0], [1], [0, 0, 1, 1], [], []>} : vector<8x32xf32>, vector<32x32xf32>, vector<8x32xf32> -> vector<8x32xf32>
    %c0_3 = arith.constant 0 : index
    %c0_4 = arith.constant 0 : index
    %3 = vector.load %arg2[%c0_3, %c0_4] : memref<1x32xf32, #tpu.memory_space<vmem>>, vector<1x32xf32>
    %4 = vector.broadcast %3 : vector<1x32xf32> to vector<8x32xf32>
    %5 = arith.addf %2, %4 : vector<8x32xf32>
    %cst_5 = arith.constant 0.000000e+00 : f32
    %6 = vector.broadcast %cst_5 : f32 to vector<8x32xf32>
    %7 = arith.maximumf %5, %6 : vector<8x32xf32>
    %c0_6 = arith.constant 0 : index
    %c0_7 = arith.constant 0 : index
    %8 = vector.load %arg3[%c0_6, %c0_7] : memref<32x12xf32, #tpu.memory_space<vmem>>, vector<32x12xf32>
    %cst_8 = arith.constant dense<0.000000e+00> : vector<8x12xf32>
    %9 = tpu.matmul %7, %8, %cst_8 {dimension_numbers = #tpu.dot_dimension_numbers<[1], [0], [0], [1], [0, 0, 1, 1], [], []>} : vector<8x32xf32>, vector<32x12xf32>, vector<8x12xf32> -> vector<8x12xf32>
    %c0_9 = arith.constant 0 : index
    %c0_10 = arith.constant 0 : index
    %10 = vector.load %arg4[%c0_9, %c0_10] : memref<1x12xf32, #tpu.memory_space<vmem>>, vector<1x12xf32>
    %11 = vector.broadcast %10 : vector<1x12xf32> to vector<8x12xf32>
    %12 = arith.addf %9, %11 : vector<8x12xf32>
    %c0_11 = arith.constant 0 : index
    %c0_12 = arith.constant 0 : index
    %13 = vector.load %arg5[%c0_11, %c0_12] : memref<32x12xf32, #tpu.memory_space<vmem>>, vector<32x12xf32>
    %cst_13 = arith.constant dense<0.000000e+00> : vector<8x12xf32>
    %14 = tpu.matmul %7, %13, %cst_13 {dimension_numbers = #tpu.dot_dimension_numbers<[1], [0], [0], [1], [0, 0, 1, 1], [], []>} : vector<8x32xf32>, vector<32x12xf32>, vector<8x12xf32> -> vector<8x12xf32>
    %c0_14 = arith.constant 0 : index
    %c0_15 = arith.constant 0 : index
    %15 = vector.load %arg6[%c0_14, %c0_15] : memref<1x12xf32, #tpu.memory_space<vmem>>, vector<1x12xf32>
    %16 = vector.broadcast %15 : vector<1x12xf32> to vector<8x12xf32>
    %17 = arith.addf %14, %16 : vector<8x12xf32>
    %18 = math.absf %17 : vector<8x12xf32>
    %c0_16 = arith.constant 0 : index
    %c0_17 = arith.constant 0 : index
    %19 = vector.load %arg7[%c0_16, %c0_17] : memref<1x12xf32, #tpu.memory_space<vmem>>, vector<1x12xf32>
    %20 = vector.broadcast %19 : vector<1x12xf32> to vector<8x12xf32>
    %21 = arith.mulf %18, %20 : vector<8x12xf32>
    %c0_18 = arith.constant 0 : index
    %c0_19 = arith.constant 0 : index
    %22 = vector.load %arg8[%c0_18, %c0_19] : memref<8x12xf32, #tpu.memory_space<vmem>>, vector<8x12xf32>
    tpu.vector_store %arg8[%c0_18, %c0_19], %12 {strides = array<i32>} : memref<8x12xf32, #tpu.memory_space<vmem>>, vector<8x12xf32>,
    %c0_20 = arith.constant 0 : index
    %c0_21 = arith.constant 0 : index
    %23 = vector.load %arg9[%c0_20, %c0_21] : memref<8x12xf32, #tpu.memory_space<vmem>>, vector<8x12xf32>
    tpu.vector_store %arg9[%c0_20, %c0_21], %21 {strides = array<i32>} : memref<8x12xf32, #tpu.memory_space<vmem>>, vector<8x12xf32>,
    return
  }
}

module attributes {stable_mosaic.version = 11 : i64} {
  func.func @_fused_gru_kernel(%arg0: memref<8x8x4xf32, #tpu.memory_space<vmem>>, %arg1: memref<4x32xf32, #tpu.memory_space<vmem>>, %arg2: memref<4x32xf32, #tpu.memory_space<vmem>>, %arg3: memref<4x32xf32, #tpu.memory_space<vmem>>, %arg4: memref<32x32xf32, #tpu.memory_space<vmem>>, %arg5: memref<32x32xf32, #tpu.memory_space<vmem>>, %arg6: memref<32x32xf32, #tpu.memory_space<vmem>>, %arg7: memref<1x32xf32, #tpu.memory_space<vmem>>, %arg8: memref<1x32xf32, #tpu.memory_space<vmem>>, %arg9: memref<1x32xf32, #tpu.memory_space<vmem>>, %arg10: memref<1x32xf32, #tpu.memory_space<vmem>>, %arg11: memref<32x32xf32, #tpu.memory_space<vmem>>, %arg12: memref<32x32xf32, #tpu.memory_space<vmem>>, %arg13: memref<32x32xf32, #tpu.memory_space<vmem>>, %arg14: memref<32x32xf32, #tpu.memory_space<vmem>>, %arg15: memref<32x32xf32, #tpu.memory_space<vmem>>, %arg16: memref<32x32xf32, #tpu.memory_space<vmem>>, %arg17: memref<1x32xf32, #tpu.memory_space<vmem>>, %arg18: memref<1x32xf32, #tpu.memory_space<vmem>>, %arg19: memref<1x32xf32, #tpu.memory_space<vmem>>, %arg20: memref<1x32xf32, #tpu.memory_space<vmem>>, %arg21: memref<8x32xf32, #tpu.memory_space<vmem>>, %arg22: memref<8x8x32xf32, #tpu.memory_space<vmem>>, %arg23: memref<8x8x32xf32, #tpu.memory_space<vmem>>, %arg24: memref<8x8x32xf32, #tpu.memory_space<vmem>>, %arg25: memref<8x32xf32, #tpu.memory_space<vmem>>, %arg26: memref<8x32xf32, #tpu.memory_space<vmem>>) attributes {dimension_semantics = [], scalar_prefetch = 0 : i64, scratch_operands = 5 : i64, tpu.core_type = #tpu.core_type<tc>} {
    %c0 = arith.constant 0 : index
    %c0_0 = arith.constant 0 : index
    %c0_1 = arith.constant 0 : index
    %0 = vector.load %arg0[%c0, %c0_0, %c0_1] : memref<8x8x4xf32, #tpu.memory_space<vmem>>, vector<8x8x4xf32>
    %1 = vector.shape_cast %0 : vector<8x8x4xf32> to vector<64x4xf32>
    %c0_2 = arith.constant 0 : index
    %c0_3 = arith.constant 0 : index
    %2 = vector.load %arg1[%c0_2, %c0_3] : memref<4x32xf32, #tpu.memory_space<vmem>>, vector<4x32xf32>
    %cst = arith.constant dense<0.000000e+00> : vector<64x32xf32>
    %3 = tpu.matmul %1, %2, %cst {dimension_numbers = #tpu.dot_dimension_numbers<[1], [0], [0], [1], [0, 0, 1, 1], [], []>} : vector<64x4xf32>, vector<4x32xf32>, vector<64x32xf32> -> vector<64x32xf32>
    %c0_4 = arith.constant 0 : index
    %c0_5 = arith.constant 0 : index
    %4 = vector.load %arg7[%c0_4, %c0_5] : memref<1x32xf32, #tpu.memory_space<vmem>>, vector<1x32xf32>
    %5 = vector.broadcast %4 : vector<1x32xf32> to vector<64x32xf32>
    %6 = arith.addf %3, %5 : vector<64x32xf32>
    %7 = vector.shape_cast %6 : vector<64x32xf32> to vector<8x8x32xf32>
    %c0_6 = arith.constant 0 : index
    %c0_7 = arith.constant 0 : index
    %c0_8 = arith.constant 0 : index
    %8 = vector.load %arg22[%c0_6, %c0_7, %c0_8] : memref<8x8x32xf32, #tpu.memory_space<vmem>>, vector<8x8x32xf32>
    tpu.vector_store %arg22[%c0_6, %c0_7, %c0_8], %7 {strides = array<i32>} : memref<8x8x32xf32, #tpu.memory_space<vmem>>, vector<8x8x32xf32>,
    %c0_9 = arith.constant 0 : index
    %c0_10 = arith.constant 0 : index
    %9 = vector.load %arg2[%c0_9, %c0_10] : memref<4x32xf32, #tpu.memory_space<vmem>>, vector<4x32xf32>
    %cst_11 = arith.constant dense<0.000000e+00> : vector<64x32xf32>
    %10 = tpu.matmul %1, %9, %cst_11 {dimension_numbers = #tpu.dot_dimension_numbers<[1], [0], [0], [1], [0, 0, 1, 1], [], []>} : vector<64x4xf32>, vector<4x32xf32>, vector<64x32xf32> -> vector<64x32xf32>
    %c0_12 = arith.constant 0 : index
    %c0_13 = arith.constant 0 : index
    %11 = vector.load %arg8[%c0_12, %c0_13] : memref<1x32xf32, #tpu.memory_space<vmem>>, vector<1x32xf32>
    %12 = vector.broadcast %11 : vector<1x32xf32> to vector<64x32xf32>
    %13 = arith.addf %10, %12 : vector<64x32xf32>
    %14 = vector.shape_cast %13 : vector<64x32xf32> to vector<8x8x32xf32>
    %c0_14 = arith.constant 0 : index
    %c0_15 = arith.constant 0 : index
    %c0_16 = arith.constant 0 : index
    %15 = vector.load %arg23[%c0_14, %c0_15, %c0_16] : memref<8x8x32xf32, #tpu.memory_space<vmem>>, vector<8x8x32xf32>
    tpu.vector_store %arg23[%c0_14, %c0_15, %c0_16], %14 {strides = array<i32>} : memref<8x8x32xf32, #tpu.memory_space<vmem>>, vector<8x8x32xf32>,
    %c0_17 = arith.constant 0 : index
    %c0_18 = arith.constant 0 : index
    %16 = vector.load %arg3[%c0_17, %c0_18] : memref<4x32xf32, #tpu.memory_space<vmem>>, vector<4x32xf32>
    %cst_19 = arith.constant dense<0.000000e+00> : vector<64x32xf32>
    %17 = tpu.matmul %1, %16, %cst_19 {dimension_numbers = #tpu.dot_dimension_numbers<[1], [0], [0], [1], [0, 0, 1, 1], [], []>} : vector<64x4xf32>, vector<4x32xf32>, vector<64x32xf32> -> vector<64x32xf32>
    %c0_20 = arith.constant 0 : index
    %c0_21 = arith.constant 0 : index
    %18 = vector.load %arg9[%c0_20, %c0_21] : memref<1x32xf32, #tpu.memory_space<vmem>>, vector<1x32xf32>
    %19 = vector.broadcast %18 : vector<1x32xf32> to vector<64x32xf32>
    %20 = arith.addf %17, %19 : vector<64x32xf32>
    %21 = vector.shape_cast %20 : vector<64x32xf32> to vector<8x8x32xf32>
    %c0_22 = arith.constant 0 : index
    %c0_23 = arith.constant 0 : index
    %c0_24 = arith.constant 0 : index
    %22 = vector.load %arg24[%c0_22, %c0_23, %c0_24] : memref<8x8x32xf32, #tpu.memory_space<vmem>>, vector<8x8x32xf32>
    tpu.vector_store %arg24[%c0_22, %c0_23, %c0_24], %21 {strides = array<i32>} : memref<8x8x32xf32, #tpu.memory_space<vmem>>, vector<8x8x32xf32>,
    %cst_25 = arith.constant 0.000000e+00 : f32
    %23 = vector.broadcast %cst_25 : f32 to vector<8x32xf32>
    %c0_26 = arith.constant 0 : index
    %c0_27 = arith.constant 0 : index
    %24 = vector.load %arg25[%c0_26, %c0_27] : memref<8x32xf32, #tpu.memory_space<vmem>>, vector<8x32xf32>
    tpu.vector_store %arg25[%c0_26, %c0_27], %23 {strides = array<i32>} : memref<8x32xf32, #tpu.memory_space<vmem>>, vector<8x32xf32>,
    %cst_28 = arith.constant 0.000000e+00 : f32
    %25 = vector.broadcast %cst_28 : f32 to vector<8x32xf32>
    %c0_29 = arith.constant 0 : index
    %c0_30 = arith.constant 0 : index
    %26 = vector.load %arg26[%c0_29, %c0_30] : memref<8x32xf32, #tpu.memory_space<vmem>>, vector<8x32xf32>
    tpu.vector_store %arg26[%c0_29, %c0_30], %25 {strides = array<i32>} : memref<8x32xf32, #tpu.memory_space<vmem>>, vector<8x32xf32>,
    %c0_31 = arith.constant 0 : index
    %c0_32 = arith.constant 0 : index
    %27 = vector.load %arg10[%c0_31, %c0_32] : memref<1x32xf32, #tpu.memory_space<vmem>>, vector<1x32xf32>
    %28 = vector.shape_cast %27 : vector<1x32xf32> to vector<1x32xf32>
    %29 = vector.broadcast %28 : vector<1x32xf32> to vector<8x32xf32>
    %c0_33 = arith.constant 0 : index
    %c0_34 = arith.constant 0 : index
    %30 = vector.load %arg17[%c0_33, %c0_34] : memref<1x32xf32, #tpu.memory_space<vmem>>, vector<1x32xf32>
    %31 = vector.shape_cast %30 : vector<1x32xf32> to vector<1x32xf32>
    %32 = vector.broadcast %31 : vector<1x32xf32> to vector<8x32xf32>
    %c0_35 = arith.constant 0 : index
    %c0_36 = arith.constant 0 : index
    %33 = vector.load %arg18[%c0_35, %c0_36] : memref<1x32xf32, #tpu.memory_space<vmem>>, vector<1x32xf32>
    %34 = vector.shape_cast %33 : vector<1x32xf32> to vector<1x32xf32>
    %35 = vector.broadcast %34 : vector<1x32xf32> to vector<8x32xf32>
    %c0_37 = arith.constant 0 : index
    %c0_38 = arith.constant 0 : index
    %36 = vector.load %arg19[%c0_37, %c0_38] : memref<1x32xf32, #tpu.memory_space<vmem>>, vector<1x32xf32>
    %37 = vector.shape_cast %36 : vector<1x32xf32> to vector<1x32xf32>
    %38 = vector.broadcast %37 : vector<1x32xf32> to vector<8x32xf32>
    %c0_39 = arith.constant 0 : index
    %c0_40 = arith.constant 0 : index
    %39 = vector.load %arg20[%c0_39, %c0_40] : memref<1x32xf32, #tpu.memory_space<vmem>>, vector<1x32xf32>
    %40 = vector.shape_cast %39 : vector<1x32xf32> to vector<1x32xf32>
    %41 = vector.broadcast %40 : vector<1x32xf32> to vector<8x32xf32>
    %c0_i32 = arith.constant 0 : i32
    %c7_i32 = arith.constant 7 : i32
    %42 = arith.subi %c7_i32, %c0_i32 : i32
    %c0_41 = arith.constant 0 : index
    %c0_42 = arith.constant 0 : index
    %43 = vector.load %arg25[%c0_41, %c0_42] : memref<8x32xf32, #tpu.memory_space<vmem>>, vector<8x32xf32>
    %44 = arith.index_cast %42 : i32 to index
    %c0_43 = arith.constant 0 : index
    %c0_44 = arith.constant 0 : index
    %45 = vector.load %arg22[%44, %c0_43, %c0_44] : memref<8x8x32xf32, #tpu.memory_space<vmem>>, vector<1x8x32xf32>
    %46 = vector.shape_cast %45 : vector<1x8x32xf32> to vector<8x32xf32>
    %c0_45 = arith.constant 0 : index
    %c0_46 = arith.constant 0 : index
    %47 = vector.load %arg4[%c0_45, %c0_46] : memref<32x32xf32, #tpu.memory_space<vmem>>, vector<32x32xf32>
    %cst_47 = arith.constant dense<0.000000e+00> : vector<8x32xf32>
    %48 = tpu.matmul %43, %47, %cst_47 {dimension_numbers = #tpu.dot_dimension_numbers<[1], [0], [0], [1], [0, 0, 1, 1], [], []>} : vector<8x32xf32>, vector<32x32xf32>, vector<8x32xf32> -> vector<8x32xf32>
    %49 = arith.addf %46, %48 : vector<8x32xf32>
    %50 = arith.negf %49 : vector<8x32xf32>
    %51 = math.exp %50 : vector<8x32xf32>
    %cst_48 = arith.constant 1.000000e+00 : f32
    %52 = vector.broadcast %cst_48 : f32 to vector<8x32xf32>
    %53 = arith.addf %52, %51 : vector<8x32xf32>
    %54 = arith.divf %52, %53 : vector<8x32xf32>
    %55 = arith.index_cast %42 : i32 to index
    %c0_49 = arith.constant 0 : index
    %c0_50 = arith.constant 0 : index
    %56 = vector.load %arg23[%55, %c0_49, %c0_50] : memref<8x8x32xf32, #tpu.memory_space<vmem>>, vector<1x8x32xf32>
    %57 = vector.shape_cast %56 : vector<1x8x32xf32> to vector<8x32xf32>
    %c0_51 = arith.constant 0 : index
    %c0_52 = arith.constant 0 : index
    %58 = vector.load %arg5[%c0_51, %c0_52] : memref<32x32xf32, #tpu.memory_space<vmem>>, vector<32x32xf32>
    %cst_53 = arith.constant dense<0.000000e+00> : vector<8x32xf32>
    %59 = tpu.matmul %43, %58, %cst_53 {dimension_numbers = #tpu.dot_dimension_numbers<[1], [0], [0], [1], [0, 0, 1, 1], [], []>} : vector<8x32xf32>, vector<32x32xf32>, vector<8x32xf32> -> vector<8x32xf32>
    %60 = arith.addf %57, %59 : vector<8x32xf32>
    %61 = arith.negf %60 : vector<8x32xf32>
    %62 = math.exp %61 : vector<8x32xf32>
    %cst_54 = arith.constant 1.000000e+00 : f32
    %63 = vector.broadcast %cst_54 : f32 to vector<8x32xf32>
    %64 = arith.addf %63, %62 : vector<8x32xf32>
    %65 = arith.divf %63, %64 : vector<8x32xf32>
    %66 = arith.index_cast %42 : i32 to index
    %c0_55 = arith.constant 0 : index
    %c0_56 = arith.constant 0 : index
    %67 = vector.load %arg24[%66, %c0_55, %c0_56] : memref<8x8x32xf32, #tpu.memory_space<vmem>>, vector<1x8x32xf32>
    %68 = vector.shape_cast %67 : vector<1x8x32xf32> to vector<8x32xf32>
    %c0_57 = arith.constant 0 : index
    %c0_58 = arith.constant 0 : index
    %69 = vector.load %arg6[%c0_57, %c0_58] : memref<32x32xf32, #tpu.memory_space<vmem>>, vector<32x32xf32>
    %cst_59 = arith.constant dense<0.000000e+00> : vector<8x32xf32>
    %70 = tpu.matmul %43, %69, %cst_59 {dimension_numbers = #tpu.dot_dimension_numbers<[1], [0], [0], [1], [0, 0, 1, 1], [], []>} : vector<8x32xf32>, vector<32x32xf32>, vector<8x32xf32> -> vector<8x32xf32>
    %71 = arith.addf %70, %29 : vector<8x32xf32>
    %72 = arith.mulf %54, %71 : vector<8x32xf32>
    %73 = arith.addf %68, %72 : vector<8x32xf32>
    %74 = math.tanh %73 : vector<8x32xf32>
    %cst_60 = arith.constant 1.000000e+00 : f32
    %75 = vector.broadcast %cst_60 : f32 to vector<8x32xf32>
    %76 = arith.subf %75, %65 : vector<8x32xf32>
    %77 = arith.mulf %76, %74 : vector<8x32xf32>
    %78 = arith.mulf %65, %43 : vector<8x32xf32>
    %79 = arith.addf %77, %78 : vector<8x32xf32>
    %c0_61 = arith.constant 0 : index
    %c0_62 = arith.constant 0 : index
    %80 = vector.load %arg25[%c0_61, %c0_62] : memref<8x32xf32, #tpu.memory_space<vmem>>, vector<8x32xf32>
    tpu.vector_store %arg25[%c0_61, %c0_62], %79 {strides = array<i32>} : memref<8x32xf32, #tpu.memory_space<vmem>>, vector<8x32xf32>,
    %c0_63 = arith.constant 0 : index
    %c0_64 = arith.constant 0 : index
    %81 = vector.load %arg26[%c0_63, %c0_64] : memref<8x32xf32, #tpu.memory_space<vmem>>, vector<8x32xf32>
    %c0_65 = arith.constant 0 : index
    %c0_66 = arith.constant 0 : index
    %82 = vector.load %arg11[%c0_65, %c0_66] : memref<32x32xf32, #tpu.memory_space<vmem>>, vector<32x32xf32>
    %cst_67 = arith.constant dense<0.000000e+00> : vector<8x32xf32>
    %83 = tpu.matmul %79, %82, %cst_67 {dimension_numbers = #tpu.dot_dimension_numbers<[1], [0], [0], [1], [0, 0, 1, 1], [], []>} : vector<8x32xf32>, vector<32x32xf32>, vector<8x32xf32> -> vector<8x32xf32>
    %c0_68 = arith.constant 0 : index
    %c0_69 = arith.constant 0 : index
    %84 = vector.load %arg14[%c0_68, %c0_69] : memref<32x32xf32, #tpu.memory_space<vmem>>, vector<32x32xf32>
    %cst_70 = arith.constant dense<0.000000e+00> : vector<8x32xf32>
    %85 = tpu.matmul %81, %84, %cst_70 {dimension_numbers = #tpu.dot_dimension_numbers<[1], [0], [0], [1], [0, 0, 1, 1], [], []>} : vector<8x32xf32>, vector<32x32xf32>, vector<8x32xf32> -> vector<8x32xf32>
    %86 = arith.addf %83, %85 : vector<8x32xf32>
    %87 = arith.addf %86, %32 : vector<8x32xf32>
    %88 = arith.negf %87 : vector<8x32xf32>
    %89 = math.exp %88 : vector<8x32xf32>
    %cst_71 = arith.constant 1.000000e+00 : f32
    %90 = vector.broadcast %cst_71 : f32 to vector<8x32xf32>
    %91 = arith.addf %90, %89 : vector<8x32xf32>
    %92 = arith.divf %90, %91 : vector<8x32xf32>
    %c0_72 = arith.constant 0 : index
    %c0_73 = arith.constant 0 : index
    %93 = vector.load %arg12[%c0_72, %c0_73] : memref<32x32xf32, #tpu.memory_space<vmem>>, vector<32x32xf32>
    %cst_74 = arith.constant dense<0.000000e+00> : vector<8x32xf32>
    %94 = tpu.matmul %79, %93, %cst_74 {dimension_numbers = #tpu.dot_dimension_numbers<[1], [0], [0], [1], [0, 0, 1, 1], [], []>} : vector<8x32xf32>, vector<32x32xf32>, vector<8x32xf32> -> vector<8x32xf32>
    %c0_75 = arith.constant 0 : index
    %c0_76 = arith.constant 0 : index
    %95 = vector.load %arg15[%c0_75, %c0_76] : memref<32x32xf32, #tpu.memory_space<vmem>>, vector<32x32xf32>
    %cst_77 = arith.constant dense<0.000000e+00> : vector<8x32xf32>
    %96 = tpu.matmul %81, %95, %cst_77 {dimension_numbers = #tpu.dot_dimension_numbers<[1], [0], [0], [1], [0, 0, 1, 1], [], []>} : vector<8x32xf32>, vector<32x32xf32>, vector<8x32xf32> -> vector<8x32xf32>
    %97 = arith.addf %94, %96 : vector<8x32xf32>
    %98 = arith.addf %97, %35 : vector<8x32xf32>
    %99 = arith.negf %98 : vector<8x32xf32>
    %100 = math.exp %99 : vector<8x32xf32>
    %cst_78 = arith.constant 1.000000e+00 : f32
    %101 = vector.broadcast %cst_78 : f32 to vector<8x32xf32>
    %102 = arith.addf %101, %100 : vector<8x32xf32>
    %103 = arith.divf %101, %102 : vector<8x32xf32>
    %c0_79 = arith.constant 0 : index
    %c0_80 = arith.constant 0 : index
    %104 = vector.load %arg13[%c0_79, %c0_80] : memref<32x32xf32, #tpu.memory_space<vmem>>, vector<32x32xf32>
    %cst_81 = arith.constant dense<0.000000e+00> : vector<8x32xf32>
    %105 = tpu.matmul %79, %104, %cst_81 {dimension_numbers = #tpu.dot_dimension_numbers<[1], [0], [0], [1], [0, 0, 1, 1], [], []>} : vector<8x32xf32>, vector<32x32xf32>, vector<8x32xf32> -> vector<8x32xf32>
    %106 = arith.addf %105, %38 : vector<8x32xf32>
    %c0_82 = arith.constant 0 : index
    %c0_83 = arith.constant 0 : index
    %107 = vector.load %arg16[%c0_82, %c0_83] : memref<32x32xf32, #tpu.memory_space<vmem>>, vector<32x32xf32>
    %cst_84 = arith.constant dense<0.000000e+00> : vector<8x32xf32>
    %108 = tpu.matmul %81, %107, %cst_84 {dimension_numbers = #tpu.dot_dimension_numbers<[1], [0], [0], [1], [0, 0, 1, 1], [], []>} : vector<8x32xf32>, vector<32x32xf32>, vector<8x32xf32> -> vector<8x32xf32>
    %109 = arith.addf %108, %41 : vector<8x32xf32>
    %110 = arith.mulf %92, %109 : vector<8x32xf32>
    %111 = arith.addf %106, %110 : vector<8x32xf32>
    %112 = math.tanh %111 : vector<8x32xf32>
    %cst_85 = arith.constant 1.000000e+00 : f32
    %113 = vector.broadcast %cst_85 : f32 to vector<8x32xf32>
    %114 = arith.subf %113, %103 : vector<8x32xf32>
    %115 = arith.mulf %114, %112 : vector<8x32xf32>
    %116 = arith.mulf %103, %81 : vector<8x32xf32>
    %117 = arith.addf %115, %116 : vector<8x32xf32>
    %c0_86 = arith.constant 0 : index
    %c0_87 = arith.constant 0 : index
    %118 = vector.load %arg26[%c0_86, %c0_87] : memref<8x32xf32, #tpu.memory_space<vmem>>, vector<8x32xf32>
    tpu.vector_store %arg26[%c0_86, %c0_87], %117 {strides = array<i32>} : memref<8x32xf32, #tpu.memory_space<vmem>>, vector<8x32xf32>,
    %c1_i32 = arith.constant 1 : i32
    %c7_i32_88 = arith.constant 7 : i32
    %119 = arith.subi %c7_i32_88, %c1_i32 : i32
    %c0_89 = arith.constant 0 : index
    %c0_90 = arith.constant 0 : index
    %120 = vector.load %arg25[%c0_89, %c0_90] : memref<8x32xf32, #tpu.memory_space<vmem>>, vector<8x32xf32>
    %121 = arith.index_cast %119 : i32 to index
    %c0_91 = arith.constant 0 : index
    %c0_92 = arith.constant 0 : index
    %122 = vector.load %arg22[%121, %c0_91, %c0_92] : memref<8x8x32xf32, #tpu.memory_space<vmem>>, vector<1x8x32xf32>
    %123 = vector.shape_cast %122 : vector<1x8x32xf32> to vector<8x32xf32>
    %c0_93 = arith.constant 0 : index
    %c0_94 = arith.constant 0 : index
    %124 = vector.load %arg4[%c0_93, %c0_94] : memref<32x32xf32, #tpu.memory_space<vmem>>, vector<32x32xf32>
    %cst_95 = arith.constant dense<0.000000e+00> : vector<8x32xf32>
    %125 = tpu.matmul %120, %124, %cst_95 {dimension_numbers = #tpu.dot_dimension_numbers<[1], [0], [0], [1], [0, 0, 1, 1], [], []>} : vector<8x32xf32>, vector<32x32xf32>, vector<8x32xf32> -> vector<8x32xf32>
    %126 = arith.addf %123, %125 : vector<8x32xf32>
    %127 = arith.negf %126 : vector<8x32xf32>
    %128 = math.exp %127 : vector<8x32xf32>
    %cst_96 = arith.constant 1.000000e+00 : f32
    %129 = vector.broadcast %cst_96 : f32 to vector<8x32xf32>
    %130 = arith.addf %129, %128 : vector<8x32xf32>
    %131 = arith.divf %129, %130 : vector<8x32xf32>
    %132 = arith.index_cast %119 : i32 to index
    %c0_97 = arith.constant 0 : index
    %c0_98 = arith.constant 0 : index
    %133 = vector.load %arg23[%132, %c0_97, %c0_98] : memref<8x8x32xf32, #tpu.memory_space<vmem>>, vector<1x8x32xf32>
    %134 = vector.shape_cast %133 : vector<1x8x32xf32> to vector<8x32xf32>
    %c0_99 = arith.constant 0 : index
    %c0_100 = arith.constant 0 : index
    %135 = vector.load %arg5[%c0_99, %c0_100] : memref<32x32xf32, #tpu.memory_space<vmem>>, vector<32x32xf32>
    %cst_101 = arith.constant dense<0.000000e+00> : vector<8x32xf32>
    %136 = tpu.matmul %120, %135, %cst_101 {dimension_numbers = #tpu.dot_dimension_numbers<[1], [0], [0], [1], [0, 0, 1, 1], [], []>} : vector<8x32xf32>, vector<32x32xf32>, vector<8x32xf32> -> vector<8x32xf32>
    %137 = arith.addf %134, %136 : vector<8x32xf32>
    %138 = arith.negf %137 : vector<8x32xf32>
    %139 = math.exp %138 : vector<8x32xf32>
    %cst_102 = arith.constant 1.000000e+00 : f32
    %140 = vector.broadcast %cst_102 : f32 to vector<8x32xf32>
    %141 = arith.addf %140, %139 : vector<8x32xf32>
    %142 = arith.divf %140, %141 : vector<8x32xf32>
    %143 = arith.index_cast %119 : i32 to index
    %c0_103 = arith.constant 0 : index
    %c0_104 = arith.constant 0 : index
    %144 = vector.load %arg24[%143, %c0_103, %c0_104] : memref<8x8x32xf32, #tpu.memory_space<vmem>>, vector<1x8x32xf32>
    %145 = vector.shape_cast %144 : vector<1x8x32xf32> to vector<8x32xf32>
    %c0_105 = arith.constant 0 : index
    %c0_106 = arith.constant 0 : index
    %146 = vector.load %arg6[%c0_105, %c0_106] : memref<32x32xf32, #tpu.memory_space<vmem>>, vector<32x32xf32>
    %cst_107 = arith.constant dense<0.000000e+00> : vector<8x32xf32>
    %147 = tpu.matmul %120, %146, %cst_107 {dimension_numbers = #tpu.dot_dimension_numbers<[1], [0], [0], [1], [0, 0, 1, 1], [], []>} : vector<8x32xf32>, vector<32x32xf32>, vector<8x32xf32> -> vector<8x32xf32>
    %148 = arith.addf %147, %29 : vector<8x32xf32>
    %149 = arith.mulf %131, %148 : vector<8x32xf32>
    %150 = arith.addf %145, %149 : vector<8x32xf32>
    %151 = math.tanh %150 : vector<8x32xf32>
    %cst_108 = arith.constant 1.000000e+00 : f32
    %152 = vector.broadcast %cst_108 : f32 to vector<8x32xf32>
    %153 = arith.subf %152, %142 : vector<8x32xf32>
    %154 = arith.mulf %153, %151 : vector<8x32xf32>
    %155 = arith.mulf %142, %120 : vector<8x32xf32>
    %156 = arith.addf %154, %155 : vector<8x32xf32>
    %c0_109 = arith.constant 0 : index
    %c0_110 = arith.constant 0 : index
    %157 = vector.load %arg25[%c0_109, %c0_110] : memref<8x32xf32, #tpu.memory_space<vmem>>, vector<8x32xf32>
    tpu.vector_store %arg25[%c0_109, %c0_110], %156 {strides = array<i32>} : memref<8x32xf32, #tpu.memory_space<vmem>>, vector<8x32xf32>,
    %c0_111 = arith.constant 0 : index
    %c0_112 = arith.constant 0 : index
    %158 = vector.load %arg26[%c0_111, %c0_112] : memref<8x32xf32, #tpu.memory_space<vmem>>, vector<8x32xf32>
    %c0_113 = arith.constant 0 : index
    %c0_114 = arith.constant 0 : index
    %159 = vector.load %arg11[%c0_113, %c0_114] : memref<32x32xf32, #tpu.memory_space<vmem>>, vector<32x32xf32>
    %cst_115 = arith.constant dense<0.000000e+00> : vector<8x32xf32>
    %160 = tpu.matmul %156, %159, %cst_115 {dimension_numbers = #tpu.dot_dimension_numbers<[1], [0], [0], [1], [0, 0, 1, 1], [], []>} : vector<8x32xf32>, vector<32x32xf32>, vector<8x32xf32> -> vector<8x32xf32>
    %c0_116 = arith.constant 0 : index
    %c0_117 = arith.constant 0 : index
    %161 = vector.load %arg14[%c0_116, %c0_117] : memref<32x32xf32, #tpu.memory_space<vmem>>, vector<32x32xf32>
    %cst_118 = arith.constant dense<0.000000e+00> : vector<8x32xf32>
    %162 = tpu.matmul %158, %161, %cst_118 {dimension_numbers = #tpu.dot_dimension_numbers<[1], [0], [0], [1], [0, 0, 1, 1], [], []>} : vector<8x32xf32>, vector<32x32xf32>, vector<8x32xf32> -> vector<8x32xf32>
    %163 = arith.addf %160, %162 : vector<8x32xf32>
    %164 = arith.addf %163, %32 : vector<8x32xf32>
    %165 = arith.negf %164 : vector<8x32xf32>
    %166 = math.exp %165 : vector<8x32xf32>
    %cst_119 = arith.constant 1.000000e+00 : f32
    %167 = vector.broadcast %cst_119 : f32 to vector<8x32xf32>
    %168 = arith.addf %167, %166 : vector<8x32xf32>
    %169 = arith.divf %167, %168 : vector<8x32xf32>
    %c0_120 = arith.constant 0 : index
    %c0_121 = arith.constant 0 : index
    %170 = vector.load %arg12[%c0_120, %c0_121] : memref<32x32xf32, #tpu.memory_space<vmem>>, vector<32x32xf32>
    %cst_122 = arith.constant dense<0.000000e+00> : vector<8x32xf32>
    %171 = tpu.matmul %156, %170, %cst_122 {dimension_numbers = #tpu.dot_dimension_numbers<[1], [0], [0], [1], [0, 0, 1, 1], [], []>} : vector<8x32xf32>, vector<32x32xf32>, vector<8x32xf32> -> vector<8x32xf32>
    %c0_123 = arith.constant 0 : index
    %c0_124 = arith.constant 0 : index
    %172 = vector.load %arg15[%c0_123, %c0_124] : memref<32x32xf32, #tpu.memory_space<vmem>>, vector<32x32xf32>
    %cst_125 = arith.constant dense<0.000000e+00> : vector<8x32xf32>
    %173 = tpu.matmul %158, %172, %cst_125 {dimension_numbers = #tpu.dot_dimension_numbers<[1], [0], [0], [1], [0, 0, 1, 1], [], []>} : vector<8x32xf32>, vector<32x32xf32>, vector<8x32xf32> -> vector<8x32xf32>
    %174 = arith.addf %171, %173 : vector<8x32xf32>
    %175 = arith.addf %174, %35 : vector<8x32xf32>
    %176 = arith.negf %175 : vector<8x32xf32>
    %177 = math.exp %176 : vector<8x32xf32>
    %cst_126 = arith.constant 1.000000e+00 : f32
    %178 = vector.broadcast %cst_126 : f32 to vector<8x32xf32>
    %179 = arith.addf %178, %177 : vector<8x32xf32>
    %180 = arith.divf %178, %179 : vector<8x32xf32>
    %c0_127 = arith.constant 0 : index
    %c0_128 = arith.constant 0 : index
    %181 = vector.load %arg13[%c0_127, %c0_128] : memref<32x32xf32, #tpu.memory_space<vmem>>, vector<32x32xf32>
    %cst_129 = arith.constant dense<0.000000e+00> : vector<8x32xf32>
    %182 = tpu.matmul %156, %181, %cst_129 {dimension_numbers = #tpu.dot_dimension_numbers<[1], [0], [0], [1], [0, 0, 1, 1], [], []>} : vector<8x32xf32>, vector<32x32xf32>, vector<8x32xf32> -> vector<8x32xf32>
    %183 = arith.addf %182, %38 : vector<8x32xf32>
    %c0_130 = arith.constant 0 : index
    %c0_131 = arith.constant 0 : index
    %184 = vector.load %arg16[%c0_130, %c0_131] : memref<32x32xf32, #tpu.memory_space<vmem>>, vector<32x32xf32>
    %cst_132 = arith.constant dense<0.000000e+00> : vector<8x32xf32>
    %185 = tpu.matmul %158, %184, %cst_132 {dimension_numbers = #tpu.dot_dimension_numbers<[1], [0], [0], [1], [0, 0, 1, 1], [], []>} : vector<8x32xf32>, vector<32x32xf32>, vector<8x32xf32> -> vector<8x32xf32>
    %186 = arith.addf %185, %41 : vector<8x32xf32>
    %187 = arith.mulf %169, %186 : vector<8x32xf32>
    %188 = arith.addf %183, %187 : vector<8x32xf32>
    %189 = math.tanh %188 : vector<8x32xf32>
    %cst_133 = arith.constant 1.000000e+00 : f32
    %190 = vector.broadcast %cst_133 : f32 to vector<8x32xf32>
    %191 = arith.subf %190, %180 : vector<8x32xf32>
    %192 = arith.mulf %191, %189 : vector<8x32xf32>
    %193 = arith.mulf %180, %158 : vector<8x32xf32>
    %194 = arith.addf %192, %193 : vector<8x32xf32>
    %c0_134 = arith.constant 0 : index
    %c0_135 = arith.constant 0 : index
    %195 = vector.load %arg26[%c0_134, %c0_135] : memref<8x32xf32, #tpu.memory_space<vmem>>, vector<8x32xf32>
    tpu.vector_store %arg26[%c0_134, %c0_135], %194 {strides = array<i32>} : memref<8x32xf32, #tpu.memory_space<vmem>>, vector<8x32xf32>,
    %c2_i32 = arith.constant 2 : i32
    %c7_i32_136 = arith.constant 7 : i32
    %196 = arith.subi %c7_i32_136, %c2_i32 : i32
    %c0_137 = arith.constant 0 : index
    %c0_138 = arith.constant 0 : index
    %197 = vector.load %arg25[%c0_137, %c0_138] : memref<8x32xf32, #tpu.memory_space<vmem>>, vector<8x32xf32>
    %198 = arith.index_cast %196 : i32 to index
    %c0_139 = arith.constant 0 : index
    %c0_140 = arith.constant 0 : index
    %199 = vector.load %arg22[%198, %c0_139, %c0_140] : memref<8x8x32xf32, #tpu.memory_space<vmem>>, vector<1x8x32xf32>
    %200 = vector.shape_cast %199 : vector<1x8x32xf32> to vector<8x32xf32>
    %c0_141 = arith.constant 0 : index
    %c0_142 = arith.constant 0 : index
    %201 = vector.load %arg4[%c0_141, %c0_142] : memref<32x32xf32, #tpu.memory_space<vmem>>, vector<32x32xf32>
    %cst_143 = arith.constant dense<0.000000e+00> : vector<8x32xf32>
    %202 = tpu.matmul %197, %201, %cst_143 {dimension_numbers = #tpu.dot_dimension_numbers<[1], [0], [0], [1], [0, 0, 1, 1], [], []>} : vector<8x32xf32>, vector<32x32xf32>, vector<8x32xf32> -> vector<8x32xf32>
    %203 = arith.addf %200, %202 : vector<8x32xf32>
    %204 = arith.negf %203 : vector<8x32xf32>
    %205 = math.exp %204 : vector<8x32xf32>
    %cst_144 = arith.constant 1.000000e+00 : f32
    %206 = vector.broadcast %cst_144 : f32 to vector<8x32xf32>
    %207 = arith.addf %206, %205 : vector<8x32xf32>
    %208 = arith.divf %206, %207 : vector<8x32xf32>
    %209 = arith.index_cast %196 : i32 to index
    %c0_145 = arith.constant 0 : index
    %c0_146 = arith.constant 0 : index
    %210 = vector.load %arg23[%209, %c0_145, %c0_146] : memref<8x8x32xf32, #tpu.memory_space<vmem>>, vector<1x8x32xf32>
    %211 = vector.shape_cast %210 : vector<1x8x32xf32> to vector<8x32xf32>
    %c0_147 = arith.constant 0 : index
    %c0_148 = arith.constant 0 : index
    %212 = vector.load %arg5[%c0_147, %c0_148] : memref<32x32xf32, #tpu.memory_space<vmem>>, vector<32x32xf32>
    %cst_149 = arith.constant dense<0.000000e+00> : vector<8x32xf32>
    %213 = tpu.matmul %197, %212, %cst_149 {dimension_numbers = #tpu.dot_dimension_numbers<[1], [0], [0], [1], [0, 0, 1, 1], [], []>} : vector<8x32xf32>, vector<32x32xf32>, vector<8x32xf32> -> vector<8x32xf32>
    %214 = arith.addf %211, %213 : vector<8x32xf32>
    %215 = arith.negf %214 : vector<8x32xf32>
    %216 = math.exp %215 : vector<8x32xf32>
    %cst_150 = arith.constant 1.000000e+00 : f32
    %217 = vector.broadcast %cst_150 : f32 to vector<8x32xf32>
    %218 = arith.addf %217, %216 : vector<8x32xf32>
    %219 = arith.divf %217, %218 : vector<8x32xf32>
    %220 = arith.index_cast %196 : i32 to index
    %c0_151 = arith.constant 0 : index
    %c0_152 = arith.constant 0 : index
    %221 = vector.load %arg24[%220, %c0_151, %c0_152] : memref<8x8x32xf32, #tpu.memory_space<vmem>>, vector<1x8x32xf32>
    %222 = vector.shape_cast %221 : vector<1x8x32xf32> to vector<8x32xf32>
    %c0_153 = arith.constant 0 : index
    %c0_154 = arith.constant 0 : index
    %223 = vector.load %arg6[%c0_153, %c0_154] : memref<32x32xf32, #tpu.memory_space<vmem>>, vector<32x32xf32>
    %cst_155 = arith.constant dense<0.000000e+00> : vector<8x32xf32>
    %224 = tpu.matmul %197, %223, %cst_155 {dimension_numbers = #tpu.dot_dimension_numbers<[1], [0], [0], [1], [0, 0, 1, 1], [], []>} : vector<8x32xf32>, vector<32x32xf32>, vector<8x32xf32> -> vector<8x32xf32>
    %225 = arith.addf %224, %29 : vector<8x32xf32>
    %226 = arith.mulf %208, %225 : vector<8x32xf32>
    %227 = arith.addf %222, %226 : vector<8x32xf32>
    %228 = math.tanh %227 : vector<8x32xf32>
    %cst_156 = arith.constant 1.000000e+00 : f32
    %229 = vector.broadcast %cst_156 : f32 to vector<8x32xf32>
    %230 = arith.subf %229, %219 : vector<8x32xf32>
    %231 = arith.mulf %230, %228 : vector<8x32xf32>
    %232 = arith.mulf %219, %197 : vector<8x32xf32>
    %233 = arith.addf %231, %232 : vector<8x32xf32>
    %c0_157 = arith.constant 0 : index
    %c0_158 = arith.constant 0 : index
    %234 = vector.load %arg25[%c0_157, %c0_158] : memref<8x32xf32, #tpu.memory_space<vmem>>, vector<8x32xf32>
    tpu.vector_store %arg25[%c0_157, %c0_158], %233 {strides = array<i32>} : memref<8x32xf32, #tpu.memory_space<vmem>>, vector<8x32xf32>,
    %c0_159 = arith.constant 0 : index
    %c0_160 = arith.constant 0 : index
    %235 = vector.load %arg26[%c0_159, %c0_160] : memref<8x32xf32, #tpu.memory_space<vmem>>, vector<8x32xf32>
    %c0_161 = arith.constant 0 : index
    %c0_162 = arith.constant 0 : index
    %236 = vector.load %arg11[%c0_161, %c0_162] : memref<32x32xf32, #tpu.memory_space<vmem>>, vector<32x32xf32>
    %cst_163 = arith.constant dense<0.000000e+00> : vector<8x32xf32>
    %237 = tpu.matmul %233, %236, %cst_163 {dimension_numbers = #tpu.dot_dimension_numbers<[1], [0], [0], [1], [0, 0, 1, 1], [], []>} : vector<8x32xf32>, vector<32x32xf32>, vector<8x32xf32> -> vector<8x32xf32>
    %c0_164 = arith.constant 0 : index
    %c0_165 = arith.constant 0 : index
    %238 = vector.load %arg14[%c0_164, %c0_165] : memref<32x32xf32, #tpu.memory_space<vmem>>, vector<32x32xf32>
    %cst_166 = arith.constant dense<0.000000e+00> : vector<8x32xf32>
    %239 = tpu.matmul %235, %238, %cst_166 {dimension_numbers = #tpu.dot_dimension_numbers<[1], [0], [0], [1], [0, 0, 1, 1], [], []>} : vector<8x32xf32>, vector<32x32xf32>, vector<8x32xf32> -> vector<8x32xf32>
    %240 = arith.addf %237, %239 : vector<8x32xf32>
    %241 = arith.addf %240, %32 : vector<8x32xf32>
    %242 = arith.negf %241 : vector<8x32xf32>
    %243 = math.exp %242 : vector<8x32xf32>
    %cst_167 = arith.constant 1.000000e+00 : f32
    %244 = vector.broadcast %cst_167 : f32 to vector<8x32xf32>
    %245 = arith.addf %244, %243 : vector<8x32xf32>
    %246 = arith.divf %244, %245 : vector<8x32xf32>
    %c0_168 = arith.constant 0 : index
    %c0_169 = arith.constant 0 : index
    %247 = vector.load %arg12[%c0_168, %c0_169] : memref<32x32xf32, #tpu.memory_space<vmem>>, vector<32x32xf32>
    %cst_170 = arith.constant dense<0.000000e+00> : vector<8x32xf32>
    %248 = tpu.matmul %233, %247, %cst_170 {dimension_numbers = #tpu.dot_dimension_numbers<[1], [0], [0], [1], [0, 0, 1, 1], [], []>} : vector<8x32xf32>, vector<32x32xf32>, vector<8x32xf32> -> vector<8x32xf32>
    %c0_171 = arith.constant 0 : index
    %c0_172 = arith.constant 0 : index
    %249 = vector.load %arg15[%c0_171, %c0_172] : memref<32x32xf32, #tpu.memory_space<vmem>>, vector<32x32xf32>
    %cst_173 = arith.constant dense<0.000000e+00> : vector<8x32xf32>
    %250 = tpu.matmul %235, %249, %cst_173 {dimension_numbers = #tpu.dot_dimension_numbers<[1], [0], [0], [1], [0, 0, 1, 1], [], []>} : vector<8x32xf32>, vector<32x32xf32>, vector<8x32xf32> -> vector<8x32xf32>
    %251 = arith.addf %248, %250 : vector<8x32xf32>
    %252 = arith.addf %251, %35 : vector<8x32xf32>
    %253 = arith.negf %252 : vector<8x32xf32>
    %254 = math.exp %253 : vector<8x32xf32>
    %cst_174 = arith.constant 1.000000e+00 : f32
    %255 = vector.broadcast %cst_174 : f32 to vector<8x32xf32>
    %256 = arith.addf %255, %254 : vector<8x32xf32>
    %257 = arith.divf %255, %256 : vector<8x32xf32>
    %c0_175 = arith.constant 0 : index
    %c0_176 = arith.constant 0 : index
    %258 = vector.load %arg13[%c0_175, %c0_176] : memref<32x32xf32, #tpu.memory_space<vmem>>, vector<32x32xf32>
    %cst_177 = arith.constant dense<0.000000e+00> : vector<8x32xf32>
    %259 = tpu.matmul %233, %258, %cst_177 {dimension_numbers = #tpu.dot_dimension_numbers<[1], [0], [0], [1], [0, 0, 1, 1], [], []>} : vector<8x32xf32>, vector<32x32xf32>, vector<8x32xf32> -> vector<8x32xf32>
    %260 = arith.addf %259, %38 : vector<8x32xf32>
    %c0_178 = arith.constant 0 : index
    %c0_179 = arith.constant 0 : index
    %261 = vector.load %arg16[%c0_178, %c0_179] : memref<32x32xf32, #tpu.memory_space<vmem>>, vector<32x32xf32>
    %cst_180 = arith.constant dense<0.000000e+00> : vector<8x32xf32>
    %262 = tpu.matmul %235, %261, %cst_180 {dimension_numbers = #tpu.dot_dimension_numbers<[1], [0], [0], [1], [0, 0, 1, 1], [], []>} : vector<8x32xf32>, vector<32x32xf32>, vector<8x32xf32> -> vector<8x32xf32>
    %263 = arith.addf %262, %41 : vector<8x32xf32>
    %264 = arith.mulf %246, %263 : vector<8x32xf32>
    %265 = arith.addf %260, %264 : vector<8x32xf32>
    %266 = math.tanh %265 : vector<8x32xf32>
    %cst_181 = arith.constant 1.000000e+00 : f32
    %267 = vector.broadcast %cst_181 : f32 to vector<8x32xf32>
    %268 = arith.subf %267, %257 : vector<8x32xf32>
    %269 = arith.mulf %268, %266 : vector<8x32xf32>
    %270 = arith.mulf %257, %235 : vector<8x32xf32>
    %271 = arith.addf %269, %270 : vector<8x32xf32>
    %c0_182 = arith.constant 0 : index
    %c0_183 = arith.constant 0 : index
    %272 = vector.load %arg26[%c0_182, %c0_183] : memref<8x32xf32, #tpu.memory_space<vmem>>, vector<8x32xf32>
    tpu.vector_store %arg26[%c0_182, %c0_183], %271 {strides = array<i32>} : memref<8x32xf32, #tpu.memory_space<vmem>>, vector<8x32xf32>,
    %c3_i32 = arith.constant 3 : i32
    %c7_i32_184 = arith.constant 7 : i32
    %273 = arith.subi %c7_i32_184, %c3_i32 : i32
    %c0_185 = arith.constant 0 : index
    %c0_186 = arith.constant 0 : index
    %274 = vector.load %arg25[%c0_185, %c0_186] : memref<8x32xf32, #tpu.memory_space<vmem>>, vector<8x32xf32>
    %275 = arith.index_cast %273 : i32 to index
    %c0_187 = arith.constant 0 : index
    %c0_188 = arith.constant 0 : index
    %276 = vector.load %arg22[%275, %c0_187, %c0_188] : memref<8x8x32xf32, #tpu.memory_space<vmem>>, vector<1x8x32xf32>
    %277 = vector.shape_cast %276 : vector<1x8x32xf32> to vector<8x32xf32>
    %c0_189 = arith.constant 0 : index
    %c0_190 = arith.constant 0 : index
    %278 = vector.load %arg4[%c0_189, %c0_190] : memref<32x32xf32, #tpu.memory_space<vmem>>, vector<32x32xf32>
    %cst_191 = arith.constant dense<0.000000e+00> : vector<8x32xf32>
    %279 = tpu.matmul %274, %278, %cst_191 {dimension_numbers = #tpu.dot_dimension_numbers<[1], [0], [0], [1], [0, 0, 1, 1], [], []>} : vector<8x32xf32>, vector<32x32xf32>, vector<8x32xf32> -> vector<8x32xf32>
    %280 = arith.addf %277, %279 : vector<8x32xf32>
    %281 = arith.negf %280 : vector<8x32xf32>
    %282 = math.exp %281 : vector<8x32xf32>
    %cst_192 = arith.constant 1.000000e+00 : f32
    %283 = vector.broadcast %cst_192 : f32 to vector<8x32xf32>
    %284 = arith.addf %283, %282 : vector<8x32xf32>
    %285 = arith.divf %283, %284 : vector<8x32xf32>
    %286 = arith.index_cast %273 : i32 to index
    %c0_193 = arith.constant 0 : index
    %c0_194 = arith.constant 0 : index
    %287 = vector.load %arg23[%286, %c0_193, %c0_194] : memref<8x8x32xf32, #tpu.memory_space<vmem>>, vector<1x8x32xf32>
    %288 = vector.shape_cast %287 : vector<1x8x32xf32> to vector<8x32xf32>
    %c0_195 = arith.constant 0 : index
    %c0_196 = arith.constant 0 : index
    %289 = vector.load %arg5[%c0_195, %c0_196] : memref<32x32xf32, #tpu.memory_space<vmem>>, vector<32x32xf32>
    %cst_197 = arith.constant dense<0.000000e+00> : vector<8x32xf32>
    %290 = tpu.matmul %274, %289, %cst_197 {dimension_numbers = #tpu.dot_dimension_numbers<[1], [0], [0], [1], [0, 0, 1, 1], [], []>} : vector<8x32xf32>, vector<32x32xf32>, vector<8x32xf32> -> vector<8x32xf32>
    %291 = arith.addf %288, %290 : vector<8x32xf32>
    %292 = arith.negf %291 : vector<8x32xf32>
    %293 = math.exp %292 : vector<8x32xf32>
    %cst_198 = arith.constant 1.000000e+00 : f32
    %294 = vector.broadcast %cst_198 : f32 to vector<8x32xf32>
    %295 = arith.addf %294, %293 : vector<8x32xf32>
    %296 = arith.divf %294, %295 : vector<8x32xf32>
    %297 = arith.index_cast %273 : i32 to index
    %c0_199 = arith.constant 0 : index
    %c0_200 = arith.constant 0 : index
    %298 = vector.load %arg24[%297, %c0_199, %c0_200] : memref<8x8x32xf32, #tpu.memory_space<vmem>>, vector<1x8x32xf32>
    %299 = vector.shape_cast %298 : vector<1x8x32xf32> to vector<8x32xf32>
    %c0_201 = arith.constant 0 : index
    %c0_202 = arith.constant 0 : index
    %300 = vector.load %arg6[%c0_201, %c0_202] : memref<32x32xf32, #tpu.memory_space<vmem>>, vector<32x32xf32>
    %cst_203 = arith.constant dense<0.000000e+00> : vector<8x32xf32>
    %301 = tpu.matmul %274, %300, %cst_203 {dimension_numbers = #tpu.dot_dimension_numbers<[1], [0], [0], [1], [0, 0, 1, 1], [], []>} : vector<8x32xf32>, vector<32x32xf32>, vector<8x32xf32> -> vector<8x32xf32>
    %302 = arith.addf %301, %29 : vector<8x32xf32>
    %303 = arith.mulf %285, %302 : vector<8x32xf32>
    %304 = arith.addf %299, %303 : vector<8x32xf32>
    %305 = math.tanh %304 : vector<8x32xf32>
    %cst_204 = arith.constant 1.000000e+00 : f32
    %306 = vector.broadcast %cst_204 : f32 to vector<8x32xf32>
    %307 = arith.subf %306, %296 : vector<8x32xf32>
    %308 = arith.mulf %307, %305 : vector<8x32xf32>
    %309 = arith.mulf %296, %274 : vector<8x32xf32>
    %310 = arith.addf %308, %309 : vector<8x32xf32>
    %c0_205 = arith.constant 0 : index
    %c0_206 = arith.constant 0 : index
    %311 = vector.load %arg25[%c0_205, %c0_206] : memref<8x32xf32, #tpu.memory_space<vmem>>, vector<8x32xf32>
    tpu.vector_store %arg25[%c0_205, %c0_206], %310 {strides = array<i32>} : memref<8x32xf32, #tpu.memory_space<vmem>>, vector<8x32xf32>,
    %c0_207 = arith.constant 0 : index
    %c0_208 = arith.constant 0 : index
    %312 = vector.load %arg26[%c0_207, %c0_208] : memref<8x32xf32, #tpu.memory_space<vmem>>, vector<8x32xf32>
    %c0_209 = arith.constant 0 : index
    %c0_210 = arith.constant 0 : index
    %313 = vector.load %arg11[%c0_209, %c0_210] : memref<32x32xf32, #tpu.memory_space<vmem>>, vector<32x32xf32>
    %cst_211 = arith.constant dense<0.000000e+00> : vector<8x32xf32>
    %314 = tpu.matmul %310, %313, %cst_211 {dimension_numbers = #tpu.dot_dimension_numbers<[1], [0], [0], [1], [0, 0, 1, 1], [], []>} : vector<8x32xf32>, vector<32x32xf32>, vector<8x32xf32> -> vector<8x32xf32>
    %c0_212 = arith.constant 0 : index
    %c0_213 = arith.constant 0 : index
    %315 = vector.load %arg14[%c0_212, %c0_213] : memref<32x32xf32, #tpu.memory_space<vmem>>, vector<32x32xf32>
    %cst_214 = arith.constant dense<0.000000e+00> : vector<8x32xf32>
    %316 = tpu.matmul %312, %315, %cst_214 {dimension_numbers = #tpu.dot_dimension_numbers<[1], [0], [0], [1], [0, 0, 1, 1], [], []>} : vector<8x32xf32>, vector<32x32xf32>, vector<8x32xf32> -> vector<8x32xf32>
    %317 = arith.addf %314, %316 : vector<8x32xf32>
    %318 = arith.addf %317, %32 : vector<8x32xf32>
    %319 = arith.negf %318 : vector<8x32xf32>
    %320 = math.exp %319 : vector<8x32xf32>
    %cst_215 = arith.constant 1.000000e+00 : f32
    %321 = vector.broadcast %cst_215 : f32 to vector<8x32xf32>
    %322 = arith.addf %321, %320 : vector<8x32xf32>
    %323 = arith.divf %321, %322 : vector<8x32xf32>
    %c0_216 = arith.constant 0 : index
    %c0_217 = arith.constant 0 : index
    %324 = vector.load %arg12[%c0_216, %c0_217] : memref<32x32xf32, #tpu.memory_space<vmem>>, vector<32x32xf32>
    %cst_218 = arith.constant dense<0.000000e+00> : vector<8x32xf32>
    %325 = tpu.matmul %310, %324, %cst_218 {dimension_numbers = #tpu.dot_dimension_numbers<[1], [0], [0], [1], [0, 0, 1, 1], [], []>} : vector<8x32xf32>, vector<32x32xf32>, vector<8x32xf32> -> vector<8x32xf32>
    %c0_219 = arith.constant 0 : index
    %c0_220 = arith.constant 0 : index
    %326 = vector.load %arg15[%c0_219, %c0_220] : memref<32x32xf32, #tpu.memory_space<vmem>>, vector<32x32xf32>
    %cst_221 = arith.constant dense<0.000000e+00> : vector<8x32xf32>
    %327 = tpu.matmul %312, %326, %cst_221 {dimension_numbers = #tpu.dot_dimension_numbers<[1], [0], [0], [1], [0, 0, 1, 1], [], []>} : vector<8x32xf32>, vector<32x32xf32>, vector<8x32xf32> -> vector<8x32xf32>
    %328 = arith.addf %325, %327 : vector<8x32xf32>
    %329 = arith.addf %328, %35 : vector<8x32xf32>
    %330 = arith.negf %329 : vector<8x32xf32>
    %331 = math.exp %330 : vector<8x32xf32>
    %cst_222 = arith.constant 1.000000e+00 : f32
    %332 = vector.broadcast %cst_222 : f32 to vector<8x32xf32>
    %333 = arith.addf %332, %331 : vector<8x32xf32>
    %334 = arith.divf %332, %333 : vector<8x32xf32>
    %c0_223 = arith.constant 0 : index
    %c0_224 = arith.constant 0 : index
    %335 = vector.load %arg13[%c0_223, %c0_224] : memref<32x32xf32, #tpu.memory_space<vmem>>, vector<32x32xf32>
    %cst_225 = arith.constant dense<0.000000e+00> : vector<8x32xf32>
    %336 = tpu.matmul %310, %335, %cst_225 {dimension_numbers = #tpu.dot_dimension_numbers<[1], [0], [0], [1], [0, 0, 1, 1], [], []>} : vector<8x32xf32>, vector<32x32xf32>, vector<8x32xf32> -> vector<8x32xf32>
    %337 = arith.addf %336, %38 : vector<8x32xf32>
    %c0_226 = arith.constant 0 : index
    %c0_227 = arith.constant 0 : index
    %338 = vector.load %arg16[%c0_226, %c0_227] : memref<32x32xf32, #tpu.memory_space<vmem>>, vector<32x32xf32>
    %cst_228 = arith.constant dense<0.000000e+00> : vector<8x32xf32>
    %339 = tpu.matmul %312, %338, %cst_228 {dimension_numbers = #tpu.dot_dimension_numbers<[1], [0], [0], [1], [0, 0, 1, 1], [], []>} : vector<8x32xf32>, vector<32x32xf32>, vector<8x32xf32> -> vector<8x32xf32>
    %340 = arith.addf %339, %41 : vector<8x32xf32>
    %341 = arith.mulf %323, %340 : vector<8x32xf32>
    %342 = arith.addf %337, %341 : vector<8x32xf32>
    %343 = math.tanh %342 : vector<8x32xf32>
    %cst_229 = arith.constant 1.000000e+00 : f32
    %344 = vector.broadcast %cst_229 : f32 to vector<8x32xf32>
    %345 = arith.subf %344, %334 : vector<8x32xf32>
    %346 = arith.mulf %345, %343 : vector<8x32xf32>
    %347 = arith.mulf %334, %312 : vector<8x32xf32>
    %348 = arith.addf %346, %347 : vector<8x32xf32>
    %c0_230 = arith.constant 0 : index
    %c0_231 = arith.constant 0 : index
    %349 = vector.load %arg26[%c0_230, %c0_231] : memref<8x32xf32, #tpu.memory_space<vmem>>, vector<8x32xf32>
    tpu.vector_store %arg26[%c0_230, %c0_231], %348 {strides = array<i32>} : memref<8x32xf32, #tpu.memory_space<vmem>>, vector<8x32xf32>,
    %c4_i32 = arith.constant 4 : i32
    %c7_i32_232 = arith.constant 7 : i32
    %350 = arith.subi %c7_i32_232, %c4_i32 : i32
    %c0_233 = arith.constant 0 : index
    %c0_234 = arith.constant 0 : index
    %351 = vector.load %arg25[%c0_233, %c0_234] : memref<8x32xf32, #tpu.memory_space<vmem>>, vector<8x32xf32>
    %352 = arith.index_cast %350 : i32 to index
    %c0_235 = arith.constant 0 : index
    %c0_236 = arith.constant 0 : index
    %353 = vector.load %arg22[%352, %c0_235, %c0_236] : memref<8x8x32xf32, #tpu.memory_space<vmem>>, vector<1x8x32xf32>
    %354 = vector.shape_cast %353 : vector<1x8x32xf32> to vector<8x32xf32>
    %c0_237 = arith.constant 0 : index
    %c0_238 = arith.constant 0 : index
    %355 = vector.load %arg4[%c0_237, %c0_238] : memref<32x32xf32, #tpu.memory_space<vmem>>, vector<32x32xf32>
    %cst_239 = arith.constant dense<0.000000e+00> : vector<8x32xf32>
    %356 = tpu.matmul %351, %355, %cst_239 {dimension_numbers = #tpu.dot_dimension_numbers<[1], [0], [0], [1], [0, 0, 1, 1], [], []>} : vector<8x32xf32>, vector<32x32xf32>, vector<8x32xf32> -> vector<8x32xf32>
    %357 = arith.addf %354, %356 : vector<8x32xf32>
    %358 = arith.negf %357 : vector<8x32xf32>
    %359 = math.exp %358 : vector<8x32xf32>
    %cst_240 = arith.constant 1.000000e+00 : f32
    %360 = vector.broadcast %cst_240 : f32 to vector<8x32xf32>
    %361 = arith.addf %360, %359 : vector<8x32xf32>
    %362 = arith.divf %360, %361 : vector<8x32xf32>
    %363 = arith.index_cast %350 : i32 to index
    %c0_241 = arith.constant 0 : index
    %c0_242 = arith.constant 0 : index
    %364 = vector.load %arg23[%363, %c0_241, %c0_242] : memref<8x8x32xf32, #tpu.memory_space<vmem>>, vector<1x8x32xf32>
    %365 = vector.shape_cast %364 : vector<1x8x32xf32> to vector<8x32xf32>
    %c0_243 = arith.constant 0 : index
    %c0_244 = arith.constant 0 : index
    %366 = vector.load %arg5[%c0_243, %c0_244] : memref<32x32xf32, #tpu.memory_space<vmem>>, vector<32x32xf32>
    %cst_245 = arith.constant dense<0.000000e+00> : vector<8x32xf32>
    %367 = tpu.matmul %351, %366, %cst_245 {dimension_numbers = #tpu.dot_dimension_numbers<[1], [0], [0], [1], [0, 0, 1, 1], [], []>} : vector<8x32xf32>, vector<32x32xf32>, vector<8x32xf32> -> vector<8x32xf32>
    %368 = arith.addf %365, %367 : vector<8x32xf32>
    %369 = arith.negf %368 : vector<8x32xf32>
    %370 = math.exp %369 : vector<8x32xf32>
    %cst_246 = arith.constant 1.000000e+00 : f32
    %371 = vector.broadcast %cst_246 : f32 to vector<8x32xf32>
    %372 = arith.addf %371, %370 : vector<8x32xf32>
    %373 = arith.divf %371, %372 : vector<8x32xf32>
    %374 = arith.index_cast %350 : i32 to index
    %c0_247 = arith.constant 0 : index
    %c0_248 = arith.constant 0 : index
    %375 = vector.load %arg24[%374, %c0_247, %c0_248] : memref<8x8x32xf32, #tpu.memory_space<vmem>>, vector<1x8x32xf32>
    %376 = vector.shape_cast %375 : vector<1x8x32xf32> to vector<8x32xf32>
    %c0_249 = arith.constant 0 : index
    %c0_250 = arith.constant 0 : index
    %377 = vector.load %arg6[%c0_249, %c0_250] : memref<32x32xf32, #tpu.memory_space<vmem>>, vector<32x32xf32>
    %cst_251 = arith.constant dense<0.000000e+00> : vector<8x32xf32>
    %378 = tpu.matmul %351, %377, %cst_251 {dimension_numbers = #tpu.dot_dimension_numbers<[1], [0], [0], [1], [0, 0, 1, 1], [], []>} : vector<8x32xf32>, vector<32x32xf32>, vector<8x32xf32> -> vector<8x32xf32>
    %379 = arith.addf %378, %29 : vector<8x32xf32>
    %380 = arith.mulf %362, %379 : vector<8x32xf32>
    %381 = arith.addf %376, %380 : vector<8x32xf32>
    %382 = math.tanh %381 : vector<8x32xf32>
    %cst_252 = arith.constant 1.000000e+00 : f32
    %383 = vector.broadcast %cst_252 : f32 to vector<8x32xf32>
    %384 = arith.subf %383, %373 : vector<8x32xf32>
    %385 = arith.mulf %384, %382 : vector<8x32xf32>
    %386 = arith.mulf %373, %351 : vector<8x32xf32>
    %387 = arith.addf %385, %386 : vector<8x32xf32>
    %c0_253 = arith.constant 0 : index
    %c0_254 = arith.constant 0 : index
    %388 = vector.load %arg25[%c0_253, %c0_254] : memref<8x32xf32, #tpu.memory_space<vmem>>, vector<8x32xf32>
    tpu.vector_store %arg25[%c0_253, %c0_254], %387 {strides = array<i32>} : memref<8x32xf32, #tpu.memory_space<vmem>>, vector<8x32xf32>,
    %c0_255 = arith.constant 0 : index
    %c0_256 = arith.constant 0 : index
    %389 = vector.load %arg26[%c0_255, %c0_256] : memref<8x32xf32, #tpu.memory_space<vmem>>, vector<8x32xf32>
    %c0_257 = arith.constant 0 : index
    %c0_258 = arith.constant 0 : index
    %390 = vector.load %arg11[%c0_257, %c0_258] : memref<32x32xf32, #tpu.memory_space<vmem>>, vector<32x32xf32>
    %cst_259 = arith.constant dense<0.000000e+00> : vector<8x32xf32>
    %391 = tpu.matmul %387, %390, %cst_259 {dimension_numbers = #tpu.dot_dimension_numbers<[1], [0], [0], [1], [0, 0, 1, 1], [], []>} : vector<8x32xf32>, vector<32x32xf32>, vector<8x32xf32> -> vector<8x32xf32>
    %c0_260 = arith.constant 0 : index
    %c0_261 = arith.constant 0 : index
    %392 = vector.load %arg14[%c0_260, %c0_261] : memref<32x32xf32, #tpu.memory_space<vmem>>, vector<32x32xf32>
    %cst_262 = arith.constant dense<0.000000e+00> : vector<8x32xf32>
    %393 = tpu.matmul %389, %392, %cst_262 {dimension_numbers = #tpu.dot_dimension_numbers<[1], [0], [0], [1], [0, 0, 1, 1], [], []>} : vector<8x32xf32>, vector<32x32xf32>, vector<8x32xf32> -> vector<8x32xf32>
    %394 = arith.addf %391, %393 : vector<8x32xf32>
    %395 = arith.addf %394, %32 : vector<8x32xf32>
    %396 = arith.negf %395 : vector<8x32xf32>
    %397 = math.exp %396 : vector<8x32xf32>
    %cst_263 = arith.constant 1.000000e+00 : f32
    %398 = vector.broadcast %cst_263 : f32 to vector<8x32xf32>
    %399 = arith.addf %398, %397 : vector<8x32xf32>
    %400 = arith.divf %398, %399 : vector<8x32xf32>
    %c0_264 = arith.constant 0 : index
    %c0_265 = arith.constant 0 : index
    %401 = vector.load %arg12[%c0_264, %c0_265] : memref<32x32xf32, #tpu.memory_space<vmem>>, vector<32x32xf32>
    %cst_266 = arith.constant dense<0.000000e+00> : vector<8x32xf32>
    %402 = tpu.matmul %387, %401, %cst_266 {dimension_numbers = #tpu.dot_dimension_numbers<[1], [0], [0], [1], [0, 0, 1, 1], [], []>} : vector<8x32xf32>, vector<32x32xf32>, vector<8x32xf32> -> vector<8x32xf32>
    %c0_267 = arith.constant 0 : index
    %c0_268 = arith.constant 0 : index
    %403 = vector.load %arg15[%c0_267, %c0_268] : memref<32x32xf32, #tpu.memory_space<vmem>>, vector<32x32xf32>
    %cst_269 = arith.constant dense<0.000000e+00> : vector<8x32xf32>
    %404 = tpu.matmul %389, %403, %cst_269 {dimension_numbers = #tpu.dot_dimension_numbers<[1], [0], [0], [1], [0, 0, 1, 1], [], []>} : vector<8x32xf32>, vector<32x32xf32>, vector<8x32xf32> -> vector<8x32xf32>
    %405 = arith.addf %402, %404 : vector<8x32xf32>
    %406 = arith.addf %405, %35 : vector<8x32xf32>
    %407 = arith.negf %406 : vector<8x32xf32>
    %408 = math.exp %407 : vector<8x32xf32>
    %cst_270 = arith.constant 1.000000e+00 : f32
    %409 = vector.broadcast %cst_270 : f32 to vector<8x32xf32>
    %410 = arith.addf %409, %408 : vector<8x32xf32>
    %411 = arith.divf %409, %410 : vector<8x32xf32>
    %c0_271 = arith.constant 0 : index
    %c0_272 = arith.constant 0 : index
    %412 = vector.load %arg13[%c0_271, %c0_272] : memref<32x32xf32, #tpu.memory_space<vmem>>, vector<32x32xf32>
    %cst_273 = arith.constant dense<0.000000e+00> : vector<8x32xf32>
    %413 = tpu.matmul %387, %412, %cst_273 {dimension_numbers = #tpu.dot_dimension_numbers<[1], [0], [0], [1], [0, 0, 1, 1], [], []>} : vector<8x32xf32>, vector<32x32xf32>, vector<8x32xf32> -> vector<8x32xf32>
    %414 = arith.addf %413, %38 : vector<8x32xf32>
    %c0_274 = arith.constant 0 : index
    %c0_275 = arith.constant 0 : index
    %415 = vector.load %arg16[%c0_274, %c0_275] : memref<32x32xf32, #tpu.memory_space<vmem>>, vector<32x32xf32>
    %cst_276 = arith.constant dense<0.000000e+00> : vector<8x32xf32>
    %416 = tpu.matmul %389, %415, %cst_276 {dimension_numbers = #tpu.dot_dimension_numbers<[1], [0], [0], [1], [0, 0, 1, 1], [], []>} : vector<8x32xf32>, vector<32x32xf32>, vector<8x32xf32> -> vector<8x32xf32>
    %417 = arith.addf %416, %41 : vector<8x32xf32>
    %418 = arith.mulf %400, %417 : vector<8x32xf32>
    %419 = arith.addf %414, %418 : vector<8x32xf32>
    %420 = math.tanh %419 : vector<8x32xf32>
    %cst_277 = arith.constant 1.000000e+00 : f32
    %421 = vector.broadcast %cst_277 : f32 to vector<8x32xf32>
    %422 = arith.subf %421, %411 : vector<8x32xf32>
    %423 = arith.mulf %422, %420 : vector<8x32xf32>
    %424 = arith.mulf %411, %389 : vector<8x32xf32>
    %425 = arith.addf %423, %424 : vector<8x32xf32>
    %c0_278 = arith.constant 0 : index
    %c0_279 = arith.constant 0 : index
    %426 = vector.load %arg26[%c0_278, %c0_279] : memref<8x32xf32, #tpu.memory_space<vmem>>, vector<8x32xf32>
    tpu.vector_store %arg26[%c0_278, %c0_279], %425 {strides = array<i32>} : memref<8x32xf32, #tpu.memory_space<vmem>>, vector<8x32xf32>,
    %c5_i32 = arith.constant 5 : i32
    %c7_i32_280 = arith.constant 7 : i32
    %427 = arith.subi %c7_i32_280, %c5_i32 : i32
    %c0_281 = arith.constant 0 : index
    %c0_282 = arith.constant 0 : index
    %428 = vector.load %arg25[%c0_281, %c0_282] : memref<8x32xf32, #tpu.memory_space<vmem>>, vector<8x32xf32>
    %429 = arith.index_cast %427 : i32 to index
    %c0_283 = arith.constant 0 : index
    %c0_284 = arith.constant 0 : index
    %430 = vector.load %arg22[%429, %c0_283, %c0_284] : memref<8x8x32xf32, #tpu.memory_space<vmem>>, vector<1x8x32xf32>
    %431 = vector.shape_cast %430 : vector<1x8x32xf32> to vector<8x32xf32>
    %c0_285 = arith.constant 0 : index
    %c0_286 = arith.constant 0 : index
    %432 = vector.load %arg4[%c0_285, %c0_286] : memref<32x32xf32, #tpu.memory_space<vmem>>, vector<32x32xf32>
    %cst_287 = arith.constant dense<0.000000e+00> : vector<8x32xf32>
    %433 = tpu.matmul %428, %432, %cst_287 {dimension_numbers = #tpu.dot_dimension_numbers<[1], [0], [0], [1], [0, 0, 1, 1], [], []>} : vector<8x32xf32>, vector<32x32xf32>, vector<8x32xf32> -> vector<8x32xf32>
    %434 = arith.addf %431, %433 : vector<8x32xf32>
    %435 = arith.negf %434 : vector<8x32xf32>
    %436 = math.exp %435 : vector<8x32xf32>
    %cst_288 = arith.constant 1.000000e+00 : f32
    %437 = vector.broadcast %cst_288 : f32 to vector<8x32xf32>
    %438 = arith.addf %437, %436 : vector<8x32xf32>
    %439 = arith.divf %437, %438 : vector<8x32xf32>
    %440 = arith.index_cast %427 : i32 to index
    %c0_289 = arith.constant 0 : index
    %c0_290 = arith.constant 0 : index
    %441 = vector.load %arg23[%440, %c0_289, %c0_290] : memref<8x8x32xf32, #tpu.memory_space<vmem>>, vector<1x8x32xf32>
    %442 = vector.shape_cast %441 : vector<1x8x32xf32> to vector<8x32xf32>
    %c0_291 = arith.constant 0 : index
    %c0_292 = arith.constant 0 : index
    %443 = vector.load %arg5[%c0_291, %c0_292] : memref<32x32xf32, #tpu.memory_space<vmem>>, vector<32x32xf32>
    %cst_293 = arith.constant dense<0.000000e+00> : vector<8x32xf32>
    %444 = tpu.matmul %428, %443, %cst_293 {dimension_numbers = #tpu.dot_dimension_numbers<[1], [0], [0], [1], [0, 0, 1, 1], [], []>} : vector<8x32xf32>, vector<32x32xf32>, vector<8x32xf32> -> vector<8x32xf32>
    %445 = arith.addf %442, %444 : vector<8x32xf32>
    %446 = arith.negf %445 : vector<8x32xf32>
    %447 = math.exp %446 : vector<8x32xf32>
    %cst_294 = arith.constant 1.000000e+00 : f32
    %448 = vector.broadcast %cst_294 : f32 to vector<8x32xf32>
    %449 = arith.addf %448, %447 : vector<8x32xf32>
    %450 = arith.divf %448, %449 : vector<8x32xf32>
    %451 = arith.index_cast %427 : i32 to index
    %c0_295 = arith.constant 0 : index
    %c0_296 = arith.constant 0 : index
    %452 = vector.load %arg24[%451, %c0_295, %c0_296] : memref<8x8x32xf32, #tpu.memory_space<vmem>>, vector<1x8x32xf32>
    %453 = vector.shape_cast %452 : vector<1x8x32xf32> to vector<8x32xf32>
    %c0_297 = arith.constant 0 : index
    %c0_298 = arith.constant 0 : index
    %454 = vector.load %arg6[%c0_297, %c0_298] : memref<32x32xf32, #tpu.memory_space<vmem>>, vector<32x32xf32>
    %cst_299 = arith.constant dense<0.000000e+00> : vector<8x32xf32>
    %455 = tpu.matmul %428, %454, %cst_299 {dimension_numbers = #tpu.dot_dimension_numbers<[1], [0], [0], [1], [0, 0, 1, 1], [], []>} : vector<8x32xf32>, vector<32x32xf32>, vector<8x32xf32> -> vector<8x32xf32>
    %456 = arith.addf %455, %29 : vector<8x32xf32>
    %457 = arith.mulf %439, %456 : vector<8x32xf32>
    %458 = arith.addf %453, %457 : vector<8x32xf32>
    %459 = math.tanh %458 : vector<8x32xf32>
    %cst_300 = arith.constant 1.000000e+00 : f32
    %460 = vector.broadcast %cst_300 : f32 to vector<8x32xf32>
    %461 = arith.subf %460, %450 : vector<8x32xf32>
    %462 = arith.mulf %461, %459 : vector<8x32xf32>
    %463 = arith.mulf %450, %428 : vector<8x32xf32>
    %464 = arith.addf %462, %463 : vector<8x32xf32>
    %c0_301 = arith.constant 0 : index
    %c0_302 = arith.constant 0 : index
    %465 = vector.load %arg25[%c0_301, %c0_302] : memref<8x32xf32, #tpu.memory_space<vmem>>, vector<8x32xf32>
    tpu.vector_store %arg25[%c0_301, %c0_302], %464 {strides = array<i32>} : memref<8x32xf32, #tpu.memory_space<vmem>>, vector<8x32xf32>,
    %c0_303 = arith.constant 0 : index
    %c0_304 = arith.constant 0 : index
    %466 = vector.load %arg26[%c0_303, %c0_304] : memref<8x32xf32, #tpu.memory_space<vmem>>, vector<8x32xf32>
    %c0_305 = arith.constant 0 : index
    %c0_306 = arith.constant 0 : index
    %467 = vector.load %arg11[%c0_305, %c0_306] : memref<32x32xf32, #tpu.memory_space<vmem>>, vector<32x32xf32>
    %cst_307 = arith.constant dense<0.000000e+00> : vector<8x32xf32>
    %468 = tpu.matmul %464, %467, %cst_307 {dimension_numbers = #tpu.dot_dimension_numbers<[1], [0], [0], [1], [0, 0, 1, 1], [], []>} : vector<8x32xf32>, vector<32x32xf32>, vector<8x32xf32> -> vector<8x32xf32>
    %c0_308 = arith.constant 0 : index
    %c0_309 = arith.constant 0 : index
    %469 = vector.load %arg14[%c0_308, %c0_309] : memref<32x32xf32, #tpu.memory_space<vmem>>, vector<32x32xf32>
    %cst_310 = arith.constant dense<0.000000e+00> : vector<8x32xf32>
    %470 = tpu.matmul %466, %469, %cst_310 {dimension_numbers = #tpu.dot_dimension_numbers<[1], [0], [0], [1], [0, 0, 1, 1], [], []>} : vector<8x32xf32>, vector<32x32xf32>, vector<8x32xf32> -> vector<8x32xf32>
    %471 = arith.addf %468, %470 : vector<8x32xf32>
    %472 = arith.addf %471, %32 : vector<8x32xf32>
    %473 = arith.negf %472 : vector<8x32xf32>
    %474 = math.exp %473 : vector<8x32xf32>
    %cst_311 = arith.constant 1.000000e+00 : f32
    %475 = vector.broadcast %cst_311 : f32 to vector<8x32xf32>
    %476 = arith.addf %475, %474 : vector<8x32xf32>
    %477 = arith.divf %475, %476 : vector<8x32xf32>
    %c0_312 = arith.constant 0 : index
    %c0_313 = arith.constant 0 : index
    %478 = vector.load %arg12[%c0_312, %c0_313] : memref<32x32xf32, #tpu.memory_space<vmem>>, vector<32x32xf32>
    %cst_314 = arith.constant dense<0.000000e+00> : vector<8x32xf32>
    %479 = tpu.matmul %464, %478, %cst_314 {dimension_numbers = #tpu.dot_dimension_numbers<[1], [0], [0], [1], [0, 0, 1, 1], [], []>} : vector<8x32xf32>, vector<32x32xf32>, vector<8x32xf32> -> vector<8x32xf32>
    %c0_315 = arith.constant 0 : index
    %c0_316 = arith.constant 0 : index
    %480 = vector.load %arg15[%c0_315, %c0_316] : memref<32x32xf32, #tpu.memory_space<vmem>>, vector<32x32xf32>
    %cst_317 = arith.constant dense<0.000000e+00> : vector<8x32xf32>
    %481 = tpu.matmul %466, %480, %cst_317 {dimension_numbers = #tpu.dot_dimension_numbers<[1], [0], [0], [1], [0, 0, 1, 1], [], []>} : vector<8x32xf32>, vector<32x32xf32>, vector<8x32xf32> -> vector<8x32xf32>
    %482 = arith.addf %479, %481 : vector<8x32xf32>
    %483 = arith.addf %482, %35 : vector<8x32xf32>
    %484 = arith.negf %483 : vector<8x32xf32>
    %485 = math.exp %484 : vector<8x32xf32>
    %cst_318 = arith.constant 1.000000e+00 : f32
    %486 = vector.broadcast %cst_318 : f32 to vector<8x32xf32>
    %487 = arith.addf %486, %485 : vector<8x32xf32>
    %488 = arith.divf %486, %487 : vector<8x32xf32>
    %c0_319 = arith.constant 0 : index
    %c0_320 = arith.constant 0 : index
    %489 = vector.load %arg13[%c0_319, %c0_320] : memref<32x32xf32, #tpu.memory_space<vmem>>, vector<32x32xf32>
    %cst_321 = arith.constant dense<0.000000e+00> : vector<8x32xf32>
    %490 = tpu.matmul %464, %489, %cst_321 {dimension_numbers = #tpu.dot_dimension_numbers<[1], [0], [0], [1], [0, 0, 1, 1], [], []>} : vector<8x32xf32>, vector<32x32xf32>, vector<8x32xf32> -> vector<8x32xf32>
    %491 = arith.addf %490, %38 : vector<8x32xf32>
    %c0_322 = arith.constant 0 : index
    %c0_323 = arith.constant 0 : index
    %492 = vector.load %arg16[%c0_322, %c0_323] : memref<32x32xf32, #tpu.memory_space<vmem>>, vector<32x32xf32>
    %cst_324 = arith.constant dense<0.000000e+00> : vector<8x32xf32>
    %493 = tpu.matmul %466, %492, %cst_324 {dimension_numbers = #tpu.dot_dimension_numbers<[1], [0], [0], [1], [0, 0, 1, 1], [], []>} : vector<8x32xf32>, vector<32x32xf32>, vector<8x32xf32> -> vector<8x32xf32>
    %494 = arith.addf %493, %41 : vector<8x32xf32>
    %495 = arith.mulf %477, %494 : vector<8x32xf32>
    %496 = arith.addf %491, %495 : vector<8x32xf32>
    %497 = math.tanh %496 : vector<8x32xf32>
    %cst_325 = arith.constant 1.000000e+00 : f32
    %498 = vector.broadcast %cst_325 : f32 to vector<8x32xf32>
    %499 = arith.subf %498, %488 : vector<8x32xf32>
    %500 = arith.mulf %499, %497 : vector<8x32xf32>
    %501 = arith.mulf %488, %466 : vector<8x32xf32>
    %502 = arith.addf %500, %501 : vector<8x32xf32>
    %c0_326 = arith.constant 0 : index
    %c0_327 = arith.constant 0 : index
    %503 = vector.load %arg26[%c0_326, %c0_327] : memref<8x32xf32, #tpu.memory_space<vmem>>, vector<8x32xf32>
    tpu.vector_store %arg26[%c0_326, %c0_327], %502 {strides = array<i32>} : memref<8x32xf32, #tpu.memory_space<vmem>>, vector<8x32xf32>,
    %c6_i32 = arith.constant 6 : i32
    %c7_i32_328 = arith.constant 7 : i32
    %504 = arith.subi %c7_i32_328, %c6_i32 : i32
    %c0_329 = arith.constant 0 : index
    %c0_330 = arith.constant 0 : index
    %505 = vector.load %arg25[%c0_329, %c0_330] : memref<8x32xf32, #tpu.memory_space<vmem>>, vector<8x32xf32>
    %506 = arith.index_cast %504 : i32 to index
    %c0_331 = arith.constant 0 : index
    %c0_332 = arith.constant 0 : index
    %507 = vector.load %arg22[%506, %c0_331, %c0_332] : memref<8x8x32xf32, #tpu.memory_space<vmem>>, vector<1x8x32xf32>
    %508 = vector.shape_cast %507 : vector<1x8x32xf32> to vector<8x32xf32>
    %c0_333 = arith.constant 0 : index
    %c0_334 = arith.constant 0 : index
    %509 = vector.load %arg4[%c0_333, %c0_334] : memref<32x32xf32, #tpu.memory_space<vmem>>, vector<32x32xf32>
    %cst_335 = arith.constant dense<0.000000e+00> : vector<8x32xf32>
    %510 = tpu.matmul %505, %509, %cst_335 {dimension_numbers = #tpu.dot_dimension_numbers<[1], [0], [0], [1], [0, 0, 1, 1], [], []>} : vector<8x32xf32>, vector<32x32xf32>, vector<8x32xf32> -> vector<8x32xf32>
    %511 = arith.addf %508, %510 : vector<8x32xf32>
    %512 = arith.negf %511 : vector<8x32xf32>
    %513 = math.exp %512 : vector<8x32xf32>
    %cst_336 = arith.constant 1.000000e+00 : f32
    %514 = vector.broadcast %cst_336 : f32 to vector<8x32xf32>
    %515 = arith.addf %514, %513 : vector<8x32xf32>
    %516 = arith.divf %514, %515 : vector<8x32xf32>
    %517 = arith.index_cast %504 : i32 to index
    %c0_337 = arith.constant 0 : index
    %c0_338 = arith.constant 0 : index
    %518 = vector.load %arg23[%517, %c0_337, %c0_338] : memref<8x8x32xf32, #tpu.memory_space<vmem>>, vector<1x8x32xf32>
    %519 = vector.shape_cast %518 : vector<1x8x32xf32> to vector<8x32xf32>
    %c0_339 = arith.constant 0 : index
    %c0_340 = arith.constant 0 : index
    %520 = vector.load %arg5[%c0_339, %c0_340] : memref<32x32xf32, #tpu.memory_space<vmem>>, vector<32x32xf32>
    %cst_341 = arith.constant dense<0.000000e+00> : vector<8x32xf32>
    %521 = tpu.matmul %505, %520, %cst_341 {dimension_numbers = #tpu.dot_dimension_numbers<[1], [0], [0], [1], [0, 0, 1, 1], [], []>} : vector<8x32xf32>, vector<32x32xf32>, vector<8x32xf32> -> vector<8x32xf32>
    %522 = arith.addf %519, %521 : vector<8x32xf32>
    %523 = arith.negf %522 : vector<8x32xf32>
    %524 = math.exp %523 : vector<8x32xf32>
    %cst_342 = arith.constant 1.000000e+00 : f32
    %525 = vector.broadcast %cst_342 : f32 to vector<8x32xf32>
    %526 = arith.addf %525, %524 : vector<8x32xf32>
    %527 = arith.divf %525, %526 : vector<8x32xf32>
    %528 = arith.index_cast %504 : i32 to index
    %c0_343 = arith.constant 0 : index
    %c0_344 = arith.constant 0 : index
    %529 = vector.load %arg24[%528, %c0_343, %c0_344] : memref<8x8x32xf32, #tpu.memory_space<vmem>>, vector<1x8x32xf32>
    %530 = vector.shape_cast %529 : vector<1x8x32xf32> to vector<8x32xf32>
    %c0_345 = arith.constant 0 : index
    %c0_346 = arith.constant 0 : index
    %531 = vector.load %arg6[%c0_345, %c0_346] : memref<32x32xf32, #tpu.memory_space<vmem>>, vector<32x32xf32>
    %cst_347 = arith.constant dense<0.000000e+00> : vector<8x32xf32>
    %532 = tpu.matmul %505, %531, %cst_347 {dimension_numbers = #tpu.dot_dimension_numbers<[1], [0], [0], [1], [0, 0, 1, 1], [], []>} : vector<8x32xf32>, vector<32x32xf32>, vector<8x32xf32> -> vector<8x32xf32>
    %533 = arith.addf %532, %29 : vector<8x32xf32>
    %534 = arith.mulf %516, %533 : vector<8x32xf32>
    %535 = arith.addf %530, %534 : vector<8x32xf32>
    %536 = math.tanh %535 : vector<8x32xf32>
    %cst_348 = arith.constant 1.000000e+00 : f32
    %537 = vector.broadcast %cst_348 : f32 to vector<8x32xf32>
    %538 = arith.subf %537, %527 : vector<8x32xf32>
    %539 = arith.mulf %538, %536 : vector<8x32xf32>
    %540 = arith.mulf %527, %505 : vector<8x32xf32>
    %541 = arith.addf %539, %540 : vector<8x32xf32>
    %c0_349 = arith.constant 0 : index
    %c0_350 = arith.constant 0 : index
    %542 = vector.load %arg25[%c0_349, %c0_350] : memref<8x32xf32, #tpu.memory_space<vmem>>, vector<8x32xf32>
    tpu.vector_store %arg25[%c0_349, %c0_350], %541 {strides = array<i32>} : memref<8x32xf32, #tpu.memory_space<vmem>>, vector<8x32xf32>,
    %c0_351 = arith.constant 0 : index
    %c0_352 = arith.constant 0 : index
    %543 = vector.load %arg26[%c0_351, %c0_352] : memref<8x32xf32, #tpu.memory_space<vmem>>, vector<8x32xf32>
    %c0_353 = arith.constant 0 : index
    %c0_354 = arith.constant 0 : index
    %544 = vector.load %arg11[%c0_353, %c0_354] : memref<32x32xf32, #tpu.memory_space<vmem>>, vector<32x32xf32>
    %cst_355 = arith.constant dense<0.000000e+00> : vector<8x32xf32>
    %545 = tpu.matmul %541, %544, %cst_355 {dimension_numbers = #tpu.dot_dimension_numbers<[1], [0], [0], [1], [0, 0, 1, 1], [], []>} : vector<8x32xf32>, vector<32x32xf32>, vector<8x32xf32> -> vector<8x32xf32>
    %c0_356 = arith.constant 0 : index
    %c0_357 = arith.constant 0 : index
    %546 = vector.load %arg14[%c0_356, %c0_357] : memref<32x32xf32, #tpu.memory_space<vmem>>, vector<32x32xf32>
    %cst_358 = arith.constant dense<0.000000e+00> : vector<8x32xf32>
    %547 = tpu.matmul %543, %546, %cst_358 {dimension_numbers = #tpu.dot_dimension_numbers<[1], [0], [0], [1], [0, 0, 1, 1], [], []>} : vector<8x32xf32>, vector<32x32xf32>, vector<8x32xf32> -> vector<8x32xf32>
    %548 = arith.addf %545, %547 : vector<8x32xf32>
    %549 = arith.addf %548, %32 : vector<8x32xf32>
    %550 = arith.negf %549 : vector<8x32xf32>
    %551 = math.exp %550 : vector<8x32xf32>
    %cst_359 = arith.constant 1.000000e+00 : f32
    %552 = vector.broadcast %cst_359 : f32 to vector<8x32xf32>
    %553 = arith.addf %552, %551 : vector<8x32xf32>
    %554 = arith.divf %552, %553 : vector<8x32xf32>
    %c0_360 = arith.constant 0 : index
    %c0_361 = arith.constant 0 : index
    %555 = vector.load %arg12[%c0_360, %c0_361] : memref<32x32xf32, #tpu.memory_space<vmem>>, vector<32x32xf32>
    %cst_362 = arith.constant dense<0.000000e+00> : vector<8x32xf32>
    %556 = tpu.matmul %541, %555, %cst_362 {dimension_numbers = #tpu.dot_dimension_numbers<[1], [0], [0], [1], [0, 0, 1, 1], [], []>} : vector<8x32xf32>, vector<32x32xf32>, vector<8x32xf32> -> vector<8x32xf32>
    %c0_363 = arith.constant 0 : index
    %c0_364 = arith.constant 0 : index
    %557 = vector.load %arg15[%c0_363, %c0_364] : memref<32x32xf32, #tpu.memory_space<vmem>>, vector<32x32xf32>
    %cst_365 = arith.constant dense<0.000000e+00> : vector<8x32xf32>
    %558 = tpu.matmul %543, %557, %cst_365 {dimension_numbers = #tpu.dot_dimension_numbers<[1], [0], [0], [1], [0, 0, 1, 1], [], []>} : vector<8x32xf32>, vector<32x32xf32>, vector<8x32xf32> -> vector<8x32xf32>
    %559 = arith.addf %556, %558 : vector<8x32xf32>
    %560 = arith.addf %559, %35 : vector<8x32xf32>
    %561 = arith.negf %560 : vector<8x32xf32>
    %562 = math.exp %561 : vector<8x32xf32>
    %cst_366 = arith.constant 1.000000e+00 : f32
    %563 = vector.broadcast %cst_366 : f32 to vector<8x32xf32>
    %564 = arith.addf %563, %562 : vector<8x32xf32>
    %565 = arith.divf %563, %564 : vector<8x32xf32>
    %c0_367 = arith.constant 0 : index
    %c0_368 = arith.constant 0 : index
    %566 = vector.load %arg13[%c0_367, %c0_368] : memref<32x32xf32, #tpu.memory_space<vmem>>, vector<32x32xf32>
    %cst_369 = arith.constant dense<0.000000e+00> : vector<8x32xf32>
    %567 = tpu.matmul %541, %566, %cst_369 {dimension_numbers = #tpu.dot_dimension_numbers<[1], [0], [0], [1], [0, 0, 1, 1], [], []>} : vector<8x32xf32>, vector<32x32xf32>, vector<8x32xf32> -> vector<8x32xf32>
    %568 = arith.addf %567, %38 : vector<8x32xf32>
    %c0_370 = arith.constant 0 : index
    %c0_371 = arith.constant 0 : index
    %569 = vector.load %arg16[%c0_370, %c0_371] : memref<32x32xf32, #tpu.memory_space<vmem>>, vector<32x32xf32>
    %cst_372 = arith.constant dense<0.000000e+00> : vector<8x32xf32>
    %570 = tpu.matmul %543, %569, %cst_372 {dimension_numbers = #tpu.dot_dimension_numbers<[1], [0], [0], [1], [0, 0, 1, 1], [], []>} : vector<8x32xf32>, vector<32x32xf32>, vector<8x32xf32> -> vector<8x32xf32>
    %571 = arith.addf %570, %41 : vector<8x32xf32>
    %572 = arith.mulf %554, %571 : vector<8x32xf32>
    %573 = arith.addf %568, %572 : vector<8x32xf32>
    %574 = math.tanh %573 : vector<8x32xf32>
    %cst_373 = arith.constant 1.000000e+00 : f32
    %575 = vector.broadcast %cst_373 : f32 to vector<8x32xf32>
    %576 = arith.subf %575, %565 : vector<8x32xf32>
    %577 = arith.mulf %576, %574 : vector<8x32xf32>
    %578 = arith.mulf %565, %543 : vector<8x32xf32>
    %579 = arith.addf %577, %578 : vector<8x32xf32>
    %c0_374 = arith.constant 0 : index
    %c0_375 = arith.constant 0 : index
    %580 = vector.load %arg26[%c0_374, %c0_375] : memref<8x32xf32, #tpu.memory_space<vmem>>, vector<8x32xf32>
    tpu.vector_store %arg26[%c0_374, %c0_375], %579 {strides = array<i32>} : memref<8x32xf32, #tpu.memory_space<vmem>>, vector<8x32xf32>,
    %c7_i32_376 = arith.constant 7 : i32
    %c7_i32_377 = arith.constant 7 : i32
    %581 = arith.subi %c7_i32_377, %c7_i32_376 : i32
    %c0_378 = arith.constant 0 : index
    %c0_379 = arith.constant 0 : index
    %582 = vector.load %arg25[%c0_378, %c0_379] : memref<8x32xf32, #tpu.memory_space<vmem>>, vector<8x32xf32>
    %583 = arith.index_cast %581 : i32 to index
    %c0_380 = arith.constant 0 : index
    %c0_381 = arith.constant 0 : index
    %584 = vector.load %arg22[%583, %c0_380, %c0_381] : memref<8x8x32xf32, #tpu.memory_space<vmem>>, vector<1x8x32xf32>
    %585 = vector.shape_cast %584 : vector<1x8x32xf32> to vector<8x32xf32>
    %c0_382 = arith.constant 0 : index
    %c0_383 = arith.constant 0 : index
    %586 = vector.load %arg4[%c0_382, %c0_383] : memref<32x32xf32, #tpu.memory_space<vmem>>, vector<32x32xf32>
    %cst_384 = arith.constant dense<0.000000e+00> : vector<8x32xf32>
    %587 = tpu.matmul %582, %586, %cst_384 {dimension_numbers = #tpu.dot_dimension_numbers<[1], [0], [0], [1], [0, 0, 1, 1], [], []>} : vector<8x32xf32>, vector<32x32xf32>, vector<8x32xf32> -> vector<8x32xf32>
    %588 = arith.addf %585, %587 : vector<8x32xf32>
    %589 = arith.negf %588 : vector<8x32xf32>
    %590 = math.exp %589 : vector<8x32xf32>
    %cst_385 = arith.constant 1.000000e+00 : f32
    %591 = vector.broadcast %cst_385 : f32 to vector<8x32xf32>
    %592 = arith.addf %591, %590 : vector<8x32xf32>
    %593 = arith.divf %591, %592 : vector<8x32xf32>
    %594 = arith.index_cast %581 : i32 to index
    %c0_386 = arith.constant 0 : index
    %c0_387 = arith.constant 0 : index
    %595 = vector.load %arg23[%594, %c0_386, %c0_387] : memref<8x8x32xf32, #tpu.memory_space<vmem>>, vector<1x8x32xf32>
    %596 = vector.shape_cast %595 : vector<1x8x32xf32> to vector<8x32xf32>
    %c0_388 = arith.constant 0 : index
    %c0_389 = arith.constant 0 : index
    %597 = vector.load %arg5[%c0_388, %c0_389] : memref<32x32xf32, #tpu.memory_space<vmem>>, vector<32x32xf32>
    %cst_390 = arith.constant dense<0.000000e+00> : vector<8x32xf32>
    %598 = tpu.matmul %582, %597, %cst_390 {dimension_numbers = #tpu.dot_dimension_numbers<[1], [0], [0], [1], [0, 0, 1, 1], [], []>} : vector<8x32xf32>, vector<32x32xf32>, vector<8x32xf32> -> vector<8x32xf32>
    %599 = arith.addf %596, %598 : vector<8x32xf32>
    %600 = arith.negf %599 : vector<8x32xf32>
    %601 = math.exp %600 : vector<8x32xf32>
    %cst_391 = arith.constant 1.000000e+00 : f32
    %602 = vector.broadcast %cst_391 : f32 to vector<8x32xf32>
    %603 = arith.addf %602, %601 : vector<8x32xf32>
    %604 = arith.divf %602, %603 : vector<8x32xf32>
    %605 = arith.index_cast %581 : i32 to index
    %c0_392 = arith.constant 0 : index
    %c0_393 = arith.constant 0 : index
    %606 = vector.load %arg24[%605, %c0_392, %c0_393] : memref<8x8x32xf32, #tpu.memory_space<vmem>>, vector<1x8x32xf32>
    %607 = vector.shape_cast %606 : vector<1x8x32xf32> to vector<8x32xf32>
    %c0_394 = arith.constant 0 : index
    %c0_395 = arith.constant 0 : index
    %608 = vector.load %arg6[%c0_394, %c0_395] : memref<32x32xf32, #tpu.memory_space<vmem>>, vector<32x32xf32>
    %cst_396 = arith.constant dense<0.000000e+00> : vector<8x32xf32>
    %609 = tpu.matmul %582, %608, %cst_396 {dimension_numbers = #tpu.dot_dimension_numbers<[1], [0], [0], [1], [0, 0, 1, 1], [], []>} : vector<8x32xf32>, vector<32x32xf32>, vector<8x32xf32> -> vector<8x32xf32>
    %610 = arith.addf %609, %29 : vector<8x32xf32>
    %611 = arith.mulf %593, %610 : vector<8x32xf32>
    %612 = arith.addf %607, %611 : vector<8x32xf32>
    %613 = math.tanh %612 : vector<8x32xf32>
    %cst_397 = arith.constant 1.000000e+00 : f32
    %614 = vector.broadcast %cst_397 : f32 to vector<8x32xf32>
    %615 = arith.subf %614, %604 : vector<8x32xf32>
    %616 = arith.mulf %615, %613 : vector<8x32xf32>
    %617 = arith.mulf %604, %582 : vector<8x32xf32>
    %618 = arith.addf %616, %617 : vector<8x32xf32>
    %c0_398 = arith.constant 0 : index
    %c0_399 = arith.constant 0 : index
    %619 = vector.load %arg25[%c0_398, %c0_399] : memref<8x32xf32, #tpu.memory_space<vmem>>, vector<8x32xf32>
    tpu.vector_store %arg25[%c0_398, %c0_399], %618 {strides = array<i32>} : memref<8x32xf32, #tpu.memory_space<vmem>>, vector<8x32xf32>,
    %c0_400 = arith.constant 0 : index
    %c0_401 = arith.constant 0 : index
    %620 = vector.load %arg26[%c0_400, %c0_401] : memref<8x32xf32, #tpu.memory_space<vmem>>, vector<8x32xf32>
    %c0_402 = arith.constant 0 : index
    %c0_403 = arith.constant 0 : index
    %621 = vector.load %arg11[%c0_402, %c0_403] : memref<32x32xf32, #tpu.memory_space<vmem>>, vector<32x32xf32>
    %cst_404 = arith.constant dense<0.000000e+00> : vector<8x32xf32>
    %622 = tpu.matmul %618, %621, %cst_404 {dimension_numbers = #tpu.dot_dimension_numbers<[1], [0], [0], [1], [0, 0, 1, 1], [], []>} : vector<8x32xf32>, vector<32x32xf32>, vector<8x32xf32> -> vector<8x32xf32>
    %c0_405 = arith.constant 0 : index
    %c0_406 = arith.constant 0 : index
    %623 = vector.load %arg14[%c0_405, %c0_406] : memref<32x32xf32, #tpu.memory_space<vmem>>, vector<32x32xf32>
    %cst_407 = arith.constant dense<0.000000e+00> : vector<8x32xf32>
    %624 = tpu.matmul %620, %623, %cst_407 {dimension_numbers = #tpu.dot_dimension_numbers<[1], [0], [0], [1], [0, 0, 1, 1], [], []>} : vector<8x32xf32>, vector<32x32xf32>, vector<8x32xf32> -> vector<8x32xf32>
    %625 = arith.addf %622, %624 : vector<8x32xf32>
    %626 = arith.addf %625, %32 : vector<8x32xf32>
    %627 = arith.negf %626 : vector<8x32xf32>
    %628 = math.exp %627 : vector<8x32xf32>
    %cst_408 = arith.constant 1.000000e+00 : f32
    %629 = vector.broadcast %cst_408 : f32 to vector<8x32xf32>
    %630 = arith.addf %629, %628 : vector<8x32xf32>
    %631 = arith.divf %629, %630 : vector<8x32xf32>
    %c0_409 = arith.constant 0 : index
    %c0_410 = arith.constant 0 : index
    %632 = vector.load %arg12[%c0_409, %c0_410] : memref<32x32xf32, #tpu.memory_space<vmem>>, vector<32x32xf32>
    %cst_411 = arith.constant dense<0.000000e+00> : vector<8x32xf32>
    %633 = tpu.matmul %618, %632, %cst_411 {dimension_numbers = #tpu.dot_dimension_numbers<[1], [0], [0], [1], [0, 0, 1, 1], [], []>} : vector<8x32xf32>, vector<32x32xf32>, vector<8x32xf32> -> vector<8x32xf32>
    %c0_412 = arith.constant 0 : index
    %c0_413 = arith.constant 0 : index
    %634 = vector.load %arg15[%c0_412, %c0_413] : memref<32x32xf32, #tpu.memory_space<vmem>>, vector<32x32xf32>
    %cst_414 = arith.constant dense<0.000000e+00> : vector<8x32xf32>
    %635 = tpu.matmul %620, %634, %cst_414 {dimension_numbers = #tpu.dot_dimension_numbers<[1], [0], [0], [1], [0, 0, 1, 1], [], []>} : vector<8x32xf32>, vector<32x32xf32>, vector<8x32xf32> -> vector<8x32xf32>
    %636 = arith.addf %633, %635 : vector<8x32xf32>
    %637 = arith.addf %636, %35 : vector<8x32xf32>
    %638 = arith.negf %637 : vector<8x32xf32>
    %639 = math.exp %638 : vector<8x32xf32>
    %cst_415 = arith.constant 1.000000e+00 : f32
    %640 = vector.broadcast %cst_415 : f32 to vector<8x32xf32>
    %641 = arith.addf %640, %639 : vector<8x32xf32>
    %642 = arith.divf %640, %641 : vector<8x32xf32>
    %c0_416 = arith.constant 0 : index
    %c0_417 = arith.constant 0 : index
    %643 = vector.load %arg13[%c0_416, %c0_417] : memref<32x32xf32, #tpu.memory_space<vmem>>, vector<32x32xf32>
    %cst_418 = arith.constant dense<0.000000e+00> : vector<8x32xf32>
    %644 = tpu.matmul %618, %643, %cst_418 {dimension_numbers = #tpu.dot_dimension_numbers<[1], [0], [0], [1], [0, 0, 1, 1], [], []>} : vector<8x32xf32>, vector<32x32xf32>, vector<8x32xf32> -> vector<8x32xf32>
    %645 = arith.addf %644, %38 : vector<8x32xf32>
    %c0_419 = arith.constant 0 : index
    %c0_420 = arith.constant 0 : index
    %646 = vector.load %arg16[%c0_419, %c0_420] : memref<32x32xf32, #tpu.memory_space<vmem>>, vector<32x32xf32>
    %cst_421 = arith.constant dense<0.000000e+00> : vector<8x32xf32>
    %647 = tpu.matmul %620, %646, %cst_421 {dimension_numbers = #tpu.dot_dimension_numbers<[1], [0], [0], [1], [0, 0, 1, 1], [], []>} : vector<8x32xf32>, vector<32x32xf32>, vector<8x32xf32> -> vector<8x32xf32>
    %648 = arith.addf %647, %41 : vector<8x32xf32>
    %649 = arith.mulf %631, %648 : vector<8x32xf32>
    %650 = arith.addf %645, %649 : vector<8x32xf32>
    %651 = math.tanh %650 : vector<8x32xf32>
    %cst_422 = arith.constant 1.000000e+00 : f32
    %652 = vector.broadcast %cst_422 : f32 to vector<8x32xf32>
    %653 = arith.subf %652, %642 : vector<8x32xf32>
    %654 = arith.mulf %653, %651 : vector<8x32xf32>
    %655 = arith.mulf %642, %620 : vector<8x32xf32>
    %656 = arith.addf %654, %655 : vector<8x32xf32>
    %c0_423 = arith.constant 0 : index
    %c0_424 = arith.constant 0 : index
    %657 = vector.load %arg26[%c0_423, %c0_424] : memref<8x32xf32, #tpu.memory_space<vmem>>, vector<8x32xf32>
    tpu.vector_store %arg26[%c0_423, %c0_424], %656 {strides = array<i32>} : memref<8x32xf32, #tpu.memory_space<vmem>>, vector<8x32xf32>,
    %c8_i32 = arith.constant 8 : i32
    %c0_425 = arith.constant 0 : index
    %c0_426 = arith.constant 0 : index
    %658 = vector.load %arg26[%c0_425, %c0_426] : memref<8x32xf32, #tpu.memory_space<vmem>>, vector<8x32xf32>
    %c0_427 = arith.constant 0 : index
    %c0_428 = arith.constant 0 : index
    %659 = vector.load %arg21[%c0_427, %c0_428] : memref<8x32xf32, #tpu.memory_space<vmem>>, vector<8x32xf32>
    tpu.vector_store %arg21[%c0_427, %c0_428], %658 {strides = array<i32>} : memref<8x32xf32, #tpu.memory_space<vmem>>, vector<8x32xf32>,
    return
  }
}

</mosaic_0001>

<bundles_post_ra>
// kernel: encoder_forward.3
= control target key start
LH: loop header
LB: loop body
LE: loop exit
PB: predicated region body
PF: predicated region fallthrough
CT: control target
= control target key end

     0   :  { %vm40_vm0 = vcmask 261120   ;;  %vm130_vm1 = vcmask 97280   ;;  %s258_s1 = inlined_call_operand.vmem [shape: f32[32,32], index: 1, kind: input, shape index: {}]   ;;  %s259_s3 = inlined_call_operand.vmem [shape: f32[32,12], index: 3, kind: input, shape index: {}]   ;;  %s260_s5 = inlined_call_operand.vmem [shape: f32[32,12], index: 5, kind: input, shape index: {}]   ;;  %s261_s2 = inlined_call_operand.vmem [shape: f32[1,32], index: 2, kind: input, shape index: {}]   ;;  %s262_s0 = inlined_call_operand.vmem [shape: f32[8,32], index: 0, kind: input, shape index: {}]   ;;  %s263_s4 = inlined_call_operand.vmem [shape: f32[1,12], index: 4, kind: input, shape index: {}]   ;;  %s264_s6 = inlined_call_operand.vmem [shape: f32[1,12], index: 6, kind: input, shape index: {}]   ;;  %s265_s7 = inlined_call_operand.vmem [shape: f32[1,12], index: 7, kind: input, shape index: {}]   ;;  %s266_s8 = inlined_call_operand.vmem [shape: f32[8,12], index: 8, kind: output, shape index: {0}]   ;;  %s267_s9 = inlined_call_operand.vmem [shape: f32[8,12], index: 9, kind: output, shape index: {1}]  }
   0x1   :  { %v35_v0 = vld [vmem:[%s258_s1 + $0x18] sm:$0xff]  ;;  %v34_v1 = vld [vmem:[%s258_s1 + $0x10] sm:$0xff]  ;;  %v33_v3 = vld [vmem:[%s258_s1 + $0x8] sm:$0xff] }
   0x2   :  { %56 = vmatpush.msra.mxu0 %v35_v0  ;;  %v68_v2 = vld [vmem:[%s259_s3 + $0x18] sm:$0xff]  ;;  %v32_v5 = vld [vmem:[%s258_s1] sm:$0xff]  ;;  %v67_v7 = vld [vmem:[%s259_s3 + $0x10] sm:$0xff] }
   0x3   :  { %88 = vmatpush.msra.mxu1 %v68_v2  ;;  %v99_v4 = vld [vmem:[%s260_s5 + $0x18] sm:$0xff]  ;;  %v31_v6 = vld [vmem:[%s262_s0] sm:$0xff]  ;;  %v98_v8 = vld [vmem:[%s260_s5 + $0x10] sm:$0xff] }
   0x4   :  { %57 = vmatpush.msra.mxu0 %v34_v1  ;;  %116 = vmatpush.msra.mxu2 %v99_v4  ;;  %v66_v9 = vld [vmem:[%s259_s3 + $0x8] sm:$0xff]  ;;  %v65_v11 = vld [vmem:[%s259_s3] sm:$0xff] }
   0x5   :  { %89 = vmatpush.msra.mxu1 %v67_v7  ;;  %v97_v10 = vld [vmem:[%s260_s5 + $0x8] sm:$0xff]  ;;  %v96_v12 = vld [vmem:[%s260_s5] sm:$0xff] }
   0x6   :  { %58 = vmatpush.msra.mxu0 %v33_v3  ;;  %117 = vmatpush.msra.mxu2 %v98_v8  ;;  %v144_v13 = vld [vmem:[%s261_s2] ss:$0 sm:$0xff] }
   0x7   :  { %90 = vmatpush.msra.mxu1 %v66_v9  ;;  %v145_v17 = vld [vmem:[%s263_s4] ss:$0 sm:$0xff] }
   0x8   :  { %59 = vmatpush.msra.mxu0 %v32_v5  ;;  %118 = vmatpush.msra.mxu2 %v97_v10  ;;  %v146_v20 = vld [vmem:[%s264_s6] ss:$0 sm:$0xff] }
   0x9   :  { %141 = vmatmul.msk.f32.vlgmr.msra.gmra.mxu0 %vm40_vm0, %v31_v6  ;;  %91 = vmatpush.msra.mxu1 %v65_v11  ;;  %v147_v23 = vld [vmem:[%s265_s7] ss:$0 sm:$0xff] }
   0xa   :  { %119 = vmatpush.msra.mxu2 %v96_v12 }
  0x86   :  { %v61_v14 = vpop.f32.mrf.mxu0 }
  0x87   :  { %v62_v15 = vadd.f32 %v144_v13, %v61_v14 }
  0x89   :  { %v64_v16 = vmax.f32 %v62_v15, 0.0 }
  0x8b   :  { %142 = vmatmul.msk.f32.vlgmr.msra.gmra.mxu1 %vm40_vm0, %v64_v16  ;;  %143 = vmatmul.msk.f32.vlgmr.msra.gmra.mxu2 %vm40_vm0, %v64_v16 }
 0x108   :  { %v93_v18 = vpop.f32.mrf.mxu1 }
 0x109   :  { %v94_v19 = vadd.f32 %v145_v17, %v93_v18 }
 0x10b   :  { %131 = vst.msk [vmem:[%s266_s8] sm:$0xff] %vm130_vm1, %v94_v19 }
 0x10e   :  { %v121_v21 = vpop.f32.mrf.mxu2 }
 0x10f   :  { %v122_v22 = vadd.f32 %v146_v20, %v121_v21 }
 0x111   :  { %v124_v24 = vand.u32 2147483647, %v122_v22 }
 0x113   :  { %v129_v25 = vmul.f32 %v147_v23, %v124_v24 }
 0x115   :  { %132 = vst.msk [vmem:[%s267_s9] sm:$0xff] %vm130_vm1, %v129_v25 }

// kernel: encoder_forward.2
= control target key start
LH: loop header
LB: loop body
LE: loop exit
PB: predicated region body
PF: predicated region fallthrough
CT: control target
= control target key end

     0   :  { %s5166_s0 = inlined_call_operand.vmem [shape: f32[8,8,4], index: 0, kind: input, shape index: {}]   ;;  %s5167_s1 = inlined_call_operand.hbm [shape: f32[4,32], index: 1, kind: input, shape index: {}]   ;;  %s5168_s2 = inlined_call_operand.hbm [shape: f32[4,32], index: 2, kind: input, shape index: {}]   ;;  %s5169_s3 = inlined_call_operand.hbm [shape: f32[4,32], index: 3, kind: input, shape index: {}]   ;;  %s5170_s4 = inlined_call_operand.vmem [shape: f32[32,32], index: 4, kind: input, shape index: {}]   ;;  %s5171_s5 = inlined_call_operand.vmem [shape: f32[32,32], index: 5, kind: input, shape index: {}]   ;;  %s5172_s6 = inlined_call_operand.vmem [shape: f32[32,32], index: 6, kind: input, shape index: {}]   ;;  %s5173_s7 = inlined_call_operand.vmem [shape: f32[1,32], index: 7, kind: input, shape index: {}]   ;;  %s5174_s8 = inlined_call_operand.vmem [shape: f32[1,32], index: 8, kind: input, shape index: {}]   ;;  %s5175_s9 = inlined_call_operand.vmem [shape: f32[1,32], index: 9, kind: input, shape index: {}]   ;;  %s5176_s10 = inlined_call_operand.vmem [shape: f32[1,32], index: 10, kind: input, shape index: {}]   ;;  %s5177_s11 = inlined_call_operand.hbm [shape: f32[32,32], index: 11, kind: input, shape index: {}]   ;;  %s5178_s12 = inlined_call_operand.hbm [shape: f32[32,32], index: 12, kind: input, shape index: {}]   ;;  %s5179_s13 = inlined_call_operand.hbm [shape: f32[32,32], index: 13, kind: input, shape index: {}]   ;;  %s5180_s14 = inlined_call_operand.hbm [shape: f32[32,32], index: 14, kind: input, shape index: {}]   ;;  %s5181_s15 = inlined_call_operand.hbm [shape: f32[32,32], index: 15, kind: input, shape index: {}]   ;;  %s5182_s16 = inlined_call_operand.hbm [shape: f32[32,32], index: 16, kind: input, shape index: {}]   ;;  %s5183_s17 = inlined_call_operand.hbm [shape: f32[1,32], index: 17, kind: input, shape index: {}]   ;;  %s5184_s18 = inlined_call_operand.hbm [shape: f32[1,32], index: 18, kind: input, shape index: {}]   ;;  %s5185_s19 = inlined_call_operand.hbm [shape: f32[1,32], index: 19, kind: input, shape index: {}]   ;;  %s5186_s20 = inlined_call_operand.hbm [shape: f32[1,32], index: 20, kind: input, shape index: {}]   ;;  %s5187_s21 = inlined_call_operand.vmem [shape: f32[8,32], index: 21, kind: output, shape index: {}]  }
   0x1   :  { %5191 = sst [smem:[#allocation34_spill]] %s5166_s0 }
   0x2   :  { %5192 = sst [smem:[#allocation35_spill]] %s5167_s1 }
   0x3   :  { %5193 = sst [smem:[#allocation36_spill]] %s5168_s2 }
   0x4   :  { %5194 = sst [smem:[#allocation37_spill]] %s5169_s3 }
   0x5   :  { %5195 = sst [smem:[#allocation38_spill]] %s5170_s4 }
   0x6   :  { %5196 = sst [smem:[#allocation39_spill]] %s5171_s5 }
   0x7   :  { %26 = vsyncpa [#allocation8], 0 }
   0x8   :  { %27 = vsyncpa [#allocation10], 0 }
   0x9   :  { %28 = vsyncpa [#allocation13], 0 }
   0xa   :  { %29 = vsyncpa [#allocation16], 0 }
   0xb   :  { %30 = vsyncpa [#allocation19], 0 }
   0xc   :  { %31 = vsyncpa [#allocation22], 0  ;;  %s5197_s26 = sld [smem:[#allocation36_spill]] }
  0x12   :  { %s51_s27 = sshll.u32 %s5197_s26, 4  ;;  %s52_s27 = int_to_ptr.hbm [resolvable:$true] %s51_s27 }
  0x13   :  { %32 = vsyncpa [#allocation25], 0  ;;  %s3775_s3 = smov [#allocation9]   ;;  %s86_s4 = sshll.u32 %s5177_s11, 4  ;;  %s87_s4 = int_to_ptr.hbm [resolvable:$true] %s86_s4 }
  0x14   :  { %s53_s28 = sshll.u32 %s3775_s3, 4  ;;  %s3776_s30 = smov [#allocation12]   ;;  %s54_s28 = int_to_ptr.vmem [resolvable:$true] %s53_s28 }
  0x15   :  { %56 = dma.hbm_to_vmem [thread:$0]  %s52_s27, 64, %s54_s28, [#allocation10]  }
  0x16   :  { %s88_s5 = sshll.u32 %s3776_s30, 4  ;;  %s3777_s22 = smov 128   ;;  %s89_s5 = int_to_ptr.vmem [resolvable:$true] %s88_s5 }
  0x17   :  { %s3778_s23 = smov 8   ;;  %s112_s2 = sshll.u32 %s5179_s13, 4  ;;  %s113_s2 = int_to_ptr.hbm [resolvable:$true] %s112_s2 }
  0x18   :  { %94 = dma.hbm_to_vmem [thread:$0]  %s87_s4, 512, %s89_s5, [#allocation13], %s3777_s22, %s3777_s22, %s3778_s23  }
  0x19   :  { %s3779_s25 = smov [#allocation15]   ;;  %s138_s3 = sshll.u32 %s5181_s15, 4  ;;  %s139_s3 = int_to_ptr.hbm [resolvable:$true] %s138_s3 }
  0x1a   :  { %s114_s26 = sshll.u32 %s3779_s25, 4  ;;  %s3780_s28 = smov [#allocation18]   ;;  %s115_s26 = int_to_ptr.vmem [resolvable:$true] %s114_s26 }
  0x1b   :  { %120 = dma.hbm_to_vmem [thread:$0]  %s113_s2, 512, %s115_s26, [#allocation16], %s3777_s22, %s3777_s22, %s3778_s23  }
  0x1c   :  { %s140_s29 = sshll.u32 %s3780_s28, 4  ;;  %s165_s30 = sshll.u32 %s5183_s17, 4  ;;  %s141_s29 = int_to_ptr.vmem [resolvable:$true] %s140_s29  ;;  %s166_s30 = int_to_ptr.hbm [resolvable:$true] %s165_s30 }
  0x1d   :  { %146 = dma.hbm_to_vmem [thread:$0]  %s139_s3, 512, %s141_s29, [#allocation19], %s3777_s22, %s3777_s22, %s3778_s23  }
  0x1e   :  { %s187_s15 = sshll.u32 %s5185_s19, 4  ;;  %s3781_s1 = smov [#allocation21]   ;;  %s188_s15 = int_to_ptr.hbm [resolvable:$true] %s187_s15 }
  0x1f   :  { %s167_s24 = sshll.u32 %s3781_s1, 4  ;;  %s3782_s2 = smov [#allocation24]   ;;  %s168_s24 = int_to_ptr.vmem [resolvable:$true] %s167_s24 }
  0x20   :  { %170 = dma.hbm_to_vmem [thread:$0]  %s166_s30, 16, %s168_s24, [#allocation22]  }
  0x21   :  { %s189_s25 = sshll.u32 %s3782_s2, 4  ;;  %s5198_s17 = sld [smem:[#allocation35_spill]]  ;;  %s190_s25 = int_to_ptr.vmem [resolvable:$true] %s189_s25 }
  0x22   :  { %192 = dma.hbm_to_vmem [thread:$0]  %s188_s15, 16, %s190_s25, [#allocation25]  }
  0x23   :  { %s5199_s29 = sld [smem:[#allocation37_spill]]  ;;  %s3783_s4 = smov [#allocation7]  }
  0x24   :  { %s42_s19 = sshll.u32 %s3783_s4, 4  ;;  %s3784_s13 = smov [#allocation11]   ;;  %s43_s19 = int_to_ptr.vmem [resolvable:$true] %s42_s19 }
  0x25   :  { %s64_s30 = sshll.u32 %s3784_s13, 4  ;;  %s99_s24 = sshll.u32 %s5178_s12, 4  ;;  %s65_s30 = int_to_ptr.vmem [resolvable:$true] %s64_s30  ;;  %s100_s24 = int_to_ptr.hbm [resolvable:$true] %s99_s24 }
  0x26   :  { %s125_s25 = sshll.u32 %s5180_s14, 4  ;;  %s3785_s26 = smov [#allocation14]   ;;  %s126_s25 = int_to_ptr.hbm [resolvable:$true] %s125_s25 }
  0x27   :  { %s40_s27 = sshll.u32 %s5198_s17, 4  ;;  %s101_s11 = sshll.u32 %s3785_s26, 4  ;;  %s41_s27 = int_to_ptr.hbm [resolvable:$true] %s40_s27  ;;  %s102_s11 = int_to_ptr.vmem [resolvable:$true] %s101_s11 }
  0x28   :  { %45 = dma.hbm_to_vmem [thread:$0]  %s41_s27, 64, %s43_s19, [#allocation8]  }
  0x29   :  { %s62_s0 = sshll.u32 %s5199_s29, 4  ;;  %s3786_s17 = smov [#allocation17]   ;;  %s63_s0 = int_to_ptr.hbm [resolvable:$true] %s62_s0 }
  0x2a   :  { %67 = dma.hbm_to_vmem [thread:$0]  %s63_s0, 64, %s65_s30, [#allocation10]  }
  0x2b   :  { %107 = dma.hbm_to_vmem [thread:$0]  %s100_s24, 512, %s102_s11, [#allocation13], %s3777_s22, %s3777_s22, %s3778_s23  }
  0x2c   :  { %s127_s27 = sshll.u32 %s3786_s17, 4  ;;  %s151_s12 = sshll.u32 %s5182_s16, 4  ;;  %s128_s27 = int_to_ptr.vmem [resolvable:$true] %s127_s27  ;;  %s152_s12 = int_to_ptr.hbm [resolvable:$true] %s151_s12 }
  0x2d   :  { %133 = dma.hbm_to_vmem [thread:$0]  %s126_s25, 512, %s128_s27, [#allocation16], %s3777_s22, %s3777_s22, %s3778_s23  }
  0x2e   :  { %s176_s0 = sshll.u32 %s5184_s18, 4  ;;  %s3787_s4 = smov [#allocation20]   ;;  %s177_s0 = int_to_ptr.hbm [resolvable:$true] %s176_s0 }
  0x2f   :  { %s153_s19 = sshll.u32 %s3787_s4, 4  ;;  %s3788_s13 = smov [#allocation23]   ;;  %s154_s19 = int_to_ptr.vmem [resolvable:$true] %s153_s19 }
  0x30   :  { %159 = dma.hbm_to_vmem [thread:$0]  %s152_s12, 512, %s154_s19, [#allocation19], %s3777_s22, %s3777_s22, %s3778_s23  }
  0x31   :  { %s178_s16 = sshll.u32 %s3788_s13, 4  ;;  %s198_s1 = sshll.u32 %s5186_s20, 4  ;;  %s179_s16 = int_to_ptr.vmem [resolvable:$true] %s178_s16  ;;  %s199_s1 = int_to_ptr.hbm [resolvable:$true] %s198_s1 }
  0x32   :  { %181 = dma.hbm_to_vmem [thread:$0]  %s177_s0, 16, %s179_s16, [#allocation22]  }
  0x33   :  { %s3789_s24 = smov [#allocation26]  }
  0x34   :  { %s200_s2 = sshll.u32 %s3789_s24, 4  ;;  %s201_s2 = int_to_ptr.vmem [resolvable:$true] %s200_s2 }
  0x35   :  { %203 = dma.hbm_to_vmem [thread:$0]  %s199_s1, 16, %s201_s2, [#allocation25]  }
  0x36   :  { %3761 = dma.done.wait [#allocation8], 64  }
  0x37   :  { %3762 = vsyncadd [#allocation8], 4294967232 }
  0x38   :  { %3763 = dma.done.wait [#allocation10], 128  }
  0x39   :  { %3764 = vsyncadd [#allocation10], 4294967168 }
  0x3a   :  { %3765 = dma.done.wait [#allocation13], 1024  }
  0x3b   :  { %3766 = vsyncadd [#allocation13], 4294966272 }
  0x3c   :  { %3767 = dma.done.wait [#allocation16], 1024  }
  0x3d   :  { %3768 = vsyncadd [#allocation16], 4294966272 }
  0x3e   :  { %3769 = dma.done.wait [#allocation19], 1024  }
  0x3f   :  { %3770 = vsyncadd [#allocation19], 4294966272 }
  0x40   :  { %3771 = dma.done.wait [#allocation22], 32  }
  0x41   :  { %3772 = vsyncadd [#allocation22], 4294967264 }
  0x42   :  { %3773 = dma.done.wait [#allocation25], 32  }
  0x43   :  { %3774 = vsyncadd [#allocation25], 4294967264  ;;  %vm294_vm0 = vcmask 1043456   ;;  %vm269_vm1 = vcmask 31744   ;;  %v264_v0 = vld [vmem:[#allocation7] sm:$0xf] }
  0x44   :  { %v348_v1 = vld [vmem:[#allocation9] sm:$0xf]  ;;  %s5200_s22 = sld [smem:[#allocation34_spill]]  ;;  %3126 = vmatpush.msk.msra.mxu0 %vm294_vm0, %v264_v0  ;;  %v405_v3 = vld [vmem:[#allocation11] sm:$0xf]  ;;  %vm339_vm2 = vcmask 261120  }
  0x45   :  { %3135 = vmatpush.msk.msra.mxu1 %vm294_vm0, %v348_v1  ;;  %3144 = vmatpush.msk.msra.mxu2 %vm294_vm0, %v405_v3  ;;  %s5201_s11 = sld [smem:[#allocation38_spill]]  ;;  %v3790_v7 = vmov 0.0   ;;  %v4045_v17 = vld [vmem:[%s5172_s6 + $0x18] sm:$0xff]  ;;  %v4054_v18 = vld [vmem:[%s5172_s6 + $0x10] sm:$0xff]  ;;  %v4063_v20 = vld [vmem:[%s5172_s6 + $0x8] sm:$0xff] }
  0x46   :  { %462 = vst.msk [vmem:[#allocation5] sm:$0xff] %vm339_vm2, %v3790_v7  ;;  %s5202_s13 = sld [smem:[#allocation39_spill]]  ;;  %v4071_v21 = vld [vmem:[%s5172_s6] sm:$0xff] }
  0x47   :  { %463 = vst.msk [vmem:[#allocation6] sm:$0xff] %vm339_vm2, %v3790_v7  ;;  %v4099_v25 = vld [vmem:[%s5173_s7] ss:$0 sm:$0xff] }
  0x48   :  { %v4104_v26 = vld [vmem:[%s5174_s8] ss:$0 sm:$0xff] }
  0x49   :  { %v4113_v31 = vld [vmem:[%s5175_s9] ss:$0 sm:$0xff] }
  0x4a   :  { %v256_v2 = vld [vmem:[%s5200_s22] sm:$0xff]  ;;  %v257_v4 = vld [vmem:[%s5200_s22 + $0x8] sm:$0xff]  ;;  %v258_v8 = vld [vmem:[%s5200_s22 + $0x10] sm:$0xff] }
  0x4b   :  { %3127 = vmatmul.msk.f32.vlgmr.msra.gmra.mxu0 %vm269_vm1, %v256_v2  ;;  %3136 = vmatmul.msk.f32.vlgmr.msra.gmra.mxu1 %vm269_vm1, %v256_v2  ;;  %v3972_v5 = vld [vmem:[%s5201_s11 + $0x18] sm:$0xff]  ;;  %v3977_v6 = vld [vmem:[%s5201_s11 + $0x10] sm:$0xff]  ;;  %v3994_v9 = vld [vmem:[%s5201_s11 + $0x8] sm:$0xff] }
  0x4c   :  { %3145 = vmatmul.msk.f32.vlgmr.msra.gmra.mxu2 %vm269_vm1, %v256_v2  ;;  %506 = vmatpush.msra.mxu3 %v3972_v5  ;;  %v3999_v10 = vld [vmem:[%s5201_s11] sm:$0xff]  ;;  %v4004_v11 = vld [vmem:[%s5202_s13 + $0x18] sm:$0xff]  ;;  %v4012_v12 = vld [vmem:[%s5202_s13 + $0x10] sm:$0xff] }
  0x4d   :  { %835 = vmatpush.msrb.mxu1 %v3972_v5  ;;  %881 = vmatpush.msrb.mxu2 %v4004_v11  ;;  %v4016_v13 = vld [vmem:[#allocation5] sm:$0xff]  ;;  %v259_v14 = vld [vmem:[%s5200_s22 + $0x18] sm:$0xff]  ;;  %v4032_v15 = vld [vmem:[%s5202_s13 + $0x8] sm:$0xff] }
  0x4e   :  { %507 = vmatpush.msra.mxu3 %v3977_v6  ;;  %v4037_v16 = vld [vmem:[%s5202_s13] sm:$0xff]  ;;  %v261_v22 = vld [vmem:[%s5200_s22 + $0x28] sm:$0xff]  ;;  %v262_v23 = vld [vmem:[%s5200_s22 + $0x30] sm:$0xff] }
  0x4f   :  { %836 = vmatpush.msrb.mxu1 %v3977_v6  ;;  %882 = vmatpush.msrb.mxu2 %v4012_v12  ;;  %v260_v19 = vld [vmem:[%s5200_s22 + $0x20] sm:$0xff]  ;;  %v263_v24 = vld [vmem:[%s5200_s22 + $0x38] sm:$0xff] }
  0x50   :  { %508 = vmatpush.msra.mxu3 %v3994_v9 }
  0x51   :  { %837 = vmatpush.msrb.mxu1 %v3994_v9  ;;  %883 = vmatpush.msrb.mxu2 %v4032_v15 }
  0x52   :  { %509 = vmatpush.msra.mxu3 %v3999_v10 }
  0x53   :  { %3128 = vmatmul.msk.f32.gmra.mxu0 %vm269_vm1, %v257_v4  ;;  %3137 = vmatmul.msk.f32.gmra.mxu1 %vm269_vm1, %v257_v4 }
  0x54   :  { %3146 = vmatmul.msk.f32.gmra.mxu2 %vm269_vm1, %v257_v4  ;;  %3153 = vmatmul.msk.f32.vlgmr.msra.gmra.mxu3 %vm339_vm2, %v4016_v13 }
  0x55   :  { %838 = vmatpush.msrb.mxu1 %v3999_v10  ;;  %552 = vmatpush.msrb.mxu3 %v4004_v11 }
  0x56   :  { %884 = vmatpush.msrb.mxu2 %v4037_v16 }
  0x57   :  { %553 = vmatpush.msrb.mxu3 %v4012_v12 }
  0x59   :  { %554 = vmatpush.msrb.mxu3 %v4032_v15 }
  0x5b   :  { %3129 = vmatmul.msk.f32.gmra.mxu0 %vm269_vm1, %v258_v8  ;;  %3138 = vmatmul.msk.f32.gmra.mxu1 %vm269_vm1, %v258_v8 }
  0x5c   :  { %3147 = vmatmul.msk.f32.gmra.mxu2 %vm269_vm1, %v258_v8  ;;  %555 = vmatpush.msrb.mxu3 %v4037_v16 }
  0x5d   :  { %3155 = vmatmul.msk.f32.vlgmr.msrb.gmra.mxu3 %vm339_vm2, %v4016_v13 }
  0x5e   :  { %598 = vmatpush.msra.mxu3 %v4045_v17 }
  0x60   :  { %599 = vmatpush.msra.mxu3 %v4054_v18 }
  0x62   :  { %600 = vmatpush.msra.mxu3 %v4063_v20 }
  0x63   :  { %3130 = vmatmul.msk.f32.gmra.mxu0 %vm269_vm1, %v259_v14  ;;  %3139 = vmatmul.msk.f32.gmra.mxu1 %vm269_vm1, %v259_v14 }
  0x64   :  { %3148 = vmatmul.msk.f32.gmra.mxu2 %vm269_vm1, %v259_v14  ;;  %601 = vmatpush.msra.mxu3 %v4071_v21 }
  0x65   :  { %3157 = vmatmul.msk.f32.vlgmr.msra.gmra.mxu3 %vm339_vm2, %v4016_v13 }
  0x6b   :  { %3131 = vmatmul.msk.f32.gmra.mxu0 %vm269_vm1, %v260_v19  ;;  %3140 = vmatmul.msk.f32.gmra.mxu1 %vm269_vm1, %v260_v19 }
  0x6c   :  { %3149 = vmatmul.msk.f32.gmra.mxu2 %vm269_vm1, %v260_v19 }
  0x73   :  { %3132 = vmatmul.msk.f32.gmra.mxu0 %vm269_vm1, %v261_v22  ;;  %3141 = vmatmul.msk.f32.gmra.mxu1 %vm269_vm1, %v261_v22 }
  0x74   :  { %3150 = vmatmul.msk.f32.gmra.mxu2 %vm269_vm1, %v261_v22 }
  0x7b   :  { %3133 = vmatmul.msk.f32.gmra.mxu0 %vm269_vm1, %v262_v23  ;;  %3142 = vmatmul.msk.f32.gmra.mxu1 %vm269_vm1, %v262_v23 }
  0x7c   :  { %3151 = vmatmul.msk.f32.gmra.mxu2 %vm269_vm1, %v262_v23 }
  0x83   :  { %3134 = vmatmul.msk.f32.gmra.mxu0 %vm269_vm1, %v263_v24  ;;  %3143 = vmatmul.msk.f32.gmra.mxu1 %vm269_vm1, %v263_v24 }
  0x84   :  { %3152 = vmatmul.msk.f32.gmra.mxu2 %vm269_vm1, %v263_v24  ;;  %v4157_v24 = vld [vmem:[#allocation20 + $0x18] sm:$0xff] }
  0x85   :  { %797 = vmatpush.msrb.mxu0 %v4157_v24 }
  0xc8   :  { %v315_v27 = vpop.f32.mrf.mxu0  ;;  %v373_v28 = vpop.f32.mrf.mxu1 }
  0xc9   :  { %v316_v29 = vadd.f32 %v4099_v25, %v315_v27  ;;  %v374_v30 = vadd.f32 %v4104_v26, %v373_v28 }
  0xcb   :  { %340 = vst.msk [vmem:[#allocation2] sm:$0xff] %vm339_vm2, %v316_v29  ;;  %v4160_v29 = vld [vmem:[#allocation17 + $0x18] sm:$0xff] }
  0xcc   :  { %397 = vst.msk [vmem:[#allocation3] sm:$0xff] %vm339_vm2, %v374_v30  ;;  %638 = vmatpush.msrb.mxu3 %v4160_v29 }
  0xcf   :  { %v430_v36 = vpop.f32.mrf.mxu2 }
  0xd0   :  { %v318_v32 = vpop.f32.mrf.mxu0  ;;  %v376_v33 = vpop.f32.mrf.mxu1  ;;  %v431_v37 = vadd.f32 %v4113_v31, %v430_v36  ;;  %v4168_v36 = vld [vmem:[#allocation17 + $0x8] sm:$0xff] }
  0xd1   :  { %v319_v34 = vadd.f32 %v4099_v25, %v318_v32  ;;  %v377_v35 = vadd.f32 %v4104_v26, %v376_v33  ;;  %v4164_v33 = vld [vmem:[#allocation17 + $0x10] sm:$0xff] }
  0xd2   :  { %454 = vst.msk [vmem:[#allocation4] sm:$0xff] %vm339_vm2, %v431_v37  ;;  %639 = vmatpush.msrb.mxu3 %v4164_v33 }
  0xd3   :  { %341 = vst.msk [vmem:[#allocation2 + $0x8] sm:$0xff] %vm339_vm2, %v319_v34 }
  0xd4   :  { %398 = vst.msk [vmem:[#allocation3 + $0x8] sm:$0xff] %vm339_vm2, %v377_v35  ;;  %640 = vmatpush.msrb.mxu3 %v4168_v36 }
  0xd7   :  { %v433_v42 = vpop.f32.mrf.mxu2  ;;  %v511_v4 = vpop.f32.mrf.mxu3 }
  0xd8   :  { %v321_v38 = vpop.f32.mrf.mxu0  ;;  %v379_v39 = vpop.f32.mrf.mxu1  ;;  %v434_v43 = vadd.f32 %v4113_v31, %v433_v42  ;;  %v4187_v42 = vld [vmem:[#allocation12 + $0x8] sm:$0xff] }
  0xd9   :  { %v322_v40 = vadd.f32 %v4099_v25, %v321_v38  ;;  %v380_v41 = vadd.f32 %v4104_v26, %v379_v39  ;;  %v4171_v38 = vld [vmem:[#allocation17] sm:$0xff]  ;;  %v4178_v39 = vld [vmem:[#allocation12 + $0x18] sm:$0xff] }
  0xda   :  { %455 = vst.msk [vmem:[#allocation4 + $0x8] sm:$0xff] %vm339_vm2, %v434_v43  ;;  %641 = vmatpush.msrb.mxu3 %v4171_v38  ;;  %990 = vmatpush.msra.mxu1 %v4178_v39 }
  0xdb   :  { %342 = vst.msk [vmem:[#allocation2 + $0x10] sm:$0xff] %vm339_vm2, %v322_v40  ;;  %v4182_v40 = vld [vmem:[#allocation12 + $0x10] sm:$0xff] }
  0xdc   :  { %399 = vst.msk [vmem:[#allocation3 + $0x10] sm:$0xff] %vm339_vm2, %v380_v41  ;;  %661 = vmatpush.msra.mxu3 %v4178_v39  ;;  %v4185_v41 = vld [vmem:[#allocation20 + $0x10] sm:$0xff]  ;;  %991 = vmatpush.msra.mxu1 %v4182_v40 }
  0xdd   :  { %798 = vmatpush.msrb.mxu0 %v4185_v41 }
  0xde   :  { %662 = vmatpush.msra.mxu3 %v4182_v40  ;;  %992 = vmatpush.msra.mxu1 %v4187_v42 }
  0xdf   :  { %v436_v48 = vpop.f32.mrf.mxu2 }
  0xe0   :  { %v324_v44 = vpop.f32.mrf.mxu0  ;;  %v382_v45 = vpop.f32.mrf.mxu1  ;;  %v437_v49 = vadd.f32 %v4113_v31, %v436_v48  ;;  %663 = vmatpush.msra.mxu3 %v4187_v42  ;;  %v4196_v48 = vld [vmem:[#allocation18 + $0x18] sm:$0xff] }
  0xe1   :  { %v325_v46 = vadd.f32 %v4099_v25, %v324_v44  ;;  %v383_v47 = vadd.f32 %v4104_v26, %v382_v45  ;;  %v557_v27 = vpop.f32.mrf.mxu3  ;;  %v4191_v44 = vld [vmem:[#allocation12] sm:$0xff]  ;;  %1038 = vmatpush.msra.mxu2 %v4196_v48 }
  0xe2   :  { %456 = vst.msk [vmem:[#allocation4 + $0x10] sm:$0xff] %vm339_vm2, %v437_v49  ;;  %664 = vmatpush.msra.mxu3 %v4191_v44  ;;  %v4198_v49 = vld [vmem:[#allocation18 + $0x10] sm:$0xff]  ;;  %993 = vmatpush.msra.mxu1 %v4191_v44 }
  0xe3   :  { %343 = vst.msk [vmem:[#allocation2 + $0x18] sm:$0xff] %vm339_vm2, %v325_v46  ;;  %1039 = vmatpush.msra.mxu2 %v4198_v49 }
  0xe4   :  { %400 = vst.msk [vmem:[#allocation3 + $0x18] sm:$0xff] %vm339_vm2, %v383_v47 }
  0xe7   :  { %v439_v54 = vpop.f32.mrf.mxu2 }
  0xe8   :  { %v327_v50 = vpop.f32.mrf.mxu0  ;;  %v385_v51 = vpop.f32.mrf.mxu1  ;;  %v440_v55 = vadd.f32 %v4113_v31, %v439_v54 }
  0xe9   :  { %v328_v52 = vadd.f32 %v4099_v25, %v327_v50  ;;  %v386_v53 = vadd.f32 %v4104_v26, %v385_v51  ;;  %v4203_v50 = vld [vmem:[#allocation18 + $0x8] sm:$0xff]  ;;  %v4207_v51 = vld [vmem:[#allocation18] sm:$0xff] }
  0xea   :  { %457 = vst.msk [vmem:[#allocation4 + $0x18] sm:$0xff] %vm339_vm2, %v440_v55  ;;  %1040 = vmatpush.msra.mxu2 %v4203_v50 }
  0xeb   :  { %344 = vst.msk [vmem:[#allocation2 + $0x20] sm:$0xff] %vm339_vm2, %v328_v52 }
  0xec   :  { %401 = vst.msk [vmem:[#allocation3 + $0x20] sm:$0xff] %vm339_vm2, %v386_v53  ;;  %1041 = vmatpush.msra.mxu2 %v4207_v51 }
  0xef   :  { %v442_v60 = vpop.f32.mrf.mxu2 }
  0xf0   :  { %v330_v56 = vpop.f32.mrf.mxu0  ;;  %v388_v57 = vpop.f32.mrf.mxu1  ;;  %v443_v61 = vadd.f32 %v4113_v31, %v442_v60 }
  0xf1   :  { %v331_v58 = vadd.f32 %v4099_v25, %v330_v56  ;;  %v389_v59 = vadd.f32 %v4104_v26, %v388_v57  ;;  %v4216_v56 = vld [vmem:[%s5176_s10] ss:$0 sm:$0xff] }
  0xf2   :  { %458 = vst.msk [vmem:[#allocation4 + $0x20] sm:$0xff] %vm339_vm2, %v443_v61  ;;  %v603_v61 = vpop.f32.mrf.mxu3 }
  0xf3   :  { %345 = vst.msk [vmem:[#allocation2 + $0x28] sm:$0xff] %vm339_vm2, %v331_v58  ;;  %v4218_v58 = vld [vmem:[#allocation20 + $0x8] sm:$0xff] }
  0xf4   :  { %402 = vst.msk [vmem:[#allocation3 + $0x28] sm:$0xff] %vm339_vm2, %v389_v59  ;;  %799 = vmatpush.msrb.mxu0 %v4218_v58 }
  0xf7   :  { %v445_v2 = vpop.f32.mrf.mxu2 }
  0xf8   :  { %v333_v62 = vpop.f32.mrf.mxu0  ;;  %v391_v63 = vpop.f32.mrf.mxu1  ;;  %v446_v3 = vadd.f32 %v4113_v31, %v445_v2  ;;  %v604_v2 = vadd.f32 %v4216_v56, %v603_v61 }
  0xf9   :  { %v334_v0 = vadd.f32 %v4099_v25, %v333_v62  ;;  %v392_v1 = vadd.f32 %v4104_v26, %v391_v63 }
  0xfa   :  { %459 = vst.msk [vmem:[#allocation4 + $0x28] sm:$0xff] %vm339_vm2, %v446_v3 }
  0xfb   :  { %346 = vst.msk [vmem:[#allocation2 + $0x30] sm:$0xff] %vm339_vm2, %v334_v0 }
  0xfc   :  { %403 = vst.msk [vmem:[#allocation3 + $0x30] sm:$0xff] %vm339_vm2, %v392_v1 }
  0xff   :  { %v448_v22 = vpop.f32.mrf.mxu2 }
 0x100   :  { %v336_v7 = vpop.f32.mrf.mxu0  ;;  %v394_v8 = vpop.f32.mrf.mxu1  ;;  %v449_v23 = vadd.f32 %v4113_v31, %v448_v22 }
 0x101   :  { %v337_v14 = vadd.f32 %v4099_v25, %v336_v7  ;;  %v395_v19 = vadd.f32 %v4104_v26, %v394_v8 }
 0x102   :  { %460 = vst.msk [vmem:[#allocation4 + $0x30] sm:$0xff] %vm339_vm2, %v449_v23 }
 0x103   :  { %347 = vst.msk [vmem:[#allocation2 + $0x38] sm:$0xff] %vm339_vm2, %v337_v14 }
 0x104   :  { %404 = vst.msk [vmem:[#allocation3 + $0x38] sm:$0xff] %vm339_vm2, %v395_v19 }
 0x107   :  { %v451_v28 = vpop.f32.mrf.mxu2 }
 0x108   :  { %v452_v26 = vadd.f32 %v4113_v31, %v451_v28  ;;  %v4174_v31 = vld [vmem:[#allocation6] sm:$0xff] }
 0x109   :  { %3158 = vmatmul.msk.f32.vlgmr.msrb.gmra.mxu3 %vm339_vm2, %v4174_v31 }
 0x10a   :  { %v486_v25 = vld [vmem:[#allocation2 + $0x38] sm:$0xff]  ;;  %461 = vst.msk [vmem:[#allocation4 + $0x38] sm:$0xff] %vm339_vm2, %v452_v26  ;;  %709 = vmatpush.msrb.mxu3 %v4196_v48 }
 0x10b   :  { %v514_v30 = vadd.f32 %v511_v4, %v486_v25  ;;  %v535_v32 = vld [vmem:[#allocation3 + $0x38] sm:$0xff] }
 0x10c   :  { %v560_v34 = vadd.f32 %v557_v27, %v535_v32  ;;  %710 = vmatpush.msrb.mxu3 %v4198_v49 }
 0x10d   :  { %v3154_v35 = vmul.f32 -1.442695, %v514_v30  ;;  %v4222_v30 = vld [vmem:[#allocation20] sm:$0xff] }
 0x10e   :  { %v3156_v37 = vmul.f32 -1.442695, %v560_v34  ;;  %711 = vmatpush.msrb.mxu3 %v4203_v50  ;;  %800 = vmatpush.msrb.mxu0 %v4222_v30 }
 0x10f   :  { %3281 = vpow2.f32 %v3154_v35  ;;  %3165 = vmatmul.msk.f32.vlgmr.msrb.gmra.mxu0 %vm339_vm2, %v4174_v31 }
 0x110   :  { %3283 = vpow2.f32 %v3156_v37  ;;  %712 = vmatpush.msrb.mxu3 %v4207_v51  ;;  %967 = vmatpush.msra.mxu0 %v4160_v29 }
 0x111   :  { %v581_v14 = vld [vmem:[#allocation4 + $0x38] sm:$0xff] }
 0x112   :  { %968 = vmatpush.msra.mxu0 %v4164_v33 }
 0x114   :  { %969 = vmatpush.msra.mxu0 %v4168_v36 }
 0x115   :  { %v3282_v43 = vpop.eup %3281 }
 0x116   :  { %v3284_v45 = vpop.eup %3283  ;;  %v518_v46 = vadd.f32 1.0, %v3282_v43  ;;  %970 = vmatpush.msra.mxu0 %v4171_v38 }
 0x117   :  { %v564_v47 = vadd.f32 1.0, %v3284_v45  ;;  %v4230_v45 = vld [vmem:[#allocation14 + $0x18] sm:$0xff] }
 0x118   :  { %3285 = vrcp.f32 %v518_v46  ;;  %v530_v60 = vand.u32 2147483648, %v518_v46  ;;  %v528_v63 = vand.u32 2147483647, %v518_v46  ;;  %vm524_vm4 = vweird.f32 %v518_v46 }
 0x119   :  { %3287 = vrcp.f32 %v564_v47  ;;  %vm570_vm7 = vweird.f32 %v564_v47  ;;  %v576_v19 = vand.u32 2147483648, %v564_v47  ;;  %v574_v23 = vand.u32 2147483647, %v564_v47 }
 0x11a   :  { %v531_v3 = vor.u32 1.1754944e-38, %v530_v60  ;;  %vm529_vm6 = vcmp.eq.f32.partialorder %v528_v63, 8.507059e+37 }
 0x11b   :  { %v577_v25 = vor.u32 1.1754944e-38, %v576_v19  ;;  %vm575_vm10 = vcmp.eq.f32.partialorder %v574_v23, 8.507059e+37 }
 0x11e   :  { %v3286_v52 = vpop.eup %3285 }
 0x11f   :  { %v3288_v53 = vpop.eup %3287  ;;  %v520_v54 = vmul.f32 %v3286_v52, %v518_v46  ;;  %vm525_vm3 = vweird.f32 %v3286_v52  ;;  %v4235_v46 = vld [vmem:[#allocation14 + $0x10] sm:$0xff] }
 0x120   :  { %v566_v55 = vmul.f32 %v3288_v53, %v564_v47  ;;  %vm526_vm5 = vmor %vm524_vm4, %vm525_vm3  ;;  %vm571_vm8 = vweird.f32 %v3288_v53  ;;  %v4238_v47 = vld [vmem:[#allocation15 + $0x18] sm:$0xff] }
 0x121   :  { %v521_v57 = vsub.f32 1.0, %v520_v54  ;;  %vm572_vm9 = vmor %vm570_vm7, %vm571_vm8  ;;  %1102 = vmatpush.msrb.mxu0 %v4238_v47  ;;  %v4251_v54 = vld [vmem:[#allocation15 + $0x8] sm:$0xff] }
 0x122   :  { %v567_v59 = vsub.f32 1.0, %v566_v55 }
 0x123   :  { %v522_v62 = vmul.f32 %v3286_v52, %v521_v57  ;;  %v4264_v57 = vld [vmem:[#allocation15] sm:$0xff] }
 0x124   :  { %v568_v0 = vmul.f32 %v3288_v53, %v567_v59  ;;  %v815_v59 = vld [vmem:[#allocation2 + $0x30] sm:$0xff] }
 0x125   :  { %v523_v1 = vadd.f32 %v3286_v52, %v522_v62 }
 0x126   :  { %v569_v7 = vadd.f32 %v3288_v53, %v568_v0 }
 0x127   :  { %v527_v4 = vsel %vm526_vm5, %v3286_v52, %v523_v1  ;;  %v4245_v52 = vld [vmem:[#allocation15 + $0x10] sm:$0xff] }
 0x128   :  { %v532_v8 = vsel %vm529_vm6, %v531_v3, %v527_v4  ;;  %v573_v28 = vsel %vm572_vm9, %v3288_v53, %v569_v7  ;;  %v4247_v53 = vld [vmem:[#allocation14] sm:$0xff]  ;;  %1103 = vmatpush.msrb.mxu0 %v4245_v52 }
 0x129   :  { %v606_v22 = vmul.f32 %v604_v2, %v532_v8  ;;  %v578_v26 = vsel %vm575_vm10, %v577_v25, %v573_v28  ;;  %v4297_v8 = vld [vmem:[#allocation23] ss:$0 sm:$0xff] }
 0x12a   :  { %v609_v32 = vsub.f32 1.0, %v578_v26  ;;  %v611_v37 = vmul.f32 %v578_v26, %v4016_v13  ;;  %v4241_v13 = vld [vmem:[#allocation14 + $0x8] sm:$0xff]  ;;  %1104 = vmatpush.msrb.mxu0 %v4251_v54 }
 0x12b   :  { %v607_v27 = vadd.f32 %v606_v22, %v581_v14 }
 0x12c   :  { %1105 = vmatpush.msrb.mxu0 %v4264_v57 }
 0x12d   :  { %3289 = vtanh.f32 %v607_v27 }
 0x133   :  { %v3290_v34 = vpop.eup %3289 }
 0x134   :  { %v610_v35 = vmul.f32 %v3290_v34, %v609_v32 }
 0x136   :  { %v612_v43 = vadd.f32 %v611_v37, %v610_v35 }
 0x138   :  { %613 = vst.msk [vmem:[#allocation5] sm:$0xff] %vm339_vm2, %v612_v43  ;;  %3159 = vmatmul.msk.f32.vlgmr.msra.gmra.mxu3 %vm339_vm2, %v612_v43 }
 0x139   :  { %729 = vmatpush.msra.mxu3 %v4230_v45 }
 0x13b   :  { %730 = vmatpush.msra.mxu3 %v4235_v46 }
 0x13d   :  { %731 = vmatpush.msra.mxu3 %v4241_v13 }
 0x13f   :  { %v4254_v55 = vld [vmem:[#allocation5] sm:$0xff]  ;;  %732 = vmatpush.msra.mxu3 %v4247_v53 }
 0x140   :  { %3161 = vmatmul.msk.f32.vlgmr.msrb.gmra.mxu3 %vm339_vm2, %v4174_v31  ;;  %3166 = vmatmul.msk.f32.vlgmr.msrb.gmra.mxu1 %vm339_vm2, %v4254_v55 }
 0x141   :  { %3168 = vmatmul.msk.f32.vlgmr.msrb.gmra.mxu2 %vm339_vm2, %v4254_v55  ;;  %773 = vmatpush.msrb.mxu3 %v4238_v47 }
 0x142   :  { %1126 = vmatpush.msrb.mxu1 %v4157_v24  ;;  %1164 = vmatpush.msrb.mxu2 %v3972_v5 }
 0x143   :  { %774 = vmatpush.msrb.mxu3 %v4245_v52 }
 0x144   :  { %1127 = vmatpush.msrb.mxu1 %v4185_v41  ;;  %1165 = vmatpush.msrb.mxu2 %v3977_v6  ;;  %v4294_v6 = vld [vmem:[#allocation21] ss:$0 sm:$0xff] }
 0x145   :  { %775 = vmatpush.msrb.mxu3 %v4251_v54 }
 0x146   :  { %1128 = vmatpush.msrb.mxu1 %v4218_v58  ;;  %1166 = vmatpush.msrb.mxu2 %v3994_v9 }
 0x147   :  { %776 = vmatpush.msrb.mxu3 %v4264_v57 }
 0x148   :  { %3162 = vmatmul.msk.f32.vlgmr.msra.gmra.mxu3 %vm339_vm2, %v612_v43  ;;  %1129 = vmatpush.msrb.mxu1 %v4222_v30 }
 0x149   :  { %927 = vmatpush.msra.mxu3 %v4045_v17  ;;  %1167 = vmatpush.msrb.mxu2 %v3999_v10 }
 0x14b   :  { %928 = vmatpush.msra.mxu3 %v4054_v18 }
 0x14d   :  { %929 = vmatpush.msra.mxu3 %v4063_v20 }
 0x14f   :  { %930 = vmatpush.msra.mxu3 %v4071_v21 }
 0x150   :  { %3164 = vmatmul.msk.f32.vlgmr.msrb.gmra.mxu3 %vm339_vm2, %v612_v43 }
 0x151   :  { %1058 = vmatpush.msrb.mxu3 %v4230_v45 }
 0x153   :  { %1059 = vmatpush.msrb.mxu3 %v4235_v46 }
 0x155   :  { %1060 = vmatpush.msrb.mxu3 %v4241_v13 }
 0x157   :  { %1061 = vmatpush.msrb.mxu3 %v4247_v53 }
 0x158   :  { %3170 = vmatmul.msk.f32.vlgmr.msra.gmra.mxu3 %vm339_vm2, %v4254_v55 }
 0x159   :  { %1210 = vmatpush.msra.mxu3 %v4004_v11 }
 0x15b   :  { %1211 = vmatpush.msra.mxu3 %v4012_v12  ;;  %v864_v12 = vld [vmem:[#allocation3 + $0x30] sm:$0xff] }
 0x15d   :  { %1212 = vmatpush.msra.mxu3 %v4032_v15 }
 0x15f   :  { %1213 = vmatpush.msra.mxu3 %v4037_v16 }
 0x18c   :  { %v643_v5 = vpop.f32.mrf.mxu3 }
 0x1bb   :  { %v666_v9 = vpop.f32.mrf.mxu3 }
 0x1bc   :  { %v667_v10 = vadd.f32 %v666_v9, %v643_v5 }
 0x1bd   :  { %v840_v60 = vpop.f32.mrf.mxu1 }
 0x1be   :  { %v669_v61 = vadd.f32 %v4294_v6, %v667_v10  ;;  %v843_v62 = vadd.f32 %v840_v60, %v815_v59  ;;  %v4303_v60 = vld [vmem:[#allocation26] ss:$0 sm:$0xff] }
 0x1c0   :  { %v3160_v63 = vmul.f32 -1.442695, %v669_v61  ;;  %v3167_v0 = vmul.f32 -1.442695, %v843_v62 }
 0x1c2   :  { %3291 = vpow2.f32 %v3160_v63 }
 0x1c3   :  { %3293 = vpow2.f32 %v3167_v0  ;;  %v714_v11 = vpop.f32.mrf.mxu3 }
 0x1c4   :  { %v886_v1 = vpop.f32.mrf.mxu2 }
 0x1c5   :  { %v889_v15 = vadd.f32 %v886_v1, %v864_v12 }
 0x1c7   :  { %v3169_v2 = vmul.f32 -1.442695, %v889_v15 }
 0x1c8   :  { %v3292_v16 = vpop.eup %3291 }
 0x1c9   :  { %v3294_v3 = vpop.eup %3293  ;;  %v673_v4 = vadd.f32 1.0, %v3292_v16  ;;  %3295 = vpow2.f32 %v3169_v2 }
 0x1ca   :  { %v847_v7 = vadd.f32 1.0, %v3294_v3 }
 0x1cb   :  { %3297 = vrcp.f32 %v673_v4  ;;  %v734_v14 = vpop.f32.mrf.mxu3  ;;  %v685_v9 = vand.u32 2147483648, %v673_v4  ;;  %vm679_vm12 = vweird.f32 %v673_v4  ;;  %v683_v61 = vand.u32 2147483647, %v673_v4 }
 0x1cc   :  { %3299 = vrcp.f32 %v847_v7  ;;  %v735_v19 = vadd.f32 %v734_v14, %v714_v11  ;;  %v802_v11 = vpop.f32.mrf.mxu0  ;;  %v859_v1 = vand.u32 2147483648, %v847_v7  ;;  %vm853_vm15 = vweird.f32 %v847_v7 }
 0x1cd   :  { %v857_v2 = vand.u32 2147483647, %v847_v7  ;;  %v686_v14 = vor.u32 1.1754944e-38, %v685_v9  ;;  %vm684_vm1 = vcmp.eq.f32.partialorder %v683_v61, 8.507059e+37 }
 0x1ce   :  { %v737_v22 = vadd.f32 %v4297_v8, %v735_v19 }
 0x1cf   :  { %v3296_v23 = vpop.eup %3295  ;;  %vm858_vm3 = vcmp.eq.f32.partialorder %v857_v2, 8.507059e+37 }
 0x1d0   :  { %v4300_v27 = vadd.f32 1.0, %v3296_v23  ;;  %v3163_v28 = vmul.f32 -1.442695, %v737_v22 }
 0x1d1   :  { %v3298_v25 = vpop.eup %3297 }
 0x1d2   :  { %v3300_v26 = vpop.eup %3299  ;;  %3301 = vrcp.f32 %v4300_v27  ;;  %v675_v34 = vmul.f32 %v3298_v25, %v673_v4  ;;  %vm680_vm11 = vweird.f32 %v3298_v25  ;;  %v803_v4 = vadd.f32 %v4303_v60, %v802_v11 }
 0x1d3   :  { %3303 = vpow2.f32 %v3163_v28  ;;  %v778_v32 = vpop.f32.mrf.mxu3  ;;  %v849_v35 = vmul.f32 %v3300_v26, %v847_v7  ;;  %vm854_vm13 = vweird.f32 %v3300_v26  ;;  %vm681_vm14 = vmor %vm679_vm12, %vm680_vm11  ;;  %vm899_vm5 = vweird.f32 %v4300_v27 }
 0x1d4   :  { %v676_v37 = vsub.f32 1.0, %v675_v34  ;;  %vm855_vm0 = vmor %vm853_vm15, %vm854_vm13  ;;  %v860_v34 = vor.u32 1.1754944e-38, %v859_v1 }
 0x1d5   :  { %v850_v43 = vsub.f32 1.0, %v849_v35  ;;  %v4308_v35 = vld [vmem:[#allocation24] ss:$0 sm:$0xff] }
 0x1d6   :  { %v677_v5 = vmul.f32 %v3298_v25, %v676_v37 }
 0x1d7   :  { %v851_v10 = vmul.f32 %v3300_v26, %v850_v43 }
 0x1d8   :  { %v3302_v59 = vpop.eup %3301  ;;  %v678_v0 = vadd.f32 %v3298_v25, %v677_v5 }
 0x1d9   :  { %v3304_v62 = vpop.eup %3303  ;;  %v895_v63 = vmul.f32 %v3302_v59, %v4300_v27  ;;  %v852_v12 = vadd.f32 %v3300_v26, %v851_v10  ;;  %vm900_vm4 = vweird.f32 %v3302_v59  ;;  %v903_v10 = vand.u32 2147483647, %v4300_v27 }
 0x1da   :  { %v741_v15 = vadd.f32 1.0, %v3304_v62  ;;  %v682_v3 = vsel %vm681_vm14, %v3298_v25, %v678_v0  ;;  %v905_v25 = vand.u32 2147483648, %v4300_v27  ;;  %vm901_vm6 = vmor %vm899_vm5, %vm900_vm4  ;;  %v779_v62 = vadd.f32 %v4308_v35, %v778_v32 }
 0x1db   :  { %v896_v16 = vsub.f32 1.0, %v895_v63  ;;  %v932_v19 = vpop.f32.mrf.mxu3  ;;  %v856_v22 = vsel %vm855_vm0, %v3300_v26, %v852_v12  ;;  %v687_v28 = vsel %vm684_vm1, %v686_v14, %v682_v3  ;;  %v910_v26 = vld [vmem:[#allocation4 + $0x30] sm:$0xff]  ;;  %vm904_vm7 = vcmp.eq.f32.partialorder %v903_v10, 8.507059e+37 }
 0x1dc   :  { %3305 = vrcp.f32 %v741_v15  ;;  %v933_v37 = vadd.f32 %v4216_v56, %v932_v19  ;;  %v861_v7 = vsel %vm858_vm3, %v860_v34, %v856_v22  ;;  %v805_v5 = vmul.f32 %v803_v4, %v687_v28 }
 0x1dd   :  { %v897_v23 = vmul.f32 %v3302_v59, %v896_v16  ;;  %v906_v12 = vor.u32 1.1754944e-38, %v905_v25  ;;  %v753_v16 = vand.u32 2147483648, %v741_v15  ;;  %v751_v19 = vand.u32 2147483647, %v741_v15 }
 0x1de   :  { %v935_v9 = vmul.f32 %v933_v37, %v861_v7  ;;  %v806_v1 = vadd.f32 %v805_v5, %v779_v62  ;;  %vm747_vm9 = vweird.f32 %v741_v15 }
 0x1df   :  { %v898_v43 = vadd.f32 %v3302_v59, %v897_v23  ;;  %v754_v32 = vor.u32 1.1754944e-38, %v753_v16  ;;  %vm752_vm11 = vcmp.eq.f32.partialorder %v751_v19, 8.507059e+37  ;;  %v4387_v16 = vld [vmem:[%s5201_s11 + $0x10] sm:$0xff] }
 0x1e0   :  { %v936_v63 = vadd.f32 %v935_v9, %v910_v26  ;;  %v4396_v19 = vld [vmem:[%s5202_s13 + $0x10] sm:$0xff] }
 0x1e1   :  { %v902_v11 = vsel %vm901_vm6, %v3302_v59, %v898_v43 }
 0x1e2   :  { %v3306_v61 = vpop.eup %3305  ;;  %3307 = vtanh.f32 %v936_v63  ;;  %v907_v3 = vsel %vm904_vm7, %v906_v12, %v902_v11 }
 0x1e3   :  { %v743_v0 = vmul.f32 %v3306_v61, %v741_v15  ;;  %vm748_vm8 = vweird.f32 %v3306_v61  ;;  %3309 = vtanh.f32 %v806_v1  ;;  %v938_v4 = vsub.f32 1.0, %v907_v3  ;;  %v4377_v1 = vld [vmem:[%s5201_s11 + $0x18] sm:$0xff] }
 0x1e4   :  { %vm749_vm10 = vmor %vm747_vm9, %vm748_vm8  ;;  %v940_v28 = vmul.f32 %v907_v3, %v4254_v55 }
 0x1e5   :  { %v744_v2 = vsub.f32 1.0, %v743_v0 }
 0x1e7   :  { %v745_v14 = vmul.f32 %v3306_v61, %v744_v2  ;;  %v4382_v2 = vld [vmem:[%s5202_s13 + $0x18] sm:$0xff] }
 0x1e8   :  { %v3308_v22 = vpop.eup %3307 }
 0x1e9   :  { %v746_v27 = vadd.f32 %v3306_v61, %v745_v14  ;;  %v939_v59 = vmul.f32 %v3308_v22, %v938_v4  ;;  %v3310_v7 = vpop.eup %3309 }
 0x1eb   :  { %v750_v23 = vsel %vm749_vm10, %v3306_v61, %v746_v27  ;;  %v941_v43 = vadd.f32 %v940_v28, %v939_v59  ;;  %v4405_v28 = vld [vmem:[%s5201_s11 + $0x8] sm:$0xff] }
 0x1ec   :  { %v755_v34 = vsel %vm752_vm11, %v754_v32, %v750_v23 }
 0x1ed   :  { %v808_v37 = vsub.f32 1.0, %v755_v34  ;;  %v810_v5 = vmul.f32 %v755_v34, %v4174_v31  ;;  %942 = vst.msk [vmem:[#allocation5] sm:$0xff] %vm339_vm2, %v941_v43  ;;  %3172 = vmatmul.msk.f32.vlgmr.msra.gmra.mxu1 %vm339_vm2, %v941_v43  ;;  %3175 = vmatmul.msk.f32.vlgmr.msrb.gmra.mxu3 %vm339_vm2, %v941_v43  ;;  %v4410_v34 = vld [vmem:[%s5202_s13 + $0x8] sm:$0xff] }
 0x1ee   :  { %1296 = vmatpush.msra.mxu1 %v4160_v29  ;;  %1367 = vmatpush.msrb.mxu3 %v4196_v48 }
 0x1ef   :  { %v809_v25 = vmul.f32 %v3310_v7, %v808_v37 }
 0x1f0   :  { %1297 = vmatpush.msra.mxu1 %v4164_v33  ;;  %1368 = vmatpush.msrb.mxu3 %v4198_v49 }
 0x1f1   :  { %v811_v15 = vadd.f32 %v810_v5, %v809_v25  ;;  %v4417_v25 = vld [vmem:[%s5201_s11] sm:$0xff] }
 0x1f2   :  { %1298 = vmatpush.msra.mxu1 %v4168_v36  ;;  %1369 = vmatpush.msrb.mxu3 %v4203_v50  ;;  %v4422_v5 = vld [vmem:[%s5202_s13] sm:$0xff] }
 0x1f3   :  { %812 = vst.msk [vmem:[#allocation6] sm:$0xff] %vm339_vm2, %v811_v15 }
 0x1f4   :  { %v4327_v31 = vld [vmem:[#allocation5] sm:$0xff]  ;;  %1299 = vmatpush.msra.mxu1 %v4171_v38  ;;  %1370 = vmatpush.msrb.mxu3 %v4207_v51  ;;  %v1144_v51 = vld [vmem:[#allocation2 + $0x28] sm:$0xff] }
 0x1f5   :  { %3181 = vmatmul.msk.f32.vlgmr.msra.gmra.mxu3 %vm339_vm2, %v4327_v31 }
 0x1f6   :  { %1493 = vmatpush.msra.mxu3 %v4377_v1 }
 0x1f8   :  { %1494 = vmatpush.msra.mxu3 %v4387_v16 }
 0x1fa   :  { %v4333_v29 = vld [vmem:[#allocation6] sm:$0xff]  ;;  %1495 = vmatpush.msra.mxu3 %v4405_v28 }
 0x1fb   :  { %3171 = vmatmul.msk.f32.vlgmr.msra.gmra.mxu0 %vm339_vm2, %v4333_v29  ;;  %3174 = vmatmul.msk.f32.vlgmr.msra.gmra.mxu2 %vm339_vm2, %v4333_v29 }
 0x1fc   :  { %3178 = vmatmul.msk.f32.vlgmr.msrb.gmra.mxu1 %vm339_vm2, %v4333_v29  ;;  %1256 = vmatpush.msra.mxu0 %v4045_v17 }
 0x1fd   :  { %1319 = vmatpush.msra.mxu2 %v4178_v39  ;;  %1431 = vmatpush.msrb.mxu1 %v4238_v47 }
 0x1fe   :  { %1257 = vmatpush.msra.mxu0 %v4054_v18  ;;  %1496 = vmatpush.msra.mxu3 %v4417_v25 }
 0x1ff   :  { %1320 = vmatpush.msra.mxu2 %v4182_v40  ;;  %1432 = vmatpush.msrb.mxu1 %v4245_v52 }
 0x200   :  { %1258 = vmatpush.msra.mxu0 %v4063_v20 }
 0x201   :  { %1321 = vmatpush.msra.mxu2 %v4187_v42  ;;  %1433 = vmatpush.msrb.mxu1 %v4251_v54 }
 0x202   :  { %1259 = vmatpush.msra.mxu0 %v4071_v21 }
 0x203   :  { %3177 = vmatmul.msk.f32.vlgmr.msrb.gmra.mxu0 %vm339_vm2, %v941_v43  ;;  %3179 = vmatmul.msk.f32.vlgmr.msrb.gmra.mxu2 %vm339_vm2, %v4327_v31 }
 0x204   :  { %1387 = vmatpush.msrb.mxu0 %v4230_v45  ;;  %1322 = vmatpush.msra.mxu2 %v4191_v44 }
 0x205   :  { %1434 = vmatpush.msrb.mxu1 %v4264_v57 }
 0x206   :  { %1455 = vmatpush.msrb.mxu2 %v4157_v24  ;;  %1388 = vmatpush.msrb.mxu0 %v4235_v46  ;;  %v1193_v24 = vld [vmem:[#allocation3 + $0x28] sm:$0xff] }
 0x208   :  { %1456 = vmatpush.msrb.mxu2 %v4185_v41  ;;  %1389 = vmatpush.msrb.mxu0 %v4241_v13 }
 0x20a   :  { %1457 = vmatpush.msrb.mxu2 %v4218_v58  ;;  %1390 = vmatpush.msrb.mxu0 %v4247_v53 }
 0x20b   :  { %3183 = vmatmul.msk.f32.vlgmr.msra.gmra.mxu0 %vm339_vm2, %v4327_v31 }
 0x20c   :  { %1458 = vmatpush.msrb.mxu2 %v4222_v30  ;;  %1539 = vmatpush.msra.mxu0 %v4382_v2 }
 0x20e   :  { %1540 = vmatpush.msra.mxu0 %v4396_v19 }
 0x210   :  { %1541 = vmatpush.msra.mxu0 %v4410_v34 }
 0x212   :  { %1542 = vmatpush.msra.mxu0 %v4422_v5 }
 0x26a   :  { %v995_v18 = vpop.f32.mrf.mxu1 }
 0x270   :  { %v1063_v17 = vpop.f32.mrf.mxu3 }
 0x278   :  { %v972_v20 = vpop.f32.mrf.mxu0  ;;  %v1215_v33 = vpop.f32.mrf.mxu3 }
 0x279   :  { %v996_v21 = vadd.f32 %v995_v18, %v972_v20  ;;  %v1218_v38 = vadd.f32 %v1215_v33, %v1193_v24  ;;  %v1131_v63 = vpop.f32.mrf.mxu1 }
 0x27a   :  { %v1132_v4 = vadd.f32 %v4303_v60, %v1131_v63 }
 0x27b   :  { %v998_v36 = vadd.f32 %v4294_v6, %v996_v21  ;;  %v3182_v41 = vmul.f32 -1.442695, %v1218_v38 }
 0x27d   :  { %v3173_v39 = vmul.f32 -1.442695, %v998_v36 }
 0x27e   :  { %v1043_v40 = vpop.f32.mrf.mxu2 }
 0x27f   :  { %3311 = vpow2.f32 %v3173_v39  ;;  %v1064_v42 = vadd.f32 %v1063_v17, %v1043_v40 }
 0x280   :  { %3313 = vpow2.f32 %v3182_v41  ;;  %v1107_v12 = vpop.f32.mrf.mxu0 }
 0x281   :  { %v1066_v44 = vadd.f32 %v4297_v8, %v1064_v42  ;;  %v1108_v59 = vadd.f32 %v4308_v35, %v1107_v12 }
 0x283   :  { %v3176_v48 = vmul.f32 -1.442695, %v1066_v44 }
 0x285   :  { %v3312_v49 = vpop.eup %3311  ;;  %3315 = vpow2.f32 %v3176_v48 }
 0x286   :  { %v1002_v50 = vadd.f32 1.0, %v3312_v49  ;;  %v1169_v58 = vpop.f32.mrf.mxu2  ;;  %v3314_v45 = vpop.eup %3313 }
 0x287   :  { %v1172_v30 = vadd.f32 %v1169_v58, %v1144_v51  ;;  %v4368_v13 = vadd.f32 1.0, %v3314_v45 }
 0x288   :  { %3317 = vrcp.f32 %v1002_v50  ;;  %v1014_v9 = vand.u32 2147483648, %v1002_v50  ;;  %v1012_v26 = vand.u32 2147483647, %v1002_v50  ;;  %vm1008_vm13 = vweird.f32 %v1002_v50  ;;  %v1261_v44 = vpop.f32.mrf.mxu0 }
 0x289   :  { %v3180_v46 = vmul.f32 -1.442695, %v1172_v30  ;;  %v1262_v30 = vadd.f32 %v4216_v56, %v1261_v44  ;;  %vm1228_vm10 = vweird.f32 %v4368_v13 }
 0x28a   :  { %v1015_v14 = vor.u32 1.1754944e-38, %v1014_v9  ;;  %vm1013_vm15 = vcmp.eq.f32.partialorder %v1012_v26, 8.507059e+37  ;;  %v1232_v9 = vand.u32 2147483647, %v4368_v13 }
 0x28b   :  { %v3316_v47 = vpop.eup %3315  ;;  %3319 = vpow2.f32 %v3180_v46 }
 0x28c   :  { %v1070_v52 = vadd.f32 1.0, %v3316_v47 }
 0x28e   :  { %v3318_v53 = vpop.eup %3317  ;;  %3321 = vrcp.f32 %v1070_v52  ;;  %v1082_v23 = vand.u32 2147483648, %v1070_v52  ;;  %v1080_v15 = vand.u32 2147483647, %v1070_v52  ;;  %vm1076_vm1 = vweird.f32 %v1070_v52 }
 0x28f   :  { %v1004_v54 = vmul.f32 %v3318_v53, %v1002_v50  ;;  %3323 = vrcp.f32 %v4368_v13  ;;  %vm1009_vm12 = vweird.f32 %v3318_v53 }
 0x290   :  { %vm1010_vm14 = vmor %vm1008_vm13, %vm1009_vm12  ;;  %v1083_v36 = vor.u32 1.1754944e-38, %v1082_v23  ;;  %vm1081_vm4 = vcmp.eq.f32.partialorder %v1080_v15, 8.507059e+37  ;;  %vm1233_vm12 = vcmp.eq.f32.partialorder %v1232_v9, 8.507059e+37 }
 0x291   :  { %v1005_v55 = vsub.f32 1.0, %v1004_v54  ;;  %v3320_v57 = vpop.eup %3319  ;;  %v1234_v54 = vand.u32 2147483648, %v4368_v13 }
 0x292   :  { %v4371_v61 = vadd.f32 1.0, %v3320_v57 }
 0x293   :  { %v1006_v10 = vmul.f32 %v3318_v53, %v1005_v55  ;;  %v1235_v26 = vor.u32 1.1754944e-38, %v1234_v54  ;;  %v4520_v54 = vld [vmem:[#allocation18 + $0x10] sm:$0xff] }
 0x294   :  { %v3322_v62 = vpop.eup %3321  ;;  %3325 = vrcp.f32 %v4371_v61  ;;  %v1188_v40 = vand.u32 2147483648, %v4371_v61  ;;  %v1186_v42 = vand.u32 2147483647, %v4371_v61  ;;  %vm1182_vm6 = vweird.f32 %v4371_v61 }
 0x295   :  { %v1007_v0 = vadd.f32 %v3318_v53, %v1006_v10  ;;  %v1072_v11 = vmul.f32 %v3322_v62, %v1070_v52  ;;  %v4389_v3 = vpop.eup %3323  ;;  %vm1077_vm0 = vweird.f32 %v3322_v62  ;;  %v1239_v10 = vld [vmem:[#allocation4 + $0x28] sm:$0xff] }
 0x296   :  { %v1224_v43 = vmul.f32 %v4389_v3, %v4368_v13  ;;  %vm1078_vm3 = vmor %vm1076_vm1, %vm1077_vm0  ;;  %v1189_v58 = vor.u32 1.1754944e-38, %v1188_v40  ;;  %vm1187_vm8 = vcmp.eq.f32.partialorder %v1186_v42, 8.507059e+37  ;;  %vm1229_vm9 = vweird.f32 %v4389_v3 }
 0x297   :  { %v1011_v27 = vsel %vm1010_vm14, %v3318_v53, %v1007_v0  ;;  %v1073_v22 = vsub.f32 1.0, %v1072_v11  ;;  %vm1230_vm11 = vmor %vm1228_vm10, %vm1229_vm9  ;;  %v4456_v11 = vld [vmem:[%s5172_s6 + $0x10] sm:$0xff] }
 0x298   :  { %v1016_v32 = vsel %vm1013_vm15, %v1015_v14, %v1011_v27  ;;  %v1225_v24 = vsub.f32 1.0, %v1224_v43  ;;  %v4464_v27 = vld [vmem:[%s5172_s6 + $0x8] sm:$0xff] }
 0x299   :  { %v1134_v37 = vmul.f32 %v1132_v4, %v1016_v32  ;;  %v1074_v7 = vmul.f32 %v3322_v62, %v1073_v22 }
 0x29a   :  { %v3326_v17 = vpop.eup %3325  ;;  %v1226_v48 = vmul.f32 %v4389_v3, %v1225_v24 }
 0x29b   :  { %v1075_v18 = vadd.f32 %v3322_v62, %v1074_v7  ;;  %v1135_v20 = vadd.f32 %v1134_v37, %v1108_v59  ;;  %v1178_v21 = vmul.f32 %v3326_v17, %v4371_v61  ;;  %vm1183_vm5 = vweird.f32 %v3326_v17 }
 0x29c   :  { %vm1184_vm7 = vmor %vm1182_vm6, %vm1183_vm5  ;;  %v1227_v52 = vadd.f32 %v4389_v3, %v1226_v48 }
 0x29d   :  { %v1079_v33 = vsel %vm1078_vm3, %v3322_v62, %v1075_v18  ;;  %3327 = vtanh.f32 %v1135_v20  ;;  %v1179_v38 = vsub.f32 1.0, %v1178_v21  ;;  %v4445_v62 = vld [vmem:[%s5172_s6 + $0x18] sm:$0xff]  ;;  %v1522_v18 = vld [vmem:[#allocation3 + $0x20] sm:$0xff] }
 0x29e   :  { %v1084_v39 = vsel %vm1081_vm4, %v1083_v36, %v1079_v33 }
 0x29f   :  { %v1180_v41 = vmul.f32 %v3326_v17, %v1179_v38  ;;  %v1137_v49 = vsub.f32 1.0, %v1084_v39  ;;  %v1139_v46 = vmul.f32 %v1084_v39, %v4333_v29  ;;  %v1231_v29 = vsel %vm1230_vm11, %v4389_v3, %v1227_v52  ;;  %v1473_v38 = vld [vmem:[#allocation2 + $0x20] sm:$0xff]  ;;  %v4516_v52 = vld [vmem:[#allocation17 + $0x10] sm:$0xff] }
 0x2a0   :  { %v1236_v61 = vsel %vm1233_vm12, %v1235_v26, %v1231_v29  ;;  %v4534_v29 = vld [vmem:[#allocation18 + $0x8] sm:$0xff]  ;;  %v4536_v26 = vld [vmem:[#allocation14] sm:$0xff] }
 0x2a1   :  { %v1181_v50 = vadd.f32 %v3326_v17, %v1180_v41  ;;  %v1267_v63 = vsub.f32 1.0, %v1236_v61  ;;  %v1269_v3 = vmul.f32 %v1236_v61, %v4327_v31  ;;  %v4473_v31 = vld [vmem:[%s5172_s6] sm:$0xff] }
 0x2a3   :  { %v3328_v51 = vpop.eup %3327  ;;  %v1185_v47 = vsel %vm1184_vm7, %v3326_v17, %v1181_v50  ;;  %v4497_v50 = vld [vmem:[#allocation12 + $0x18] sm:$0xff] }
 0x2a4   :  { %v1138_v45 = vmul.f32 %v3328_v51, %v1137_v49  ;;  %v1190_v53 = vsel %vm1187_vm8, %v1189_v58, %v1185_v47  ;;  %v4499_v51 = vld [vmem:[#allocation14 + $0x18] sm:$0xff]  ;;  %v4511_v47 = vld [vmem:[#allocation14 + $0x10] sm:$0xff] }
 0x2a5   :  { %v1264_v57 = vmul.f32 %v1262_v30, %v1190_v53  ;;  %v4501_v58 = vld [vmem:[#allocation17 + $0x18] sm:$0xff]  ;;  %v4518_v53 = vld [vmem:[#allocation12 + $0x8] sm:$0xff] }
 0x2a6   :  { %v1140_v55 = vadd.f32 %v1139_v46, %v1138_v45  ;;  %v4507_v45 = vld [vmem:[#allocation12 + $0x10] sm:$0xff]  ;;  %v4509_v46 = vld [vmem:[#allocation18 + $0x18] sm:$0xff] }
 0x2a7   :  { %v1265_v56 = vadd.f32 %v1264_v57, %v1239_v10  ;;  %v4526_v57 = vld [vmem:[#allocation17 + $0x8] sm:$0xff] }
 0x2a8   :  { %1141 = vst.msk [vmem:[#allocation6] sm:$0xff] %vm339_vm2, %v1140_v55  ;;  %v4524_v55 = vld [vmem:[#allocation14 + $0x8] sm:$0xff] }
 0x2a9   :  { %3329 = vtanh.f32 %v1265_v56  ;;  %v4532_v56 = vld [vmem:[#allocation12] sm:$0xff] }
 0x2af   :  { %v4447_v0 = vld [vmem:[#allocation6] sm:$0xff]  ;;  %v3330_v13 = vpop.eup %3329 }
 0x2b0   :  { %3184 = vmatmul.msk.f32.vlgmr.msra.gmra.mxu1 %vm339_vm2, %v4447_v0  ;;  %3187 = vmatmul.msk.f32.vlgmr.msrb.gmra.mxu3 %vm339_vm2, %v4447_v0  ;;  %v1268_v12 = vmul.f32 %v3330_v13, %v1267_v63  ;;  %v4542_v63 = vld [vmem:[#allocation17] sm:$0xff] }
 0x2b1   :  { %1585 = vmatpush.msra.mxu1 %v4445_v62  ;;  %1648 = vmatpush.msrb.mxu3 %v4497_v50 }
 0x2b2   :  { %v1270_v14 = vadd.f32 %v1269_v3, %v1268_v12  ;;  %v4550_v3 = vld [vmem:[#allocation18] sm:$0xff] }
 0x2b3   :  { %1586 = vmatpush.msra.mxu1 %v4456_v11  ;;  %1649 = vmatpush.msrb.mxu3 %v4507_v45 }
 0x2b4   :  { %1271 = vst.msk [vmem:[#allocation5] sm:$0xff] %vm339_vm2, %v1270_v14  ;;  %3185 = vmatmul.msk.f32.vlgmr.msra.gmra.mxu2 %vm339_vm2, %v1270_v14  ;;  %3188 = vmatmul.msk.f32.vlgmr.msrb.gmra.mxu0 %vm339_vm2, %v1270_v14 }
 0x2b5   :  { %1587 = vmatpush.msra.mxu1 %v4464_v27  ;;  %1625 = vmatpush.msra.mxu2 %v4501_v58 }
 0x2b6   :  { %1696 = vmatpush.msrb.mxu0 %v4509_v46  ;;  %1650 = vmatpush.msrb.mxu3 %v4518_v53 }
 0x2b7   :  { %1588 = vmatpush.msra.mxu1 %v4473_v31  ;;  %1626 = vmatpush.msra.mxu2 %v4516_v52 }
 0x2b8   :  { %3190 = vmatmul.msk.f32.vlgmr.msrb.gmra.mxu1 %vm339_vm2, %v1270_v14  ;;  %1697 = vmatpush.msrb.mxu0 %v4520_v54  ;;  %v4552_v14 = vld [vmem:[#allocation20 + $0x18] sm:$0xff] }
 0x2b9   :  { %1716 = vmatpush.msrb.mxu1 %v4499_v51  ;;  %1627 = vmatpush.msra.mxu2 %v4526_v57 }
 0x2ba   :  { %1698 = vmatpush.msrb.mxu0 %v4534_v29  ;;  %1651 = vmatpush.msrb.mxu3 %v4532_v56 }
 0x2bb   :  { %v4477_v4 = vld [vmem:[#allocation5] sm:$0xff]  ;;  %1717 = vmatpush.msrb.mxu1 %v4511_v47  ;;  %1628 = vmatpush.msra.mxu2 %v4542_v63 }
 0x2bc   :  { %3191 = vmatmul.msk.f32.vlgmr.msrb.gmra.mxu2 %vm339_vm2, %v4447_v0  ;;  %3192 = vmatmul.msk.f32.vlgmr.msra.gmra.mxu3 %vm339_vm2, %v4477_v4 }
 0x2bd   :  { %3194 = vmatmul.msk.f32.vlgmr.msra.gmra.mxu0 %vm339_vm2, %v4477_v4  ;;  %1718 = vmatpush.msrb.mxu1 %v4524_v55 }
 0x2be   :  { %1699 = vmatpush.msrb.mxu0 %v4550_v3  ;;  %1784 = vmatpush.msra.mxu3 %v4552_v14 }
 0x2bf   :  { %1719 = vmatpush.msrb.mxu1 %v4536_v26 }
 0x2c0   :  { %3196 = vmatmul.msk.f32.vlgmr.msra.gmra.mxu1 %vm339_vm2, %v4477_v4  ;;  %1822 = vmatpush.msra.mxu0 %v4377_v1 }
 0x2c1   :  { %1868 = vmatpush.msra.mxu1 %v4382_v2 }
 0x2c2   :  { %1823 = vmatpush.msra.mxu0 %v4387_v16 }
 0x2c3   :  { %1869 = vmatpush.msra.mxu1 %v4396_v19 }
 0x2c4   :  { %1824 = vmatpush.msra.mxu0 %v4405_v28 }
 0x2c5   :  { %1870 = vmatpush.msra.mxu1 %v4410_v34 }
 0x2c6   :  { %1825 = vmatpush.msra.mxu0 %v4417_v25 }
 0x2c7   :  { %1871 = vmatpush.msra.mxu1 %v4422_v5 }
 0x32d   :  { %v1301_v37 = vpop.f32.mrf.mxu1 }
 0x331   :  { %v1392_v22 = vpop.f32.mrf.mxu0 }
 0x333   :  { %v1372_v32 = vpop.f32.mrf.mxu3 }
 0x334   :  { %v1393_v23 = vadd.f32 %v1392_v22, %v1372_v32 }
 0x336   :  { %v1395_v59 = vadd.f32 %v4297_v8, %v1393_v23  ;;  %v4558_v23 = vld [vmem:[#allocation15 + $0x18] sm:$0xff] }
 0x337   :  { %v1324_v7 = vpop.f32.mrf.mxu2  ;;  %1760 = vmatpush.msrb.mxu2 %v4558_v23 }
 0x338   :  { %v3189_v43 = vmul.f32 -1.442695, %v1395_v59  ;;  %v1325_v15 = vadd.f32 %v1324_v7, %v1301_v37  ;;  %v4560_v59 = vld [vmem:[#allocation20 + $0x10] sm:$0xff]  ;;  %v1436_v37 = vpop.f32.mrf.mxu1 }
 0x339   :  { %v4564_v7 = vld [vmem:[#allocation15 + $0x10] sm:$0xff]  ;;  %1785 = vmatpush.msra.mxu3 %v4560_v59 }
 0x33a   :  { %3331 = vpow2.f32 %v3189_v43  ;;  %v1327_v17 = vadd.f32 %v4294_v6, %v1325_v15  ;;  %v1544_v20 = vpop.f32.mrf.mxu0  ;;  %1761 = vmatpush.msrb.mxu2 %v4564_v7 }
 0x33b   :  { %v1547_v21 = vadd.f32 %v1544_v20, %v1522_v18 }
 0x33c   :  { %v3186_v24 = vmul.f32 -1.442695, %v1327_v17  ;;  %v4569_v17 = vld [vmem:[#allocation20 + $0x8] sm:$0xff] }
 0x33d   :  { %v3195_v33 = vmul.f32 -1.442695, %v1547_v21  ;;  %1786 = vmatpush.msra.mxu3 %v4569_v17 }
 0x33e   :  { %3333 = vpow2.f32 %v3186_v24  ;;  %v4576_v24 = vld [vmem:[#allocation15 + $0x8] sm:$0xff] }
 0x33f   :  { %3335 = vpow2.f32 %v3195_v33  ;;  %v1498_v39 = vpop.f32.mrf.mxu3  ;;  %1762 = vmatpush.msrb.mxu2 %v4576_v24 }
 0x340   :  { %v3332_v36 = vpop.eup %3331  ;;  %v1501_v41 = vadd.f32 %v1498_v39, %v1473_v38  ;;  %v4581_v38 = vld [vmem:[#allocation20] sm:$0xff] }
 0x341   :  { %v4489_v40 = vadd.f32 1.0, %v3332_v36  ;;  %v1460_v36 = vpop.f32.mrf.mxu2  ;;  %1787 = vmatpush.msra.mxu3 %v4581_v38 }
 0x342   :  { %v3193_v42 = vmul.f32 -1.442695, %v1501_v41 }
 0x343   :  { %3337 = vrcp.f32 %v4489_v40  ;;  %vm1405_vm3 = vweird.f32 %v4489_v40 }
 0x344   :  { %v3334_v44 = vpop.eup %3333  ;;  %3339 = vpow2.f32 %v3193_v42  ;;  %v1437_v42 = vadd.f32 %v4308_v35, %v1436_v37 }
 0x345   :  { %v3336_v48 = vpop.eup %3335  ;;  %v4492_v49 = vadd.f32 1.0, %v3334_v44 }
 0x346   :  { %v4494_v6 = vadd.f32 1.0, %v3336_v48 }
 0x347   :  { %3341 = vrcp.f32 %v4492_v49  ;;  %v1343_v15 = vand.u32 2147483648, %v4492_v49  ;;  %v1341_v21 = vand.u32 2147483647, %v4492_v49  ;;  %vm1337_vm14 = vweird.f32 %v4492_v49 }
 0x348   :  { %3343 = vrcp.f32 %v4494_v6  ;;  %vm1557_vm11 = vweird.f32 %v4494_v6 }
 0x349   :  { %v4503_v30 = vpop.eup %3337  ;;  %v1344_v44 = vor.u32 1.1754944e-38, %v1343_v15  ;;  %vm1342_vm0 = vcmp.eq.f32.partialorder %v1341_v21, 8.507059e+37 }
 0x34a   :  { %v3340_v9 = vpop.eup %3339  ;;  %v1401_v10 = vmul.f32 %v4503_v30, %v4489_v40  ;;  %vm1406_vm1 = vweird.f32 %v4503_v30 }
 0x34b   :  { %v4538_v61 = vadd.f32 1.0, %v3340_v9  ;;  %vm4605_vm5 = vmor %vm1405_vm3, %vm1406_vm1 }
 0x34c   :  { %v1402_v32 = vsub.f32 1.0, %v1401_v10 }
 0x34d   :  { %v3342_v13 = vpop.eup %3341  ;;  %3345 = vrcp.f32 %v4538_v61  ;;  %v1517_v15 = vand.u32 2147483648, %v4538_v61  ;;  %v1515_v21 = vand.u32 2147483647, %v4538_v61  ;;  %vm1511_vm6 = vweird.f32 %v4538_v61 }
 0x34e   :  { %v1333_v12 = vmul.f32 %v3342_v13, %v4492_v49  ;;  %v4554_v22 = vpop.eup %3343  ;;  %vm1338_vm13 = vweird.f32 %v3342_v13  ;;  %v1403_v33 = vmul.f32 %v4503_v30, %v1402_v32  ;;  %v1461_v49 = vadd.f32 %v4303_v60, %v1460_v36 }
 0x34f   :  { %v1553_v18 = vmul.f32 %v4554_v22, %v4494_v6  ;;  %vm1339_vm15 = vmor %vm1337_vm14, %vm1338_vm13  ;;  %v1411_v60 = vand.u32 2147483648, %v4489_v40  ;;  %vm1516_vm9 = vcmp.eq.f32.partialorder %v1515_v21, 8.507059e+37  ;;  %vm1558_vm10 = vweird.f32 %v4554_v22 }
 0x350   :  { %v1334_v43 = vsub.f32 1.0, %v1333_v12  ;;  %v4594_v12 = vld [vmem:[#allocation15] sm:$0xff]  ;;  %v1404_v37 = vadd.f32 %v4503_v30, %v1403_v33  ;;  %vm1559_vm12 = vmor %vm1557_vm11, %vm1558_vm10 }
 0x351   :  { %v1554_v9 = vsub.f32 1.0, %v1553_v18  ;;  %1763 = vmatpush.msrb.mxu2 %v4594_v12  ;;  %v1409_v18 = vand.u32 2147483647, %v4489_v40  ;;  %v1412_v40 = vor.u32 1.1754944e-38, %v1411_v60 }
 0x352   :  { %v1335_v20 = vmul.f32 %v3342_v13, %v1334_v43 }
 0x353   :  { %v3346_v39 = vpop.eup %3345  ;;  %v1555_v36 = vmul.f32 %v4554_v22, %v1554_v9  ;;  %vm1410_vm8 = vcmp.eq.f32.partialorder %v1409_v18, 8.507059e+37 }
 0x354   :  { %v1336_v41 = vadd.f32 %v3342_v13, %v1335_v20  ;;  %v1507_v48 = vmul.f32 %v3346_v39, %v4538_v61  ;;  %vm1512_vm4 = vweird.f32 %v3346_v39 }
 0x355   :  { %vm1513_vm7 = vmor %vm1511_vm6, %vm1512_vm4 }
 0x356   :  { %v1340_v10 = vsel %vm1339_vm15, %v3342_v13, %v1336_v41  ;;  %v1508_v43 = vsub.f32 1.0, %v1507_v48  ;;  %v1590_v41 = vpop.f32.mrf.mxu1  ;;  %v1408_v48 = vsel %vm4605_vm5, %v4503_v30, %v1404_v37  ;;  %v1563_v37 = vand.u32 2147483648, %v4494_v6 }
 0x357   :  { %v1345_v32 = vsel %vm1342_vm0, %v1344_v44, %v1340_v10  ;;  %v1413_v30 = vsel %vm1410_vm8, %v1412_v40, %v1408_v48 }
 0x358   :  { %v1463_v13 = vmul.f32 %v1461_v49, %v1345_v32  ;;  %v1509_v20 = vmul.f32 %v3346_v39, %v1508_v43  ;;  %v1518_v49 = vor.u32 1.1754944e-38, %v1517_v15  ;;  %v4617_v32 = vld [vmem:[%s5176_s10] ss:$0 sm:$0xff]  ;;  %v1556_v43 = vadd.f32 %v4554_v22, %v1555_v36 }
 0x359   :  { %v1591_v9 = vadd.f32 %v4617_v32, %v1590_v41  ;;  %v1568_v15 = vld [vmem:[#allocation4 + $0x20] sm:$0xff]  ;;  %v1564_v21 = vor.u32 1.1754944e-38, %v1563_v37  ;;  %v1468_v41 = vmul.f32 %v1413_v30, %v4447_v0 }
 0x35a   :  { %v1464_v44 = vadd.f32 %v1463_v13, %v1437_v42  ;;  %v1510_v10 = vadd.f32 %v3346_v39, %v1509_v20  ;;  %v1561_v13 = vand.u32 2147483647, %v4494_v6  ;;  %v1466_v20 = vsub.f32 1.0, %v1413_v30 }
 0x35c   :  { %3347 = vtanh.f32 %v1464_v44  ;;  %v1514_v42 = vsel %vm1513_vm7, %v3346_v39, %v1510_v10  ;;  %v1560_v39 = vsel %vm1559_vm12, %v4554_v22, %v1556_v43  ;;  %vm1562_vm13 = vcmp.eq.f32.partialorder %v1561_v13, 8.507059e+37 }
 0x35d   :  { %v1519_v61 = vsel %vm1516_vm9, %v1518_v49, %v1514_v42  ;;  %v1565_v48 = vsel %vm1562_vm13, %v1564_v21, %v1560_v39 }
 0x35e   :  { %v1593_v60 = vmul.f32 %v1591_v9, %v1519_v61  ;;  %v1596_v10 = vsub.f32 1.0, %v1565_v48  ;;  %v1598_v49 = vmul.f32 %v1565_v48, %v4477_v4  ;;  %v1851_v61 = vld [vmem:[#allocation3 + $0x18] sm:$0xff] }
 0x360   :  { %v1594_v33 = vadd.f32 %v1593_v60, %v1568_v15 }
 0x362   :  { %v3348_v18 = vpop.eup %3347  ;;  %3349 = vtanh.f32 %v1594_v33 }
 0x363   :  { %v1467_v36 = vmul.f32 %v3348_v18, %v1466_v20 }
 0x365   :  { %v1469_v44 = vadd.f32 %v1468_v41, %v1467_v36 }
 0x367   :  { %1470 = vst.msk [vmem:[#allocation6] sm:$0xff] %vm339_vm2, %v1469_v44 }
 0x368   :  { %v3350_v40 = vpop.eup %3349 }
 0x369   :  { %v1597_v6 = vmul.f32 %v3350_v40, %v1596_v10 }
 0x36b   :  { %v1599_v9 = vadd.f32 %v1598_v49, %v1597_v6 }
 0x36d   :  { %1600 = vst.msk [vmem:[#allocation5] sm:$0xff] %vm339_vm2, %v1599_v9  ;;  %3198 = vmatmul.msk.f32.vlgmr.msrb.gmra.mxu3 %vm339_vm2, %v1599_v9  ;;  %3201 = vmatmul.msk.f32.vlgmr.msrb.gmra.mxu1 %vm339_vm2, %v1599_v9 }
 0x36e   :  { %v4632_v22 = vld [vmem:[#allocation6] sm:$0xff]  ;;  %1954 = vmatpush.msrb.mxu3 %v4501_v58  ;;  %2025 = vmatpush.msrb.mxu1 %v4509_v46 }
 0x36f   :  { %3197 = vmatmul.msk.f32.vlgmr.msra.gmra.mxu2 %vm339_vm2, %v4632_v22  ;;  %3200 = vmatmul.msk.f32.vlgmr.msrb.gmra.mxu0 %vm339_vm2, %v4632_v22 }
 0x370   :  { %1914 = vmatpush.msra.mxu2 %v4445_v62  ;;  %1977 = vmatpush.msrb.mxu0 %v4497_v50 }
 0x371   :  { %1955 = vmatpush.msrb.mxu3 %v4516_v52  ;;  %2026 = vmatpush.msrb.mxu1 %v4520_v54 }
 0x372   :  { %1915 = vmatpush.msra.mxu2 %v4456_v11  ;;  %1978 = vmatpush.msrb.mxu0 %v4507_v45 }
 0x373   :  { %1956 = vmatpush.msrb.mxu3 %v4526_v57  ;;  %2027 = vmatpush.msrb.mxu1 %v4534_v29 }
 0x374   :  { %1916 = vmatpush.msra.mxu2 %v4464_v27  ;;  %1979 = vmatpush.msrb.mxu0 %v4518_v53  ;;  %v4648_v0 = vld [vmem:[#allocation5] sm:$0xff] }
 0x375   :  { %3204 = vmatmul.msk.f32.vlgmr.msra.gmra.mxu3 %vm339_vm2, %v4632_v22  ;;  %3207 = vmatmul.msk.f32.vlgmr.msra.gmra.mxu1 %vm339_vm2, %v4648_v0 }
 0x376   :  { %1917 = vmatpush.msra.mxu2 %v4473_v31  ;;  %1980 = vmatpush.msrb.mxu0 %v4532_v56 }
 0x377   :  { %3203 = vmatmul.msk.f32.vlgmr.msrb.gmra.mxu2 %vm339_vm2, %v1599_v9  ;;  %3205 = vmatmul.msk.f32.vlgmr.msra.gmra.mxu0 %vm339_vm2, %v4648_v0 }
 0x378   :  { %2045 = vmatpush.msrb.mxu2 %v4499_v51  ;;  %2113 = vmatpush.msra.mxu0 %v4552_v14 }
 0x379   :  { %1957 = vmatpush.msrb.mxu3 %v4542_v63  ;;  %2028 = vmatpush.msrb.mxu1 %v4550_v3 }
 0x37a   :  { %2046 = vmatpush.msrb.mxu2 %v4511_v47  ;;  %2114 = vmatpush.msra.mxu0 %v4560_v59 }
 0x37b   :  { %2089 = vmatpush.msra.mxu3 %v4558_v23  ;;  %2151 = vmatpush.msra.mxu1 %v4377_v1 }
 0x37c   :  { %2047 = vmatpush.msrb.mxu2 %v4524_v55  ;;  %2115 = vmatpush.msra.mxu0 %v4569_v17 }
 0x37d   :  { %2090 = vmatpush.msra.mxu3 %v4564_v7  ;;  %2152 = vmatpush.msra.mxu1 %v4387_v16 }
 0x37e   :  { %2116 = vmatpush.msra.mxu0 %v4581_v38  ;;  %2048 = vmatpush.msrb.mxu2 %v4536_v26 }
 0x37f   :  { %3209 = vmatmul.msk.f32.vlgmr.msra.gmra.mxu2 %vm339_vm2, %v4648_v0  ;;  %2091 = vmatpush.msra.mxu3 %v4576_v24 }
 0x380   :  { %2197 = vmatpush.msra.mxu2 %v4382_v2  ;;  %2153 = vmatpush.msra.mxu1 %v4405_v28 }
 0x381   :  { %2092 = vmatpush.msra.mxu3 %v4594_v12 }
 0x382   :  { %2198 = vmatpush.msra.mxu2 %v4396_v19  ;;  %2154 = vmatpush.msra.mxu1 %v4417_v25  ;;  %v1802_v19 = vld [vmem:[#allocation2 + $0x18] sm:$0xff] }
 0x383   :  { %v4686_v25 = vld [vmem:[#allocation21] ss:$0 sm:$0xff] }
 0x384   :  { %2199 = vmatpush.msra.mxu2 %v4410_v34 }
 0x386   :  { %2200 = vmatpush.msra.mxu2 %v4422_v5 }
 0x3ea   :  { %v1721_v1 = vpop.f32.mrf.mxu1 }
 0x3ec   :  { %v1701_v16 = vpop.f32.mrf.mxu0 }
 0x3ed   :  { %v1722_v4 = vadd.f32 %v1721_v1, %v1701_v16 }
 0x3ef   :  { %v1724_v42 = vadd.f32 %v4297_v8, %v1722_v4 }
 0x3f0   :  { %v1653_v30 = vpop.f32.mrf.mxu3 }
 0x3f1   :  { %v3202_v43 = vmul.f32 -1.442695, %v1724_v42 }
 0x3f2   :  { %v1630_v2 = vpop.f32.mrf.mxu2  ;;  %v1873_v37 = vpop.f32.mrf.mxu1 }
 0x3f3   :  { %3351 = vpow2.f32 %v3202_v43  ;;  %v1654_v28 = vadd.f32 %v1653_v30, %v1630_v2  ;;  %v1876_v60 = vadd.f32 %v1873_v37, %v1851_v61  ;;  %v4703_v37 = vld [vmem:[#allocation26] ss:$0 sm:$0xff] }
 0x3f4   :  { %v1827_v13 = vpop.f32.mrf.mxu0 }
 0x3f5   :  { %v1656_v34 = vadd.f32 %v4686_v25, %v1654_v28  ;;  %v1830_v5 = vadd.f32 %v1827_v13, %v1802_v19  ;;  %v3208_v15 = vmul.f32 -1.442695, %v1876_v60 }
 0x3f7   :  { %v3199_v20 = vmul.f32 -1.442695, %v1656_v34  ;;  %v3206_v33 = vmul.f32 -1.442695, %v1830_v5  ;;  %3353 = vpow2.f32 %v3208_v15 }
 0x3f8   :  { %v1789_v4 = vpop.f32.mrf.mxu3 }
 0x3f9   :  { %v3352_v8 = vpop.eup %3351  ;;  %3355 = vpow2.f32 %v3199_v20  ;;  %v1790_v60 = vadd.f32 %v4703_v37, %v1789_v4 }
 0x3fa   :  { %v4689_v18 = vadd.f32 1.0, %v3352_v8  ;;  %3357 = vpow2.f32 %v3206_v33  ;;  %v1765_v6 = vpop.f32.mrf.mxu2 }
 0x3fb   :  { %v1766_v15 = vadd.f32 %v4308_v35, %v1765_v6 }
 0x3fc   :  { %3359 = vrcp.f32 %v4689_v18  ;;  %vm1734_vm1 = vweird.f32 %v4689_v18 }
 0x3fd   :  { %v3354_v39 = vpop.eup %3353 }
 0x3fe   :  { %v4692_v36 = vadd.f32 1.0, %v3354_v39 }
 0x3ff   :  { %v3356_v21 = vpop.eup %3355 }
 0x400   :  { %v3358_v41 = vpop.eup %3357  ;;  %v1660_v44 = vadd.f32 1.0, %v3356_v21  ;;  %3361 = vrcp.f32 %v4692_v36  ;;  %v1740_v21 = vand.u32 2147483648, %v4689_v18  ;;  %vm1886_vm11 = vweird.f32 %v4692_v36 }
 0x401   :  { %v1834_v48 = vadd.f32 1.0, %v3358_v41 }
 0x402   :  { %3363 = vrcp.f32 %v1660_v44  ;;  %v4695_v10 = vpop.eup %3359  ;;  %v1672_v61 = vand.u32 2147483648, %v1660_v44  ;;  %v1670_v13 = vand.u32 2147483647, %v1660_v44  ;;  %vm1666_vm15 = vweird.f32 %v1660_v44 }
 0x403   :  { %3365 = vrcp.f32 %v1834_v48  ;;  %v1730_v40 = vmul.f32 %v4695_v10, %v4689_v18  ;;  %v1846_v20 = vand.u32 2147483648, %v1834_v48  ;;  %v1844_v39 = vand.u32 2147483647, %v1834_v48 }
 0x404   :  { %vm1671_vm4 = vcmp.eq.f32.partialorder %v1670_v13, 8.507059e+37  ;;  %vm1840_vm5 = vweird.f32 %v1834_v48  ;;  %vm1735_vm6 = vweird.f32 %v4695_v10 }
 0x405   :  { %v1731_v43 = vsub.f32 1.0, %v1730_v40  ;;  %v1673_v40 = vor.u32 1.1754944e-38, %v1672_v61  ;;  %v1847_v6 = vor.u32 1.1754944e-38, %v1846_v20  ;;  %vm1845_vm8 = vcmp.eq.f32.partialorder %v1844_v39, 8.507059e+37  ;;  %vm1736_vm10 = vmor %vm1734_vm1, %vm1735_vm6 }
 0x406   :  { %v4699_v49 = vpop.eup %3361  ;;  %v1892_v61 = vand.u32 2147483648, %v4692_v36 }
 0x407   :  { %v1882_v1 = vmul.f32 %v4699_v49, %v4692_v36  ;;  %v1732_v5 = vmul.f32 %v4695_v10, %v1731_v43  ;;  %vm1887_vm9 = vweird.f32 %v4699_v49 }
 0x408   :  { %v3364_v9 = vpop.eup %3363  ;;  %vm1888_vm12 = vmor %vm1886_vm11, %vm1887_vm9 }
 0x409   :  { %v1662_v16 = vmul.f32 %v3364_v9, %v1660_v44  ;;  %v3366_v42 = vpop.eup %3365  ;;  %v1883_v28 = vsub.f32 1.0, %v1882_v1  ;;  %vm1667_vm14 = vweird.f32 %v3364_v9  ;;  %v1919_v1 = vpop.f32.mrf.mxu2  ;;  %v1733_v35 = vadd.f32 %v4695_v10, %v1732_v5 }
 0x40a   :  { %v1836_v2 = vmul.f32 %v3366_v42, %v1834_v48  ;;  %vm1841_vm0 = vweird.f32 %v3366_v42  ;;  %vm1668_vm3 = vmor %vm1666_vm15, %vm1667_vm14  ;;  %v1741_v5 = vor.u32 1.1754944e-38, %v1740_v21 }
 0x40b   :  { %v1663_v30 = vsub.f32 1.0, %v1662_v16  ;;  %v1884_v41 = vmul.f32 %v4699_v49, %v1883_v28  ;;  %vm1842_vm7 = vmor %vm1840_vm5, %vm1841_vm0 }
 0x40c   :  { %v1837_v34 = vsub.f32 1.0, %v1836_v2  ;;  %v1920_v2 = vadd.f32 %v4617_v32, %v1919_v1 }
 0x40d   :  { %v1664_v19 = vmul.f32 %v3364_v9, %v1663_v30  ;;  %v1885_v28 = vadd.f32 %v4699_v49, %v1884_v41 }
 0x40e   :  { %v1838_v8 = vmul.f32 %v3366_v42, %v1837_v34  ;;  %v1897_v34 = vld [vmem:[#allocation4 + $0x18] sm:$0xff] }
 0x40f   :  { %v1665_v33 = vadd.f32 %v3364_v9, %v1664_v19 }
 0x410   :  { %v1839_v4 = vadd.f32 %v3366_v42, %v1838_v8  ;;  %v1893_v8 = vor.u32 1.1754944e-38, %v1892_v61 }
 0x411   :  { %v1669_v16 = vsel %vm1668_vm3, %v3364_v9, %v1665_v33  ;;  %v1738_v9 = vand.u32 2147483647, %v4689_v18  ;;  %v1889_v33 = vsel %vm1888_vm12, %v4699_v49, %v1885_v28  ;;  %v4794_v49 = vld [vmem:[%s5202_s13 + $0x18] sm:$0xff]  ;;  %v4813_v28 = vld [vmem:[%s5202_s13] sm:$0xff] }
 0x412   :  { %v1674_v44 = vsel %vm1671_vm4, %v1673_v40, %v1669_v16  ;;  %v1843_v30 = vsel %vm1842_vm7, %v3366_v42, %v1839_v4  ;;  %v1890_v42 = vand.u32 2147483647, %v4692_v36 }
 0x413   :  { %v1792_v43 = vmul.f32 %v1790_v60, %v1674_v44  ;;  %v1848_v48 = vsel %vm1845_vm8, %v1847_v6, %v1843_v30  ;;  %v1737_v60 = vsel %vm1736_vm10, %v4695_v10, %v1733_v35  ;;  %vm1739_vm13 = vcmp.eq.f32.partialorder %v1738_v9, 8.507059e+37  ;;  %v4799_v35 = vld [vmem:[%s5202_s13 + $0x10] sm:$0xff]  ;;  %v4807_v30 = vld [vmem:[%s5202_s13 + $0x8] sm:$0xff] }
 0x414   :  { %v1922_v13 = vmul.f32 %v1920_v2, %v1848_v48  ;;  %v1742_v39 = vsel %vm1739_vm13, %v1741_v5, %v1737_v60  ;;  %vm1891_vm14 = vcmp.eq.f32.partialorder %v1890_v42, 8.507059e+37 }
 0x415   :  { %v1793_v19 = vadd.f32 %v1792_v43, %v1766_v15  ;;  %v1894_v18 = vsel %vm1891_vm14, %v1893_v8, %v1889_v33  ;;  %v1795_v15 = vsub.f32 1.0, %v1742_v39  ;;  %v1797_v36 = vmul.f32 %v1742_v39, %v4632_v22  ;;  %v4826_v8 = vld [vmem:[%s5201_s11 + $0x18] sm:$0xff]  ;;  %v4831_v39 = vld [vmem:[%s5201_s11 + $0x10] sm:$0xff] }
 0x416   :  { %v1923_v20 = vadd.f32 %v1922_v13, %v1897_v34  ;;  %v1925_v1 = vsub.f32 1.0, %v1894_v18  ;;  %v1927_v21 = vmul.f32 %v1894_v18, %v4648_v0 }
 0x417   :  { %3367 = vtanh.f32 %v1793_v19 }
 0x418   :  { %3369 = vtanh.f32 %v1923_v20 }
 0x41d   :  { %v3368_v41 = vpop.eup %3367 }
 0x41e   :  { %v1796_v40 = vmul.f32 %v3368_v41, %v1795_v15  ;;  %v3370_v10 = vpop.eup %3369 }
 0x41f   :  { %v1926_v4 = vmul.f32 %v3370_v10, %v1925_v1 }
 0x420   :  { %v1798_v16 = vadd.f32 %v1797_v36, %v1796_v40  ;;  %v4835_v36 = vld [vmem:[#allocation24] ss:$0 sm:$0xff] }
 0x421   :  { %v1928_v44 = vadd.f32 %v1927_v21, %v1926_v4 }
 0x422   :  { %1799 = vst.msk [vmem:[#allocation6] sm:$0xff] %vm339_vm2, %v1798_v16  ;;  %v4842_v16 = vld [vmem:[%s5201_s11 + $0x8] sm:$0xff] }
 0x423   :  { %1929 = vst.msk [vmem:[#allocation5] sm:$0xff] %vm339_vm2, %v1928_v44  ;;  %3211 = vmatmul.msk.f32.vlgmr.msrb.gmra.mxu0 %vm339_vm2, %v1928_v44  ;;  %3214 = vmatmul.msk.f32.vlgmr.msrb.gmra.mxu2 %vm339_vm2, %v1928_v44 }
 0x424   :  { %2354 = vmatpush.msrb.mxu2 %v4509_v46  ;;  %2283 = vmatpush.msrb.mxu0 %v4501_v58 }
 0x426   :  { %2355 = vmatpush.msrb.mxu2 %v4520_v54  ;;  %2284 = vmatpush.msrb.mxu0 %v4516_v52 }
 0x428   :  { %2356 = vmatpush.msrb.mxu2 %v4534_v29  ;;  %2285 = vmatpush.msrb.mxu0 %v4526_v57 }
 0x429   :  { %v4735_v22 = vld [vmem:[#allocation6] sm:$0xff] }
 0x42a   :  { %3210 = vmatmul.msk.f32.vlgmr.msrb.gmra.mxu3 %vm339_vm2, %v4735_v22  ;;  %3213 = vmatmul.msk.f32.vlgmr.msrb.gmra.mxu1 %vm339_vm2, %v4735_v22  ;;  %v4743_v0 = vld [vmem:[#allocation5] sm:$0xff] }
 0x42b   :  { %2243 = vmatpush.msrb.mxu3 %v4445_v62  ;;  %2306 = vmatpush.msrb.mxu1 %v4497_v50 }
 0x42c   :  { %3217 = vmatmul.msk.f32.vlgmr.msra.gmra.mxu0 %vm339_vm2, %v4735_v22  ;;  %3220 = vmatmul.msk.f32.vlgmr.msra.gmra.mxu2 %vm339_vm2, %v4743_v0 }
 0x42d   :  { %2244 = vmatpush.msrb.mxu3 %v4456_v11  ;;  %2307 = vmatpush.msrb.mxu1 %v4507_v45 }
 0x42e   :  { %2357 = vmatpush.msrb.mxu2 %v4550_v3  ;;  %2286 = vmatpush.msrb.mxu0 %v4542_v63 }
 0x42f   :  { %2245 = vmatpush.msrb.mxu3 %v4464_v27  ;;  %2308 = vmatpush.msrb.mxu1 %v4518_v53  ;;  %v2131_v53 = vld [vmem:[#allocation2 + $0x10] sm:$0xff] }
 0x430   :  { %2418 = vmatpush.msra.mxu0 %v4558_v23  ;;  %2480 = vmatpush.msra.mxu2 %v4826_v8 }
 0x431   :  { %2246 = vmatpush.msrb.mxu3 %v4473_v31  ;;  %2309 = vmatpush.msrb.mxu1 %v4532_v56  ;;  %v4776_v31 = vld [vmem:[#allocation23] ss:$0 sm:$0xff] }
 0x432   :  { %3216 = vmatmul.msk.f32.vlgmr.msra.gmra.mxu3 %vm339_vm2, %v1928_v44  ;;  %3218 = vmatmul.msk.f32.vlgmr.msra.gmra.mxu1 %vm339_vm2, %v4743_v0 }
 0x433   :  { %2374 = vmatpush.msra.mxu3 %v4499_v51  ;;  %2442 = vmatpush.msra.mxu1 %v4552_v14 }
 0x434   :  { %2419 = vmatpush.msra.mxu0 %v4564_v7  ;;  %2481 = vmatpush.msra.mxu2 %v4831_v39 }
 0x435   :  { %2375 = vmatpush.msra.mxu3 %v4511_v47  ;;  %2443 = vmatpush.msra.mxu1 %v4560_v59  ;;  %v2180_v47 = vld [vmem:[#allocation3 + $0x10] sm:$0xff] }
 0x436   :  { %2420 = vmatpush.msra.mxu0 %v4576_v24  ;;  %2482 = vmatpush.msra.mxu2 %v4842_v16 }
 0x437   :  { %2376 = vmatpush.msra.mxu3 %v4524_v55  ;;  %2444 = vmatpush.msra.mxu1 %v4569_v17 }
 0x438   :  { %2421 = vmatpush.msra.mxu0 %v4594_v12 }
 0x439   :  { %2377 = vmatpush.msra.mxu3 %v4536_v26  ;;  %2445 = vmatpush.msra.mxu1 %v4581_v38 }
 0x43a   :  { %3222 = vmatmul.msk.f32.vlgmr.msrb.gmra.mxu3 %vm339_vm2, %v4743_v0 }
 0x43b   :  { %2526 = vmatpush.msrb.mxu3 %v4794_v49 }
 0x43d   :  { %2527 = vmatpush.msrb.mxu3 %v4799_v35 }
 0x43f   :  { %2528 = vmatpush.msrb.mxu3 %v4807_v30 }
 0x441   :  { %2529 = vmatpush.msrb.mxu3 %v4813_v28 }
 0x4a0   :  { %v1982_v58 = vpop.f32.mrf.mxu0 }
 0x4a6   :  { %v2050_v62 = vpop.f32.mrf.mxu2 }
 0x4a7   :  { %v2030_v11 = vpop.f32.mrf.mxu1 }
 0x4a8   :  { %v2051_v27 = vadd.f32 %v2050_v62, %v2030_v11 }
 0x4a9   :  { %v2118_v48 = vpop.f32.mrf.mxu0 }
 0x4aa   :  { %v2053_v50 = vadd.f32 %v4776_v31, %v2051_v27  ;;  %v2119_v5 = vadd.f32 %v4703_v37, %v2118_v48 }
 0x4ac   :  { %v3215_v51 = vmul.f32 -1.442695, %v2053_v50 }
 0x4ad   :  { %v1959_v45 = vpop.f32.mrf.mxu3 }
 0x4ae   :  { %3371 = vpow2.f32 %v3215_v51  ;;  %v1983_v46 = vadd.f32 %v1982_v58, %v1959_v45  ;;  %v4853_v51 = vld [vmem:[%s5201_s11] sm:$0xff] }
 0x4af   :  { %v2202_v52 = vpop.f32.mrf.mxu2  ;;  %v2156_v54 = vpop.f32.mrf.mxu1  ;;  %2483 = vmatpush.msra.mxu2 %v4853_v51 }
 0x4b0   :  { %v1985_v55 = vadd.f32 %v4686_v25, %v1983_v46  ;;  %v2205_v57 = vadd.f32 %v2202_v52, %v2180_v47  ;;  %v2159_v56 = vadd.f32 %v2156_v54, %v2131_v53 }
 0x4b2   :  { %v3212_v29 = vmul.f32 -1.442695, %v1985_v55  ;;  %v3221_v26 = vmul.f32 -1.442695, %v2205_v57  ;;  %v3219_v63 = vmul.f32 -1.442695, %v2159_v56 }
 0x4b4   :  { %v3372_v3 = vpop.eup %3371  ;;  %3373 = vpow2.f32 %v3212_v29 }
 0x4b5   :  { %v4780_v14 = vadd.f32 1.0, %v3372_v3  ;;  %3375 = vpow2.f32 %v3221_v26  ;;  %v2094_v43 = vpop.f32.mrf.mxu3 }
 0x4b6   :  { %3377 = vpow2.f32 %v3219_v63  ;;  %v2095_v1 = vadd.f32 %v4835_v36, %v2094_v43 }
 0x4b7   :  { %3379 = vrcp.f32 %v4780_v14  ;;  %vm2063_vm3 = vweird.f32 %v4780_v14  ;;  %v2069_v62 = vand.u32 2147483648, %v4780_v14  ;;  %v2067_v56 = vand.u32 2147483647, %v4780_v14 }
 0x4b9   :  { %vm2068_vm14 = vcmp.eq.f32.partialorder %v2067_v56, 8.507059e+37 }
 0x4ba   :  { %v3374_v23 = vpop.eup %3373 }
 0x4bb   :  { %v3376_v59 = vpop.eup %3375  ;;  %v1989_v7 = vadd.f32 1.0, %v3374_v23 }
 0x4bc   :  { %v3378_v17 = vpop.eup %3377  ;;  %v4783_v24 = vadd.f32 1.0, %v3376_v59  ;;  %v2226_v59 = vld [vmem:[#allocation4 + $0x10] sm:$0xff] }
 0x4bd   :  { %3381 = vrcp.f32 %v1989_v7  ;;  %v4785_v38 = vadd.f32 1.0, %v3378_v17  ;;  %v4787_v12 = vpop.eup %3379  ;;  %v2001_v33 = vand.u32 2147483648, %v1989_v7  ;;  %v1999_v15 = vand.u32 2147483647, %v1989_v7  ;;  %v2248_v50 = vpop.f32.mrf.mxu3 }
 0x4be   :  { %3383 = vrcp.f32 %v4783_v24  ;;  %v2059_v6 = vmul.f32 %v4787_v12, %v4780_v14  ;;  %vm1995_vm0 = vweird.f32 %v1989_v7  ;;  %vm2064_vm7 = vweird.f32 %v4787_v12 }
 0x4bf   :  { %3385 = vrcp.f32 %v4785_v38  ;;  %v2175_v10 = vand.u32 2147483648, %v4785_v38  ;;  %v2173_v44 = vand.u32 2147483647, %v4785_v38  ;;  %v2002_v27 = vor.u32 1.1754944e-38, %v2001_v33  ;;  %vm2065_vm11 = vmor %vm2063_vm3, %vm2064_vm7  ;;  %v4910_v33 = vld [vmem:[%s5172_s6] sm:$0xff] }
 0x4c0   :  { %v2060_v13 = vsub.f32 1.0, %v2059_v6  ;;  %vm2000_vm5 = vcmp.eq.f32.partialorder %v1999_v15, 8.507059e+37  ;;  %vm2169_vm6 = vweird.f32 %v4785_v38  ;;  %v2249_v55 = vadd.f32 %v4617_v32, %v2248_v50 }
 0x4c1   :  { %v2176_v52 = vor.u32 1.1754944e-38, %v2175_v10  ;;  %vm2174_vm9 = vcmp.eq.f32.partialorder %v2173_v44, 8.507059e+37  ;;  %v2221_v26 = vand.u32 2147483648, %v4783_v24  ;;  %vm2215_vm12 = vweird.f32 %v4783_v24  ;;  %v2509_v44 = vld [vmem:[#allocation3 + $0x8] sm:$0xff] }
 0x4c2   :  { %v2061_v40 = vmul.f32 %v4787_v12, %v2060_v13  ;;  %v2219_v32 = vand.u32 2147483647, %v4783_v24 }
 0x4c3   :  { %v3382_v2 = vpop.eup %3381  ;;  %v2222_v6 = vor.u32 1.1754944e-38, %v2221_v26  ;;  %v4928_v26 = vld [vmem:[#allocation18 + $0x18] sm:$0xff] }
 0x4c4   :  { %v4815_v9 = vpop.eup %3383  ;;  %v1991_v61 = vmul.f32 %v3382_v2, %v1989_v7  ;;  %vm1996_vm15 = vweird.f32 %v3382_v2  ;;  %v2062_v47 = vadd.f32 %v4787_v12, %v2061_v40  ;;  %v2070_v7 = vor.u32 1.1754944e-38, %v2069_v62 }
 0x4c5   :  { %v3386_v19 = vpop.eup %3385  ;;  %v2211_v42 = vmul.f32 %v4815_v9, %v4783_v24  ;;  %vm1997_vm4 = vmor %vm1995_vm0, %vm1996_vm15  ;;  %vm2216_vm10 = vweird.f32 %v4815_v9  ;;  %vm2220_vm15 = vcmp.eq.f32.partialorder %v2219_v32, 8.507059e+37  ;;  %v4935_v32 = vld [vmem:[#allocation17 + $0x10] sm:$0xff] }
 0x4c6   :  { %v1992_v60 = vsub.f32 1.0, %v1991_v61  ;;  %v2165_v34 = vmul.f32 %v3386_v19, %v4785_v38  ;;  %vm2170_vm1 = vweird.f32 %v3386_v19  ;;  %v2066_v23 = vsel %vm2065_vm11, %v4787_v12, %v2062_v47  ;;  %vm2217_vm13 = vmor %vm2215_vm12, %vm2216_vm10  ;;  %v2460_v47 = vld [vmem:[#allocation2 + $0x8] sm:$0xff] }
 0x4c7   :  { %v2212_v20 = vsub.f32 1.0, %v2211_v42  ;;  %vm2171_vm8 = vmor %vm2169_vm6, %vm2170_vm1  ;;  %v2071_v43 = vsel %vm2068_vm14, %v2070_v7, %v2066_v23  ;;  %v4937_v23 = vld [vmem:[#allocation18 + $0x10] sm:$0xff]  ;;  %v4943_v7 = vld [vmem:[#allocation12 + $0x18] sm:$0xff] }
 0x4c8   :  { %v1993_v18 = vmul.f32 %v3382_v2, %v1992_v60  ;;  %v2166_v41 = vsub.f32 1.0, %v2165_v34  ;;  %v2126_v24 = vmul.f32 %v2071_v43, %v4735_v22 }
 0x4c9   :  { %v2213_v11 = vmul.f32 %v4815_v9, %v2212_v20  ;;  %v4904_v20 = vld [vmem:[%s5172_s6 + $0x8] sm:$0xff] }
 0x4ca   :  { %v1994_v4 = vadd.f32 %v3382_v2, %v1993_v18  ;;  %v2167_v21 = vmul.f32 %v3386_v19, %v2166_v41 }
 0x4cb   :  { %v2214_v57 = vadd.f32 %v4815_v9, %v2213_v11 }
 0x4cc   :  { %v1998_v58 = vsel %vm1997_vm4, %v3382_v2, %v1994_v4  ;;  %v2168_v45 = vadd.f32 %v3386_v19, %v2167_v21  ;;  %v2124_v2 = vsub.f32 1.0, %v2071_v43  ;;  %v4948_v43 = vld [vmem:[#allocation18 + $0x8] sm:$0xff] }
 0x4cd   :  { %v2003_v46 = vsel %vm2000_vm5, %v2002_v27, %v1998_v58  ;;  %v2218_v38 = vsel %vm2217_vm13, %v4815_v9, %v2214_v57  ;;  %v4881_v9 = vld [vmem:[%s5172_s6 + $0x18] sm:$0xff] }
 0x4ce   :  { %v2121_v53 = vmul.f32 %v2119_v5, %v2003_v46  ;;  %v2172_v54 = vsel %vm2171_vm8, %v3386_v19, %v2168_v45  ;;  %v2223_v14 = vsel %vm2220_vm15, %v2222_v6, %v2218_v38  ;;  %v4946_v6 = vld [vmem:[#allocation17 + $0x8] sm:$0xff] }
 0x4cf   :  { %v2177_v29 = vsel %vm2174_vm9, %v2176_v52, %v2172_v54  ;;  %v2254_v19 = vsub.f32 1.0, %v2223_v14  ;;  %v2256_v60 = vmul.f32 %v2223_v14, %v4743_v0  ;;  %v4892_v0 = vld [vmem:[%s5172_s6 + $0x10] sm:$0xff] }
 0x4d0   :  { %v2122_v63 = vadd.f32 %v2121_v53, %v2095_v1  ;;  %v2251_v3 = vmul.f32 %v2249_v55, %v2177_v29  ;;  %v4926_v29 = vld [vmem:[#allocation17 + $0x18] sm:$0xff] }
 0x4d1   :  { %v4950_v14 = vld [vmem:[#allocation14 + $0x18] sm:$0xff] }
 0x4d2   :  { %3387 = vtanh.f32 %v2122_v63  ;;  %v2252_v17 = vadd.f32 %v2251_v3, %v2226_v59 }
 0x4d4   :  { %3389 = vtanh.f32 %v2252_v17 }
 0x4d8   :  { %v3388_v48 = vpop.eup %3387 }
 0x4d9   :  { %v2125_v61 = vmul.f32 %v3388_v48, %v2124_v2 }
 0x4da   :  { %v3390_v12 = vpop.eup %3389 }
 0x4db   :  { %v2127_v13 = vadd.f32 %v2126_v24, %v2125_v61  ;;  %v2255_v42 = vmul.f32 %v3390_v12, %v2254_v19  ;;  %v4957_v61 = vld [vmem:[#allocation12 + $0x10] sm:$0xff]  ;;  %v4959_v24 = vld [vmem:[#allocation17] sm:$0xff] }
 0x4dc   :  { %v4961_v19 = vld [vmem:[#allocation18] sm:$0xff] }
 0x4dd   :  { %2128 = vst.msk [vmem:[#allocation6] sm:$0xff] %vm339_vm2, %v2127_v13  ;;  %v2257_v34 = vadd.f32 %v2256_v60, %v2255_v42  ;;  %v4966_v42 = vld [vmem:[#allocation14 + $0x10] sm:$0xff]  ;;  %v4968_v60 = vld [vmem:[#allocation12 + $0x8] sm:$0xff] }
 0x4df   :  { %2258 = vst.msk [vmem:[#allocation5] sm:$0xff] %vm339_vm2, %v2257_v34  ;;  %3224 = vmatmul.msk.f32.vlgmr.msrb.gmra.mxu1 %vm339_vm2, %v2257_v34  ;;  %3227 = vmatmul.msk.f32.vlgmr.msra.gmra.mxu3 %vm339_vm2, %v2257_v34 }
 0x4e0   :  { %2612 = vmatpush.msrb.mxu1 %v4926_v29  ;;  %2683 = vmatpush.msra.mxu3 %v4928_v26 }
 0x4e2   :  { %2613 = vmatpush.msrb.mxu1 %v4935_v32  ;;  %2684 = vmatpush.msra.mxu3 %v4937_v23 }
 0x4e4   :  { %v4883_v22 = vld [vmem:[#allocation6] sm:$0xff]  ;;  %2614 = vmatpush.msrb.mxu1 %v4946_v6  ;;  %2685 = vmatpush.msra.mxu3 %v4948_v43 }
 0x4e5   :  { %3223 = vmatmul.msk.f32.vlgmr.msrb.gmra.mxu0 %vm339_vm2, %v4883_v22  ;;  %3226 = vmatmul.msk.f32.vlgmr.msrb.gmra.mxu2 %vm339_vm2, %v4883_v22 }
 0x4e6   :  { %v4894_v5 = vld [vmem:[#allocation5] sm:$0xff]  ;;  %2572 = vmatpush.msrb.mxu0 %v4881_v9  ;;  %2635 = vmatpush.msrb.mxu2 %v4943_v7 }
 0x4e7   :  { %3230 = vmatmul.msk.f32.vlgmr.msra.gmra.mxu1 %vm339_vm2, %v4883_v22  ;;  %3233 = vmatmul.msk.f32.vlgmr.msrb.gmra.mxu3 %vm339_vm2, %v4894_v5 }
 0x4e8   :  { %2573 = vmatpush.msrb.mxu0 %v4892_v0  ;;  %2636 = vmatpush.msrb.mxu2 %v4957_v61 }
 0x4e9   :  { %2615 = vmatpush.msrb.mxu1 %v4959_v24  ;;  %2686 = vmatpush.msra.mxu3 %v4961_v19 }
 0x4ea   :  { %2574 = vmatpush.msrb.mxu0 %v4904_v20  ;;  %2637 = vmatpush.msrb.mxu2 %v4968_v60 }
 0x4eb   :  { %2808 = vmatpush.msrb.mxu3 %v4826_v8  ;;  %v5007_v8 = vld [vmem:[#allocation20 + $0x10] sm:$0xff] }
 0x4ec   :  { %2575 = vmatpush.msrb.mxu0 %v4910_v33 }
 0x4ed   :  { %3229 = vmatmul.msk.f32.vlgmr.msra.gmra.mxu0 %vm339_vm2, %v2257_v34  ;;  %3231 = vmatmul.msk.f32.vlgmr.msra.gmra.mxu2 %vm339_vm2, %v4894_v5 }
 0x4ee   :  { %2703 = vmatpush.msra.mxu0 %v4950_v14  ;;  %2809 = vmatpush.msrb.mxu3 %v4831_v39 }
 0x4f0   :  { %2704 = vmatpush.msra.mxu0 %v4966_v42  ;;  %2810 = vmatpush.msrb.mxu3 %v4842_v16 }
 0x4f2   :  { %2811 = vmatpush.msrb.mxu3 %v4853_v51 }
 0x4f5   :  { %3235 = vmatmul.msk.f32.vlgmr.msrb.gmra.mxu0 %vm339_vm2, %v4894_v5 }
 0x55c   :  { %v2311_v18 = vpop.f32.mrf.mxu1 }
 0x562   :  { %v2379_v15 = vpop.f32.mrf.mxu3  ;;  %v2288_v41 = vpop.f32.mrf.mxu0 }
 0x563   :  { %v2312_v40 = vadd.f32 %v2311_v18, %v2288_v41  ;;  %v4977_v41 = vld [vmem:[#allocation15 + $0x18] sm:$0xff] }
 0x564   :  { %v2447_v18 = vpop.f32.mrf.mxu1  ;;  %2747 = vmatpush.msra.mxu1 %v4977_v41 }
 0x565   :  { %v2314_v1 = vadd.f32 %v4686_v25, %v2312_v40  ;;  %v4979_v40 = vld [vmem:[#allocation12] sm:$0xff] }
 0x566   :  { %2638 = vmatpush.msrb.mxu2 %v4979_v40 }
 0x567   :  { %v3225_v10 = vmul.f32 -1.442695, %v2314_v1 }
 0x568   :  { %v2359_v4 = vpop.f32.mrf.mxu2 }
 0x569   :  { %3391 = vpow2.f32 %v3225_v10  ;;  %v2380_v21 = vadd.f32 %v2379_v15, %v2359_v4  ;;  %v4975_v15 = vld [vmem:[#allocation14 + $0x8] sm:$0xff] }
 0x56a   :  { %v2531_v62 = vpop.f32.mrf.mxu3  ;;  %2705 = vmatpush.msra.mxu0 %v4975_v15 }
 0x56b   :  { %v2382_v11 = vadd.f32 %v4776_v31, %v2380_v21  ;;  %v2534_v27 = vadd.f32 %v2531_v62, %v2509_v44  ;;  %v2423_v21 = vpop.f32.mrf.mxu0  ;;  %v4988_v44 = vld [vmem:[#allocation15 + $0x10] sm:$0xff]  ;;  %v4990_v62 = vld [vmem:[#allocation20 + $0x18] sm:$0xff] }
 0x56c   :  { %2748 = vmatpush.msra.mxu1 %v4988_v44  ;;  %2771 = vmatpush.msra.mxu2 %v4990_v62 }
 0x56d   :  { %v3228_v50 = vmul.f32 -1.442695, %v2382_v11  ;;  %v3234_v58 = vmul.f32 -1.442695, %v2534_v27  ;;  %v4994_v27 = vld [vmem:[#allocation14] sm:$0xff] }
 0x56e   :  { %2706 = vmatpush.msra.mxu0 %v4994_v27  ;;  %2772 = vmatpush.msra.mxu2 %v5007_v8 }
 0x56f   :  { %v3392_v45 = vpop.eup %3391  ;;  %3393 = vpow2.f32 %v3228_v50 }
 0x570   :  { %v4921_v46 = vadd.f32 1.0, %v3392_v45  ;;  %3395 = vpow2.f32 %v3234_v58  ;;  %v2485_v52 = vpop.f32.mrf.mxu2  ;;  %v2448_v58 = vadd.f32 %v4703_v37, %v2447_v18  ;;  %2853 = vmatpush.msrb.mxu0 %v4794_v49  ;;  %v5030_v49 = vld [vmem:[#allocation20] sm:$0xff] }
 0x571   :  { %v2488_v53 = vadd.f32 %v2485_v52, %v2460_v47 }
 0x572   :  { %3397 = vrcp.f32 %v4921_v46  ;;  %v2330_v2 = vand.u32 2147483648, %v4921_v46  ;;  %v2328_v13 = vand.u32 2147483647, %v4921_v46  ;;  %vm2324_vm1 = vweird.f32 %v4921_v46  ;;  %2854 = vmatpush.msrb.mxu0 %v4799_v35 }
 0x573   :  { %v3232_v54 = vmul.f32 -1.442695, %v2488_v53  ;;  %v2424_v53 = vadd.f32 %v4835_v36, %v2423_v21  ;;  %v2577_v21 = vpop.f32.mrf.mxu0 }
 0x574   :  { %v2331_v11 = vor.u32 1.1754944e-38, %v2330_v2  ;;  %vm2329_vm4 = vcmp.eq.f32.partialorder %v2328_v13, 8.507059e+37  ;;  %2855 = vmatpush.msrb.mxu0 %v4807_v30 }
 0x575   :  { %v3394_v55 = vpop.eup %3393  ;;  %3399 = vpow2.f32 %v3232_v54 }
 0x576   :  { %v3396_v57 = vpop.eup %3395  ;;  %v4924_v56 = vadd.f32 1.0, %v3394_v55  ;;  %2856 = vmatpush.msrb.mxu0 %v4813_v28 }
 0x577   :  { %v4930_v63 = vadd.f32 1.0, %v3396_v57  ;;  %v5013_v57 = vld [vmem:[#allocation15] sm:$0xff] }
 0x578   :  { %v3398_v3 = vpop.eup %3397  ;;  %3401 = vrcp.f32 %v4924_v56  ;;  %v2398_v55 = vand.u32 2147483648, %v4924_v56  ;;  %vm2392_vm6 = vweird.f32 %v4924_v56 }
 0x579   :  { %v2320_v59 = vmul.f32 %v3398_v3, %v4921_v46  ;;  %3403 = vrcp.f32 %v4930_v63  ;;  %vm2325_vm0 = vweird.f32 %v3398_v3  ;;  %v5000_v46 = vld [vmem:[#allocation15 + $0x8] sm:$0xff]  ;;  %vm2544_vm14 = vweird.f32 %v4930_v63 }
 0x57a   :  { %vm2326_vm3 = vmor %vm2324_vm1, %vm2325_vm0  ;;  %2749 = vmatpush.msra.mxu1 %v5000_v46  ;;  %v2399_v13 = vor.u32 1.1754944e-38, %v2398_v55  ;;  %v2548_v55 = vand.u32 2147483647, %v4930_v63 }
 0x57b   :  { %v3400_v17 = vpop.eup %3399  ;;  %v2321_v38 = vsub.f32 1.0, %v2320_v59  ;;  %v2396_v59 = vand.u32 2147483647, %v4924_v56 }
 0x57c   :  { %v4953_v48 = vadd.f32 1.0, %v3400_v17  ;;  %v5019_v17 = vld [vmem:[#allocation20 + $0x8] sm:$0xff]  ;;  %2750 = vmatpush.msra.mxu1 %v5013_v57  ;;  %vm2549_vm0 = vcmp.eq.f32.partialorder %v2548_v55, 8.507059e+37 }
 0x57d   :  { %v2322_v12 = vmul.f32 %v3398_v3, %v2321_v38  ;;  %2773 = vmatpush.msra.mxu2 %v5019_v17  ;;  %vm2397_vm8 = vcmp.eq.f32.partialorder %v2396_v59, 8.507059e+37  ;;  %v2555_v59 = vld [vmem:[#allocation4 + $0x8] sm:$0xff] }
 0x57e   :  { %v4970_v34 = vpop.eup %3401  ;;  %3405 = vrcp.f32 %v4953_v48  ;;  %v2504_v16 = vand.u32 2147483648, %v4953_v48  ;;  %v2502_v35 = vand.u32 2147483647, %v4953_v48  ;;  %vm2498_vm10 = vweird.f32 %v4953_v48 }
 0x57f   :  { %v4981_v1 = vpop.eup %3403  ;;  %v2323_v10 = vadd.f32 %v3398_v3, %v2322_v12  ;;  %v2388_v4 = vmul.f32 %v4970_v34, %v4924_v56  ;;  %vm2393_vm5 = vweird.f32 %v4970_v34  ;;  %2774 = vmatpush.msra.mxu2 %v5030_v49 }
 0x580   :  { %v2540_v52 = vmul.f32 %v4981_v1, %v4930_v63  ;;  %vm2394_vm7 = vmor %vm2392_vm6, %vm2393_vm5  ;;  %vm2545_vm12 = vweird.f32 %v4981_v1  ;;  %vm2503_vm13 = vcmp.eq.f32.partialorder %v2502_v35, 8.507059e+37 }
 0x581   :  { %v2327_v50 = vsel %vm2326_vm3, %v3398_v3, %v2323_v10  ;;  %v2389_v45 = vsub.f32 1.0, %v2388_v4  ;;  %vm2546_vm15 = vmor %vm2544_vm14, %vm2545_vm12 }
 0x582   :  { %v2332_v47 = vsel %vm2329_vm4, %v2331_v11, %v2327_v50  ;;  %v2541_v39 = vsub.f32 1.0, %v2540_v52  ;;  %v2505_v50 = vor.u32 1.1754944e-38, %v2504_v16 }
 0x583   :  { %v2450_v37 = vmul.f32 %v2448_v58, %v2332_v47  ;;  %v2390_v54 = vmul.f32 %v4970_v34, %v2389_v45  ;;  %v5046_v45 = vld [vmem:[%s5176_s10] ss:$0 sm:$0xff] }
 0x584   :  { %v3406_v3 = vpop.eup %3405  ;;  %v2578_v47 = vadd.f32 %v5046_v45, %v2577_v21 }
 0x585   :  { %v2391_v38 = vadd.f32 %v4970_v34, %v2390_v54  ;;  %v2451_v2 = vadd.f32 %v2450_v37, %v2424_v53  ;;  %v2494_v12 = vmul.f32 %v3406_v3, %v4953_v48  ;;  %vm2499_vm9 = vweird.f32 %v3406_v3 }
 0x586   :  { %vm2500_vm11 = vmor %vm2498_vm10, %vm2499_vm9  ;;  %v2550_v37 = vand.u32 2147483648, %v4930_v63 }
 0x587   :  { %v2395_v56 = vsel %vm2394_vm7, %v4970_v34, %v2391_v38  ;;  %3407 = vtanh.f32 %v2451_v2  ;;  %v2495_v18 = vsub.f32 1.0, %v2494_v12  ;;  %v2542_v34 = vmul.f32 %v4981_v1, %v2541_v39 }
 0x588   :  { %v2400_v10 = vsel %vm2397_vm8, %v2399_v13, %v2395_v56  ;;  %v2551_v12 = vor.u32 1.1754944e-38, %v2550_v37 }
 0x589   :  { %v2496_v4 = vmul.f32 %v3406_v3, %v2495_v18  ;;  %v2453_v51 = vsub.f32 1.0, %v2400_v10  ;;  %v2543_v28 = vadd.f32 %v4981_v1, %v2542_v34  ;;  %v2455_v48 = vmul.f32 %v2400_v10, %v4883_v22 }
 0x58b   :  { %v2497_v11 = vadd.f32 %v3406_v3, %v2496_v4  ;;  %v2547_v2 = vsel %vm2546_vm15, %v4981_v1, %v2543_v28 }
 0x58c   :  { %v2552_v22 = vsel %vm2549_vm0, %v2551_v12, %v2547_v2 }
 0x58d   :  { %v3408_v58 = vpop.eup %3407  ;;  %v2501_v30 = vsel %vm2500_vm11, %v3406_v3, %v2497_v11  ;;  %v2583_v39 = vsub.f32 1.0, %v2552_v22  ;;  %v2585_v63 = vmul.f32 %v2552_v22, %v4894_v5 }
 0x58e   :  { %v2454_v52 = vmul.f32 %v3408_v58, %v2453_v51  ;;  %v2506_v53 = vsel %vm2503_vm13, %v2505_v50, %v2501_v30 }
 0x58f   :  { %v2580_v54 = vmul.f32 %v2578_v47, %v2506_v53 }
 0x590   :  { %v2456_v3 = vadd.f32 %v2455_v48, %v2454_v52 }
 0x591   :  { %v2581_v38 = vadd.f32 %v2580_v54, %v2555_v59  ;;  %v5125_v54 = vld [vmem:[#allocation26] ss:$0 sm:$0xff] }
 0x592   :  { %2457 = vst.msk [vmem:[#allocation6] sm:$0xff] %vm339_vm2, %v2456_v3 }
 0x593   :  { %3409 = vtanh.f32 %v2581_v38 }
 0x599   :  { %v3410_v56 = vpop.eup %3409  ;;  %v5058_v13 = vld [vmem:[#allocation6] sm:$0xff] }
 0x59a   :  { %v2584_v18 = vmul.f32 %v3410_v56, %v2583_v39  ;;  %3236 = vmatmul.msk.f32.vlgmr.msrb.gmra.mxu1 %vm339_vm2, %v5058_v13  ;;  %3239 = vmatmul.msk.f32.vlgmr.msra.gmra.mxu3 %vm339_vm2, %v5058_v13 }
 0x59b   :  { %2898 = vmatpush.msrb.mxu1 %v4881_v9  ;;  %2961 = vmatpush.msra.mxu3 %v4943_v7 }
 0x59c   :  { %v2586_v1 = vadd.f32 %v2585_v63, %v2584_v18 }
 0x59d   :  { %2899 = vmatpush.msrb.mxu1 %v4892_v0  ;;  %2962 = vmatpush.msra.mxu3 %v4957_v61 }
 0x59e   :  { %2587 = vst.msk [vmem:[#allocation5] sm:$0xff] %vm339_vm2, %v2586_v1  ;;  %3237 = vmatmul.msk.f32.vlgmr.msrb.gmra.mxu2 %vm339_vm2, %v2586_v1  ;;  %3240 = vmatmul.msk.f32.vlgmr.msra.gmra.mxu0 %vm339_vm2, %v2586_v1 }
 0x59f   :  { %2900 = vmatpush.msrb.mxu1 %v4904_v20  ;;  %2938 = vmatpush.msrb.mxu2 %v4926_v29 }
 0x5a0   :  { %3009 = vmatpush.msra.mxu0 %v4928_v26  ;;  %2963 = vmatpush.msra.mxu3 %v4968_v60 }
 0x5a1   :  { %2901 = vmatpush.msrb.mxu1 %v4910_v33  ;;  %2939 = vmatpush.msrb.mxu2 %v4935_v32 }
 0x5a2   :  { %3242 = vmatmul.msk.f32.vlgmr.msra.gmra.mxu1 %vm339_vm2, %v2586_v1  ;;  %3010 = vmatpush.msra.mxu0 %v4937_v23 }
 0x5a3   :  { %3029 = vmatpush.msra.mxu1 %v4950_v14  ;;  %2940 = vmatpush.msrb.mxu2 %v4946_v6  ;;  %v2836_v6 = vld [vmem:[#allocation3] sm:$0xff] }
 0x5a4   :  { %2964 = vmatpush.msra.mxu3 %v4979_v40  ;;  %3011 = vmatpush.msra.mxu0 %v4948_v43 }
 0x5a5   :  { %v5084_v9 = vld [vmem:[#allocation5] sm:$0xff]  ;;  %3030 = vmatpush.msra.mxu1 %v4966_v42  ;;  %2941 = vmatpush.msrb.mxu2 %v4959_v24 }
 0x5a6   :  { %3243 = vmatmul.msk.f32.vlgmr.msra.gmra.mxu2 %vm339_vm2, %v5058_v13  ;;  %3244 = vmatmul.msk.f32.vlgmr.msrb.gmra.mxu3 %vm339_vm2, %v5084_v9 }
 0x5a7   :  { %3246 = vmatmul.msk.f32.vlgmr.msrb.gmra.mxu0 %vm339_vm2, %v5084_v9  ;;  %3031 = vmatpush.msra.mxu1 %v4975_v15 }
 0x5a8   :  { %3012 = vmatpush.msra.mxu0 %v4961_v19  ;;  %3097 = vmatpush.msrb.mxu3 %v4990_v62  ;;  %v2788_v19 = vld [vmem:[#allocation2] sm:$0xff] }
 0x5a9   :  { %3032 = vmatpush.msra.mxu1 %v4994_v27  ;;  %3073 = vmatpush.msra.mxu2 %v4977_v41 }
 0x5aa   :  { %3248 = vmatmul.msk.f32.vlgmr.msrb.gmra.mxu1 %vm339_vm2, %v5084_v9  ;;  %3098 = vmatpush.msrb.mxu3 %v5007_v8 }
 0x5ab   :  { %3074 = vmatpush.msra.mxu2 %v4988_v44 }
 0x5ac   :  { %3099 = vmatpush.msrb.mxu3 %v5019_v17 }
 0x5ad   :  { %3075 = vmatpush.msra.mxu2 %v5000_v46 }
 0x5ae   :  { %3100 = vmatpush.msrb.mxu3 %v5030_v49 }
 0x5af   :  { %3076 = vmatpush.msra.mxu2 %v5013_v57 }
 0x617   :  { %v2617_v29 = vpop.f32.mrf.mxu1 }
 0x61b   :  { %v2708_v0 = vpop.f32.mrf.mxu0 }
 0x61d   :  { %v2688_v5 = vpop.f32.mrf.mxu3 }
 0x61e   :  { %v2709_v20 = vadd.f32 %v2708_v0, %v2688_v5 }
 0x61f   :  { %v2752_v10 = vpop.f32.mrf.mxu1 }
 0x620   :  { %v2711_v33 = vadd.f32 %v4776_v31, %v2709_v20  ;;  %v2753_v48 = vadd.f32 %v4835_v36, %v2752_v10 }
 0x621   :  { %v2640_v26 = vpop.f32.mrf.mxu2 }
 0x622   :  { %v3241_v32 = vmul.f32 -1.442695, %v2711_v33  ;;  %v2641_v23 = vadd.f32 %v2640_v26, %v2617_v29 }
 0x624   :  { %3411 = vpow2.f32 %v3241_v32  ;;  %v2643_v7 = vadd.f32 %v4686_v25, %v2641_v23  ;;  %v2858_v43 = vpop.f32.mrf.mxu0 }
 0x625   :  { %v2861_v14 = vadd.f32 %v2858_v43, %v2836_v6 }
 0x626   :  { %v3238_v61 = vmul.f32 -1.442695, %v2643_v7 }
 0x627   :  { %v3247_v24 = vmul.f32 -1.442695, %v2861_v14  ;;  %v2903_v39 = vpop.f32.mrf.mxu1 }
 0x628   :  { %3413 = vpow2.f32 %v3238_v61  ;;  %v2904_v29 = vadd.f32 %v5046_v45, %v2903_v39 }
 0x629   :  { %3415 = vpow2.f32 %v3247_v24  ;;  %v2813_v42 = vpop.f32.mrf.mxu3  ;;  %v2776_v58 = vpop.f32.mrf.mxu2 }
 0x62a   :  { %v3412_v60 = vpop.eup %3411  ;;  %v2816_v15 = vadd.f32 %v2813_v42, %v2788_v19  ;;  %v2777_v55 = vadd.f32 %v5125_v54, %v2776_v58  ;;  %v2881_v19 = vld [vmem:[#allocation4] sm:$0xff] }
 0x62b   :  { %v5109_v41 = vadd.f32 1.0, %v3412_v60 }
 0x62c   :  { %v3245_v40 = vmul.f32 -1.442695, %v2816_v15 }
 0x62d   :  { %3417 = vrcp.f32 %v5109_v41  ;;  %v2727_v3 = vand.u32 2147483648, %v5109_v41  ;;  %vm2721_vm8 = vweird.f32 %v5109_v41  ;;  %v2725_v0 = vand.u32 2147483647, %v5109_v41 }
 0x62e   :  { %v3414_v44 = vpop.eup %3413  ;;  %3419 = vpow2.f32 %v3245_v40 }
 0x62f   :  { %v3416_v62 = vpop.eup %3415  ;;  %v2647_v25 = vadd.f32 1.0, %v3414_v44  ;;  %v2728_v23 = vor.u32 1.1754944e-38, %v2727_v3  ;;  %vm2726_vm14 = vcmp.eq.f32.partialorder %v2725_v0, 8.507059e+37 }
 0x630   :  { %v5112_v27 = vadd.f32 1.0, %v3416_v62 }
 0x631   :  { %3421 = vrcp.f32 %v2647_v25  ;;  %v2659_v11 = vand.u32 2147483648, %v2647_v25  ;;  %v2657_v50 = vand.u32 2147483647, %v2647_v25  ;;  %vm2653_vm3 = vweird.f32 %v2647_v25 }
 0x632   :  { %3423 = vrcp.f32 %v5112_v27  ;;  %v2877_v14 = vand.u32 2147483648, %v5112_v27  ;;  %vm2871_vm15 = vweird.f32 %v5112_v27  ;;  %v2875_v24 = vand.u32 2147483647, %v5112_v27 }
 0x633   :  { %v5115_v46 = vpop.eup %3417  ;;  %v2660_v37 = vor.u32 1.1754944e-38, %v2659_v11  ;;  %vm2658_vm5 = vcmp.eq.f32.partialorder %v2657_v50, 8.507059e+37 }
 0x634   :  { %v3420_v8 = vpop.eup %3419  ;;  %v2717_v57 = vmul.f32 %v5115_v46, %v5109_v41  ;;  %vm2722_vm6 = vweird.f32 %v5115_v46  ;;  %v2878_v40 = vor.u32 1.1754944e-38, %v2877_v14 }
 0x635   :  { %v2820_v17 = vadd.f32 1.0, %v3420_v8  ;;  %vm5134_vm9 = vmor %vm2721_vm8, %vm2722_vm6 }
 0x636   :  { %v2718_v35 = vsub.f32 1.0, %v2717_v57 }
 0x637   :  { %v3422_v49 = vpop.eup %3421  ;;  %3425 = vrcp.f32 %v2820_v17  ;;  %v2832_v22 = vand.u32 2147483648, %v2820_v17  ;;  %v2830_v63 = vand.u32 2147483647, %v2820_v17  ;;  %vm2826_vm10 = vweird.f32 %v2820_v17 }
 0x638   :  { %v5119_v16 = vpop.eup %3423  ;;  %v2649_v4 = vmul.f32 %v3422_v49, %v2647_v25  ;;  %vm2654_vm1 = vweird.f32 %v3422_v49  ;;  %v2719_v47 = vmul.f32 %v5115_v46, %v2718_v35 }
 0x639   :  { %v2867_v21 = vmul.f32 %v5119_v16, %v5112_v27  ;;  %vm2655_vm4 = vmor %vm2653_vm3, %vm2654_vm1  ;;  %v2833_v32 = vor.u32 1.1754944e-38, %v2832_v22  ;;  %vm2831_vm12 = vcmp.eq.f32.partialorder %v2830_v63, 8.507059e+37  ;;  %vm2872_vm13 = vweird.f32 %v5119_v16 }
 0x63a   :  { %v2650_v34 = vsub.f32 1.0, %v2649_v4  ;;  %v2720_v12 = vadd.f32 %v5115_v46, %v2719_v47  ;;  %vm2873_vm0 = vmor %vm2871_vm15, %vm2872_vm13  ;;  %vm2876_vm1 = vcmp.eq.f32.partialorder %v2875_v24, 8.507059e+37 }
 0x63b   :  { %v2868_v53 = vsub.f32 1.0, %v2867_v21 }
 0x63c   :  { %v2651_v51 = vmul.f32 %v3422_v49, %v2650_v34  ;;  %v2724_v26 = vsel %vm5134_vm9, %v5115_v46, %v2720_v12 }
 0x63d   :  { %v3426_v30 = vpop.eup %3425  ;;  %v2869_v1 = vmul.f32 %v5119_v16, %v2868_v53  ;;  %v2729_v61 = vsel %vm2726_vm14, %v2728_v23, %v2724_v26 }
 0x63e   :  { %v2652_v28 = vadd.f32 %v3422_v49, %v2651_v51  ;;  %v2822_v52 = vmul.f32 %v3426_v30, %v2820_v17  ;;  %vm2827_vm7 = vweird.f32 %v3426_v30  ;;  %v2782_v60 = vsub.f32 1.0, %v2729_v61  ;;  %v3448_v51 = vld [vmem:[#allocation21] ss:$0 sm:$0xff] }
 0x63f   :  { %vm2828_vm11 = vmor %vm2826_vm10, %vm2827_vm7  ;;  %v2870_v6 = vadd.f32 %v5119_v16, %v2869_v1  ;;  %v2784_v62 = vmul.f32 %v2729_v61, %v5058_v13 }
 0x640   :  { %v2656_v59 = vsel %vm2655_vm4, %v3422_v49, %v2652_v28  ;;  %v2823_v38 = vsub.f32 1.0, %v2822_v52 }
 0x641   :  { %v2661_v2 = vsel %vm2658_vm5, %v2660_v37, %v2656_v59  ;;  %v2874_v15 = vsel %vm2873_vm0, %v5119_v16, %v2870_v6 }
 0x642   :  { %v2779_v56 = vmul.f32 %v2777_v55, %v2661_v2  ;;  %v2824_v18 = vmul.f32 %v3426_v30, %v2823_v38  ;;  %v2879_v25 = vsel %vm2876_vm1, %v2878_v40, %v2874_v15 }
 0x643   :  { %v2909_v8 = vsub.f32 1.0, %v2879_v25  ;;  %v2911_v17 = vmul.f32 %v2879_v25, %v5084_v9 }
 0x644   :  { %v2780_v20 = vadd.f32 %v2779_v56, %v2753_v48  ;;  %v2825_v33 = vadd.f32 %v3426_v30, %v2824_v18 }
 0x646   :  { %3427 = vtanh.f32 %v2780_v20  ;;  %v2829_v7 = vsel %vm2828_vm11, %v3426_v30, %v2825_v33 }
 0x647   :  { %v2834_v43 = vsel %vm2831_vm12, %v2833_v32, %v2829_v7 }
 0x648   :  { %v2906_v45 = vmul.f32 %v2904_v29, %v2834_v43 }
 0x64a   :  { %v2907_v42 = vadd.f32 %v2906_v45, %v2881_v19 }
 0x64c   :  { %v3428_v41 = vpop.eup %3427  ;;  %3429 = vtanh.f32 %v2907_v42 }
 0x64d   :  { %v2783_v44 = vmul.f32 %v3428_v41, %v2782_v60 }
 0x64f   :  { %v2785_v46 = vadd.f32 %v2784_v62, %v2783_v44 }
 0x651   :  { %2786 = vst.msk [vmem:[#allocation6] sm:$0xff] %vm339_vm2, %v2785_v46 }
 0x652   :  { %v3430_v57 = vpop.eup %3429 }
 0x653   :  { %v2910_v27 = vmul.f32 %v3430_v57, %v2909_v8 }
 0x655   :  { %v2912_v49 = vadd.f32 %v2911_v17, %v2910_v27 }
 0x657   :  { %2913 = vst.msk [vmem:[#allocation5] sm:$0xff] %vm339_vm2, %v2912_v49  ;;  %3250 = vmatmul.msk.f32.vlgmr.msra.gmra.mxu3 %vm339_vm2, %v2912_v49  ;;  %3253 = vmatmul.msk.f32.vlgmr.msra.gmra.mxu1 %vm339_vm2, %v2912_v49 }
 0x658   :  { %v2914_v16 = vld [vmem:[#allocation6] sm:$0xff] }
 0x659   :  { %3249 = vmatmul.msk.f32.vlgmr.msrb.gmra.mxu2 %vm339_vm2, %v2914_v16  ;;  %3252 = vmatmul.msk.f32.vlgmr.msra.gmra.mxu0 %vm339_vm2, %v2914_v16 }
 0x65f   :  { %3256 = vmatmul.msk.f32.vlgmr.msrb.gmra.mxu3 %vm339_vm2, %v2914_v16 }
 0x661   :  { %3255 = vmatmul.msk.f32.vlgmr.msra.gmra.mxu2 %vm339_vm2, %v2912_v49 }
 0x6d4   :  { %v3034_v13 = vpop.f32.mrf.mxu1 }
 0x6d6   :  { %v3014_v10 = vpop.f32.mrf.mxu0 }
 0x6d7   :  { %v3035_v4 = vadd.f32 %v3034_v13, %v3014_v10 }
 0x6d9   :  { %v3037_v9 = vadd.f32 %v4776_v31, %v3035_v4 }
 0x6da   :  { %v2966_v34 = vpop.f32.mrf.mxu3 }
 0x6db   :  { %v3254_v35 = vmul.f32 -1.442695, %v3037_v9 }
 0x6dc   :  { %v2943_v21 = vpop.f32.mrf.mxu2 }
 0x6dd   :  { %3431 = vpow2.f32 %v3254_v35  ;;  %v2967_v11 = vadd.f32 %v2966_v34, %v2943_v21 }
 0x6df   :  { %v2969_v50 = vadd.f32 %v3448_v51, %v2967_v11 }
 0x6e1   :  { %v3251_v58 = vmul.f32 -1.442695, %v2969_v50 }
 0x6e2   :  { %v3102_v22 = vpop.f32.mrf.mxu3 }
 0x6e3   :  { %v3432_v30 = vpop.eup %3431  ;;  %3433 = vpow2.f32 %v3251_v58  ;;  %v3103_v1 = vadd.f32 %v5125_v54, %v3102_v22 }
 0x6e4   :  { %v3041_v47 = vadd.f32 1.0, %v3432_v30  ;;  %v3078_v18 = vpop.f32.mrf.mxu2 }
 0x6e5   :  { %v3079_v29 = vadd.f32 %v4835_v36, %v3078_v18 }
 0x6e6   :  { %3435 = vrcp.f32 %v3041_v47  ;;  %v3053_v20 = vand.u32 2147483648, %v3041_v47  ;;  %vm3047_vm8 = vweird.f32 %v3041_v47  ;;  %v3051_v26 = vand.u32 2147483647, %v3041_v47 }
 0x6e8   :  { %v3054_v7 = vor.u32 1.1754944e-38, %v3053_v20  ;;  %vm3052_vm10 = vcmp.eq.f32.partialorder %v3051_v26, 8.507059e+37 }
 0x6e9   :  { %v3434_v28 = vpop.eup %3433 }
 0x6ea   :  { %v2973_v52 = vadd.f32 1.0, %v3434_v28 }
 0x6ec   :  { %3437 = vrcp.f32 %v2973_v52  ;;  %v3436_v48 = vpop.eup %3435  ;;  %v2985_v59 = vand.u32 2147483648, %v2973_v52  ;;  %v2983_v2 = vand.u32 2147483647, %v2973_v52  ;;  %vm2979_vm4 = vweird.f32 %v2973_v52 }
 0x6ed   :  { %v3043_v53 = vmul.f32 %v3436_v48, %v3041_v47  ;;  %vm3048_vm7 = vweird.f32 %v3436_v48 }
 0x6ee   :  { %v2986_v56 = vor.u32 1.1754944e-38, %v2985_v59  ;;  %vm2984_vm6 = vcmp.eq.f32.partialorder %v2983_v2, 8.507059e+37  ;;  %vm3049_vm9 = vmor %vm3047_vm8, %vm3048_vm7 }
 0x6ef   :  { %v3044_v31 = vsub.f32 1.0, %v3043_v53 }
 0x6f1   :  { %v3045_v12 = vmul.f32 %v3436_v48, %v3044_v31 }
 0x6f2   :  { %v3438_v37 = vpop.eup %3437 }
 0x6f3   :  { %v2975_v55 = vmul.f32 %v3438_v37, %v2973_v52  ;;  %vm2980_vm3 = vweird.f32 %v3438_v37  ;;  %v3046_v5 = vadd.f32 %v3436_v48, %v3045_v12 }
 0x6f4   :  { %vm2981_vm5 = vmor %vm2979_vm4, %vm2980_vm3 }
 0x6f5   :  { %v2976_v3 = vsub.f32 1.0, %v2975_v55  ;;  %v3050_v23 = vsel %vm3049_vm9, %v3436_v48, %v3046_v5 }
 0x6f6   :  { %v3055_v6 = vsel %vm3052_vm10, %v3054_v7, %v3050_v23 }
 0x6f7   :  { %v2977_v38 = vmul.f32 %v3438_v37, %v2976_v3  ;;  %v3108_v43 = vsub.f32 1.0, %v3055_v6  ;;  %v3110_v54 = vmul.f32 %v3055_v6, %v2914_v16 }
 0x6f9   :  { %v2978_v39 = vadd.f32 %v3438_v37, %v2977_v38 }
 0x6fb   :  { %v2982_v63 = vsel %vm2981_vm5, %v3438_v37, %v2978_v39 }
 0x6fc   :  { %v2987_v0 = vsel %vm2984_vm6, %v2986_v56, %v2982_v63 }
 0x6fd   :  { %v3105_v33 = vmul.f32 %v3103_v1, %v2987_v0 }
 0x6ff   :  { %v3106_v32 = vadd.f32 %v3105_v33, %v3079_v29 }
 0x701   :  { %3439 = vtanh.f32 %v3106_v32 }
 0x707   :  { %v3440_v14 = vpop.eup %3439 }
 0x708   :  { %v3109_v61 = vmul.f32 %v3440_v14, %v3108_v43 }
 0x70a   :  { %v3111_v45 = vadd.f32 %v3110_v54, %v3109_v61 }
 0x70c   :  { %3112 = vst.msk [vmem:[#allocation6] sm:$0xff] %vm339_vm2, %v3111_v45 }
 0x713   :  { %v3113_v24 = vld [vmem:[#allocation6] sm:$0xff] }
 0x714   :  { %3114 = vst.msk [vmem:[%s5187_s21] sm:$0xff] %vm339_vm2, %v3113_v24 }
 0x715   :  { %3119 = vsyncpa [#allocation8], 1 }
 0x716   :  { %3120 = vsyncpa [#allocation10], 1 }
 0x717   :  { %3121 = vsyncpa [#allocation13], 1 }
 0x718   :  { %3122 = vsyncpa [#allocation16], 1 }
 0x719   :  { %3123 = vsyncpa [#allocation19], 1 }
 0x71a   :  { %3124 = vsyncpa [#allocation22], 1 }
 0x71b   :  { %3125 = vsyncpa [#allocation25], 1 }

</bundles_post_ra>
